<compile_context>
chip_gen: v7x
topology: tpu7x:2x2x1
jax: 0.10.0
libtpu: 0.0.40
codegen_flags: <defaults>
</compile_context>

<pallas_src>
import functools

import jax
import jax.numpy as jnp
from jax.experimental import pallas as pl
from jax.experimental.pallas import tpu as pltpu

VMEM = pl.BlockSpec(memory_space=pltpu.MemorySpace.VMEM)


# ---------------------------------------------------------------------------
# Single fused kernel:
#   edge attention -> gumbel softmax (soft + hard)
#   -> 2x [ (GraphConv -> BN -> ELU)x2 -> GraphConv -> BN -> Linear ]
# ---------------------------------------------------------------------------
def fused_forward_kernel(ew_ref, gumbel_ref, S_ref, M_ref, h0_ref, W_ref, P_ref,
                         h_soft_ref, logit_soft_ref, h_hard_ref, logit_hard_ref,
                         *, tau, num_layers, num_aspects):
    f32, bf16 = jnp.float32, jnp.bfloat16

    # ---- packed broadcast params: one (8,128) slab, static row slices ----
    P = P_ref[...]
    gamma = P[1:2, :]            # shared bn1 weight  (1, Dp)
    beta = P[2:3, :]             # shared bn1 bias    (1, Dp)
    b_lin = P[3:4, :]            # classifier bias    (1, Dp)
    b_attn = P[7:8, 0:1]         # attention bias     (1, 1)

    ew = ew_ref[...]                                   # (E, K, Dp) f32, lane-dense
    w_attn_col = W_ref[num_layers + 1][:, 0:1]         # (Dp, 1) attention weight column

    # ---- per-edge aspect attention logits on the MXU (K static, tiny matvecs) ----
    cols = [jnp.dot(ew[:, k, :], w_attn_col, preferred_element_type=f32)
            for k in range(num_aspects)]               # K x (E, 1)
    logits = jnp.concatenate(cols, axis=-1) + b_attn   # (E, K)

    # ---- gumbel softmax: soft probabilities + hard straight-through one-hot ----
    y = (logits + gumbel_ref[...]) / tau
    y_max = jnp.max(y, axis=-1, keepdims=True)
    e = jnp.exp(y - y_max)
    p_soft = e / jnp.sum(e, axis=-1, keepdims=True)    # exact normalization

    kidx = jax.lax.broadcasted_iota(jnp.int32, y.shape, 1).astype(f32)
    cand = jnp.where(y >= y_max, kidx, float(num_aspects))
    p_hard = (kidx == jnp.min(cand, axis=-1, keepdims=True)).astype(f32)  # argmax one-hot

    # ---- shared GCN operands (cast once; bf16 MXU operands, f32 accumulation) ----
    S_bf = S_ref[...].astype(bf16)                     # (E, N) gather, norm_src pre-folded
    M_bf = M_ref[...].astype(bf16)                     # (N, E) scatter, norm_dst pre-folded
    h0 = h0_ref[...]                                   # (N, Dp) f32
    inv_n = 1.0 / h0.shape[0]

    def gcn_stack(p_attn):
        # fuse aspect embeddings with the selected attention weights
        edge_w = jnp.sum(ew * p_attn[:, :, None], axis=1)                 # (E, Dp) f32
        h = h0
        for l in range(num_layers):                                       # static unroll
            hs = jnp.dot(S_bf, h.astype(bf16), preferred_element_type=f32)       # gather
            msg = hs * edge_w                                                      # edge weighting
            agg = jnp.dot(M_bf, msg.astype(bf16), preferred_element_type=f32)      # scatter
            z = jnp.dot(agg.astype(bf16), W_ref[l].astype(bf16),
                        preferred_element_type=f32) + P[4 + l:5 + l, :]
            # BatchNorm1d (training-mode batch stats, shared bn1); dropout = identity
            mean = jnp.sum(z, axis=0, keepdims=True) * inv_n
            zc = z - mean
            var = jnp.sum(zc * zc, axis=0, keepdims=True) * inv_n
            h = zc * jax.lax.rsqrt(var + 1e-5) * gamma + beta
            if l < num_layers - 1:
                # ELU(alpha=1); clamp exp argument on the discarded branch
                h = jnp.where(h > 0, h, jnp.exp(jnp.minimum(h, 0.0)) - 1.0)
        logits_cls = jnp.dot(h.astype(bf16), W_ref[num_layers].astype(bf16),
                             preferred_element_type=f32) + b_lin
        return h, logits_cls

    h_s, l_s = gcn_stack(p_soft)
    h_h, l_h = gcn_stack(p_hard)
    h_soft_ref[...] = h_s
    logit_soft_ref[...] = l_s
    h_hard_ref[...] = h_h
    logit_hard_ref[...] = l_h


# ---------------------------------------------------------------------------
# One-time, call-invariant preprocessing (hoisted out of the per-call wrapper)
# ---------------------------------------------------------------------------
def preprocess(ew, w_attn, b_attn, S, M, norm_src, norm_dst, h0,
               W_stack, b_stack, gamma, beta, w_lin, b_lin, d_pad=128):
    E, K, D = ew.shape
    L = w_lin.shape[1]
    num_layers = W_stack.shape[0]

    def pad_last(x):
        return jnp.pad(x, [(0, 0)] * (x.ndim - 1) + [(0, d_pad - x.shape[-1])])

    ew_p = pad_last(ew)                                   # (E, K, 128) lane-dense
    h0_p = pad_last(h0)                                   # (N, 128)
    S_n = norm_src * S                                    # (E, N): out-deg^-0.5(src) folded
    M_n = norm_dst * M                                    # (N, E): in-deg^-0.5(dst) folded

    # weight slab: [W1, W2, W3, w_lin, w_attn-as-column-0]
    W_p = jnp.pad(W_stack, ((0, 0), (0, d_pad - D), (0, d_pad - D)))       # (3,128,128)
    w_lin_p = jnp.pad(w_lin, ((0, d_pad - D), (0, d_pad - L)))[None]        # (1,128,128)
    w_attn_mat = jnp.zeros((d_pad, d_pad), jnp.float32).at[:D, 0].set(w_attn[0])
    W_all = jnp.concatenate([W_p, w_lin_p, w_attn_mat[None]], axis=0)       # (5,128,128)

    # small broadcast params packed into one (8,128) slab
    P = jnp.zeros((8, d_pad), jnp.float32)
    P = P.at[1, :D].set(gamma[0])
    P = P.at[2, :D].set(beta[0])
    P = P.at[3, :L].set(b_lin[0])
    P = P.at[4:4 + num_layers, :D].set(b_stack[:, 0, :])
    P = P.at[7, :].set(b_attn[0, 0])
    return ew_p, S_n, M_n, h0_p, W_all, P


# ---------------------------------------------------------------------------
# Jitted per-call wrapper: one pallas_call, outputs sliced under jit
# ---------------------------------------------------------------------------
@functools.partial(jax.jit, static_argnames=("tau", "dim", "num_labels"))
def modeler_nc_forward(ew_p, gumbel, S_n, M_n, h0_p, W_all, P, *,
                       tau, dim, num_labels):
    E, K, Dp = ew_p.shape
    N = h0_p.shape[0]
    num_layers = W_all.shape[0] - 2
    outs = pl.pallas_call(
        functools.partial(fused_forward_kernel, tau=tau,
                          num_layers=num_layers, num_aspects=K),
        out_shape=tuple(jax.ShapeDtypeStruct((N, Dp), jnp.float32) for _ in range(4)),
        in_specs=[VMEM] * 7,
        out_specs=(VMEM,) * 4,
    )(ew_p, gumbel, S_n, M_n, h0_p, W_all, P)
    h_s, l_s, h_h, l_h = outs
    # slices fuse under jit (no eager HBM round-trips)
    return h_s[:, :dim], l_s[:, :num_labels], h_h[:, :dim], l_h[:, :num_labels]


if __name__ == "__main__":
    # --- small, deterministic configuration (args) ---
    N, D, K, L = 16, 32, 4, 8          # num_nodes, dim, num_aspects, num_labels
    E, W_PER_EDGE = 64, 2              # edges, indices stored in g.edata['w'] per edge
    tau_gumbel = 1.0

    key = jax.random.PRNGKey(0)
    keys = jax.random.split(key, 12)

    # --- synthetic graph (DGL g equivalent) ---
    src = jax.random.randint(keys[0], (E,), 0, N)
    dst = jax.random.randint(keys[1], (E,), 0, N)
    edata_w = jax.random.randint(keys[2], (E, W_PER_EDGE), 0, N)   # g.edata['w']

    # --- parameters (matching __init__ shapes / normal(0, 0.1) inits) ---
    aspect_emb = 0.1 * jax.random.normal(keys[3], (K * N, D), jnp.float32)
    center_emb = 0.1 * jax.random.normal(keys[4], (N, D), jnp.float32)
    w_attn = 0.1 * jax.random.normal(keys[5], (1, D), jnp.float32)   # modeler.attn
    b_attn = jnp.zeros((1, 1), jnp.float32)
    W_stack = jnp.stack([0.1 * jax.random.normal(keys[6 + i], (D, D), jnp.float32)
                         for i in range(3)])                         # (3, D, D)
    b_stack = jnp.zeros((3, 1, D), jnp.float32)
    gamma = jnp.ones((1, D), jnp.float32)    # shared bn1
    beta = jnp.zeros((1, D), jnp.float32)
    w_lin = 0.1 * jax.random.normal(keys[9], (D, L), jnp.float32)    # modeler.linear
    b_lin = jnp.zeros((1, L), jnp.float32)
    gumbel_noise = jax.random.gumbel(keys[10], (E, K), jnp.float32)

    # --- glue: edge aspect embeddings  ew[e,k,d] = sum_w aspect_emb[k*N + edata_w[e,w], d]
    asp = aspect_emb.reshape(K, N, D)
    ew = jnp.sum(asp[:, edata_w, :], axis=2)           # (K, E, D)
    ew = jnp.transpose(ew, (1, 0, 2))                  # (E, K, D)

    # --- glue: gather/scatter matrices + degree norms (GraphConv norm='both') ---
    S = jax.nn.one_hot(src, N, dtype=jnp.float32)      # (E, N)
    M = jax.nn.one_hot(dst, N, dtype=jnp.float32).T    # (N, E)
    out_deg = jnp.clip(jnp.sum(S, axis=0), 1.0, None)  # (N,)
    in_deg = jnp.clip(jnp.sum(M, axis=1), 1.0, None)   # (N,)
    norm_src = (out_deg ** -0.5)[src][:, None]         # (E, 1)
    norm_dst = (in_deg ** -0.5)[:, None]               # (N, 1)

    # --------------------- one-time preprocessing + fused forward ---------------------
    ew_p, S_n, M_n, h0_p, W_all, Pslab = preprocess(
        ew, w_attn, b_attn, S, M, norm_src, norm_dst, center_emb,
        W_stack, b_stack, gamma, beta, w_lin, b_lin)

    h_soft, logits_soft, h_hard, logits_hard = modeler_nc_forward(
        ew_p, gumbel_noise, S_n, M_n, h0_p, W_all, Pslab,
        tau=tau_gumbel, dim=D, num_labels=L)
    (h_soft, logits_soft, h_hard, logits_hard) = jax.block_until_ready(
        (h_soft, logits_soft, h_hard, logits_hard))

    # --- pure-JAX reference (same mixed precision: bf16 MXU operands, f32 accum,
    #     f32 elementwise) so the comparison isolates kernel / plumbing bugs ---
    bf16 = jnp.bfloat16

    def bdot(a, b):
        return jnp.dot(a.astype(bf16), b.astype(bf16),
                       preferred_element_type=jnp.float32)

    def ref_forward(hard):
        lg = jnp.sum(ew * w_attn[None, :, :], axis=-1) + b_attn[0, 0]
        y = (lg + gumbel_noise) / tau_gumbel
        if hard:
            p = jax.nn.one_hot(jnp.argmax(y, axis=-1), K, dtype=jnp.float32)
        else:
            p = jax.nn.softmax(y, axis=-1)
        ewgt = jnp.sum(ew * p[:, :, None], axis=1)

        def gconv(hh, Wm, bb):
            msg = bdot(S_n, hh) * ewgt
            agg = bdot(M_n, msg)
            return bdot(agg, Wm) + bb

        def bn(x, elu):
            m = jnp.mean(x, 0, keepdims=True)
            v = jnp.mean((x - m) ** 2, 0, keepdims=True)
            yy = (x - m) * jax.lax.rsqrt(v + 1e-5) * gamma + beta
            return jnp.where(yy > 0, yy, jnp.exp(jnp.minimum(yy, 0.0)) - 1.0) if elu else yy

        hh = bn(gconv(center_emb, W_stack[0], b_stack[0]), True)
        hh = bn(gconv(hh, W_stack[1], b_stack[1]), True)
        hh = bn(gconv(hh, W_stack[2], b_stack[2]), False)
        return hh, bdot(hh, w_lin) + b_lin

    for (h, lo, hard) in ((h_soft, logits_soft, False), (h_hard, logits_hard, True)):
        h_ref, logits_ref = ref_forward(hard)
        assert h.shape == (N, D) and lo.shape == (N, L)
        assert jnp.allclose(h, h_ref, rtol=1e-2, atol=1e-2)
        assert jnp.allclose(lo, logits_ref, rtol=1e-2, atol=1e-2)

    print("KERNEL_OK")
</pallas_src>

<mosaic_0001>
module attributes {stable_mosaic.version = 11 : i64} {
  func.func @fused_forward_kernel(%arg0: memref<64x4x128xf32, #tpu.memory_space<vmem>>, %arg1: memref<64x4xf32, #tpu.memory_space<vmem>>, %arg2: memref<64x16xf32, #tpu.memory_space<vmem>>, %arg3: memref<16x64xf32, #tpu.memory_space<vmem>>, %arg4: memref<16x128xf32, #tpu.memory_space<vmem>>, %arg5: memref<5x128x128xf32, #tpu.memory_space<vmem>>, %arg6: memref<8x128xf32, #tpu.memory_space<vmem>>, %arg7: memref<16x128xf32, #tpu.memory_space<vmem>>, %arg8: memref<16x128xf32, #tpu.memory_space<vmem>>, %arg9: memref<16x128xf32, #tpu.memory_space<vmem>>, %arg10: memref<16x128xf32, #tpu.memory_space<vmem>>) attributes {dimension_semantics = [], scalar_prefetch = 0 : i64, scratch_operands = 0 : i64, tpu.core_type = #tpu.core_type<tc>} {
    %c0 = arith.constant 0 : index
    %c0_0 = arith.constant 0 : index
    %0 = vector.load %arg6[%c0, %c0_0] : memref<8x128xf32, #tpu.memory_space<vmem>>, vector<8x128xf32>
    %1 = vector.extract_strided_slice %0 {offsets = [1, 0], sizes = [1, 128], strides = [1, 1]} : vector<8x128xf32> to vector<1x128xf32>
    %2 = vector.extract_strided_slice %0 {offsets = [2, 0], sizes = [1, 128], strides = [1, 1]} : vector<8x128xf32> to vector<1x128xf32>
    %3 = vector.extract_strided_slice %0 {offsets = [3, 0], sizes = [1, 128], strides = [1, 1]} : vector<8x128xf32> to vector<1x128xf32>
    %4 = vector.extract_strided_slice %0 {offsets = [7, 0], sizes = [1, 1], strides = [1, 1]} : vector<8x128xf32> to vector<1x1xf32>
    %c0_1 = arith.constant 0 : index
    %c0_2 = arith.constant 0 : index
    %c0_3 = arith.constant 0 : index
    %5 = vector.load %arg0[%c0_1, %c0_2, %c0_3] : memref<64x4x128xf32, #tpu.memory_space<vmem>>, vector<64x4x128xf32>
    %c4 = arith.constant 4 : index
    %c0_4 = arith.constant 0 : index
    %c0_5 = arith.constant 0 : index
    %6 = vector.load %arg5[%c4, %c0_4, %c0_5] : memref<5x128x128xf32, #tpu.memory_space<vmem>>, vector<1x128x128xf32>
    %7 = vector.shape_cast %6 : vector<1x128x128xf32> to vector<128x128xf32>
    %8 = vector.extract_strided_slice %7 {offsets = [0, 0], sizes = [128, 1], strides = [1, 1]} : vector<128x128xf32> to vector<128x1xf32>
    %9 = vector.extract_strided_slice %5 {offsets = [0, 0, 0], sizes = [64, 1, 128], strides = [1, 1, 1]} : vector<64x4x128xf32> to vector<64x1x128xf32>
    %10 = vector.shape_cast %9 : vector<64x1x128xf32> to vector<64x128xf32>
    %cst = arith.constant dense<0.000000e+00> : vector<64x1xf32>
    %11 = tpu.matmul %10, %8, %cst {dimension_numbers = #tpu.dot_dimension_numbers<[1], [0], [0], [1], [0, 0, 1, 1], [], []>} : vector<64x128xf32>, vector<128x1xf32>, vector<64x1xf32> -> vector<64x1xf32>
    %12 = vector.extract_strided_slice %5 {offsets = [0, 1, 0], sizes = [64, 1, 128], strides = [1, 1, 1]} : vector<64x4x128xf32> to vector<64x1x128xf32>
    %13 = vector.shape_cast %12 : vector<64x1x128xf32> to vector<64x128xf32>
    %cst_6 = arith.constant dense<0.000000e+00> : vector<64x1xf32>
    %14 = tpu.matmul %13, %8, %cst_6 {dimension_numbers = #tpu.dot_dimension_numbers<[1], [0], [0], [1], [0, 0, 1, 1], [], []>} : vector<64x128xf32>, vector<128x1xf32>, vector<64x1xf32> -> vector<64x1xf32>
    %15 = vector.extract_strided_slice %5 {offsets = [0, 2, 0], sizes = [64, 1, 128], strides = [1, 1, 1]} : vector<64x4x128xf32> to vector<64x1x128xf32>
    %16 = vector.shape_cast %15 : vector<64x1x128xf32> to vector<64x128xf32>
    %cst_7 = arith.constant dense<0.000000e+00> : vector<64x1xf32>
    %17 = tpu.matmul %16, %8, %cst_7 {dimension_numbers = #tpu.dot_dimension_numbers<[1], [0], [0], [1], [0, 0, 1, 1], [], []>} : vector<64x128xf32>, vector<128x1xf32>, vector<64x1xf32> -> vector<64x1xf32>
    %18 = vector.extract_strided_slice %5 {offsets = [0, 3, 0], sizes = [64, 1, 128], strides = [1, 1, 1]} : vector<64x4x128xf32> to vector<64x1x128xf32>
    %19 = vector.shape_cast %18 : vector<64x1x128xf32> to vector<64x128xf32>
    %cst_8 = arith.constant dense<0.000000e+00> : vector<64x1xf32>
    %20 = tpu.matmul %19, %8, %cst_8 {dimension_numbers = #tpu.dot_dimension_numbers<[1], [0], [0], [1], [0, 0, 1, 1], [], []>} : vector<64x128xf32>, vector<128x1xf32>, vector<64x1xf32> -> vector<64x1xf32>
    %21 = tpu.concatenate %11, %14, %17, %20 in 1 : vector<64x1xf32>, vector<64x1xf32>, vector<64x1xf32>, vector<64x1xf32> -> vector<64x4xf32>
    %22 = vector.broadcast %4 : vector<1x1xf32> to vector<64x4xf32>
    %23 = arith.addf %21, %22 : vector<64x4xf32>
    %c0_9 = arith.constant 0 : index
    %c0_10 = arith.constant 0 : index
    %24 = vector.load %arg1[%c0_9, %c0_10] : memref<64x4xf32, #tpu.memory_space<vmem>>, vector<64x4xf32>
    %25 = arith.addf %23, %24 : vector<64x4xf32>
    %cst_11 = arith.constant 1.000000e+00 : f32
    %26 = vector.broadcast %cst_11 : f32 to vector<64x4xf32>
    %27 = arith.divf %25, %26 : vector<64x4xf32>
    %cst_12 = arith.constant dense<0xFF800000> : vector<64xf32>
    %28 = vector.multi_reduction <maximumf>, %27, %cst_12 [1] : vector<64x4xf32> to vector<64xf32>
    %29 = vector.shape_cast %28 : vector<64xf32> to vector<64x1xf32>
    %30 = vector.broadcast %29 : vector<64x1xf32> to vector<64x4xf32>
    %31 = arith.subf %27, %30 : vector<64x4xf32>
    %32 = math.exp %31 : vector<64x4xf32>
    %cst_13 = arith.constant dense<0.000000e+00> : vector<64xf32>
    %33 = vector.multi_reduction <add>, %32, %cst_13 [1] : vector<64x4xf32> to vector<64xf32>
    %34 = vector.shape_cast %33 : vector<64xf32> to vector<64x1xf32>
    %35 = vector.broadcast %34 : vector<64x1xf32> to vector<64x4xf32>
    %36 = arith.divf %32, %35 : vector<64x4xf32>
    %37 = tpu.iota {dimensions = array<i32: 1>} : vector<64x4xi32>
    %38 = arith.sitofp %37 : vector<64x4xi32> to vector<64x4xf32>
    %39 = vector.broadcast %29 : vector<64x1xf32> to vector<64x4xf32>
    %40 = arith.cmpf oge, %27, %39 : vector<64x4xf32>
    %cst_14 = arith.constant 4.000000e+00 : f32
    %41 = vector.broadcast %cst_14 : f32 to vector<64x4xf32>
    %42 = arith.select %40, %38, %41 : vector<64x4xi1>, vector<64x4xf32>
    %cst_15 = arith.constant dense<0x7F800000> : vector<64xf32>
    %43 = vector.multi_reduction <minimumf>, %42, %cst_15 [1] : vector<64x4xf32> to vector<64xf32>
    %44 = vector.shape_cast %43 : vector<64xf32> to vector<64x1xf32>
    %45 = vector.broadcast %44 : vector<64x1xf32> to vector<64x4xf32>
    %46 = arith.cmpf oeq, %38, %45 : vector<64x4xf32>
    %47 = arith.extui %46 : vector<64x4xi1> to vector<64x4xi32>
    %48 = arith.sitofp %47 : vector<64x4xi32> to vector<64x4xf32>
    %c0_16 = arith.constant 0 : index
    %c0_17 = arith.constant 0 : index
    %49 = vector.load %arg2[%c0_16, %c0_17] : memref<64x16xf32, #tpu.memory_space<vmem>>, vector<64x16xf32>
    %50 = arith.truncf %49 : vector<64x16xf32> to vector<64x16xbf16>
    %c0_18 = arith.constant 0 : index
    %c0_19 = arith.constant 0 : index
    %51 = vector.load %arg3[%c0_18, %c0_19] : memref<16x64xf32, #tpu.memory_space<vmem>>, vector<16x64xf32>
    %52 = arith.truncf %51 : vector<16x64xf32> to vector<16x64xbf16>
    %c0_20 = arith.constant 0 : index
    %c0_21 = arith.constant 0 : index
    %53 = vector.load %arg4[%c0_20, %c0_21] : memref<16x128xf32, #tpu.memory_space<vmem>>, vector<16x128xf32>
    %54 = vector.shape_cast %36 : vector<64x4xf32> to vector<64x4x1xf32>
    %55 = vector.broadcast %54 : vector<64x4x1xf32> to vector<64x4x128xf32>
    %56 = arith.mulf %5, %55 : vector<64x4x128xf32>
    %cst_22 = arith.constant dense<0.000000e+00> : vector<64x128xf32>
    %57 = vector.multi_reduction <add>, %56, %cst_22 [1] : vector<64x4x128xf32> to vector<64x128xf32>
    %58 = arith.truncf %53 : vector<16x128xf32> to vector<16x128xbf16>
    %cst_23 = arith.constant dense<0.000000e+00> : vector<64x128xf32>
    %59 = tpu.matmul %50, %58, %cst_23 {dimension_numbers = #tpu.dot_dimension_numbers<[1], [0], [0], [1], [0, 0, 1, 1], [], []>} : vector<64x16xbf16>, vector<16x128xbf16>, vector<64x128xf32> -> vector<64x128xf32>
    %60 = arith.mulf %59, %57 : vector<64x128xf32>
    %61 = arith.truncf %60 : vector<64x128xf32> to vector<64x128xbf16>
    %cst_24 = arith.constant dense<0.000000e+00> : vector<16x128xf32>
    %62 = tpu.matmul %52, %61, %cst_24 {dimension_numbers = #tpu.dot_dimension_numbers<[1], [0], [0], [1], [0, 0, 1, 1], [], []>} : vector<16x64xbf16>, vector<64x128xbf16>, vector<16x128xf32> -> vector<16x128xf32>
    %63 = arith.truncf %62 : vector<16x128xf32> to vector<16x128xbf16>
    %c0_25 = arith.constant 0 : index
    %c0_26 = arith.constant 0 : index
    %c0_27 = arith.constant 0 : index
    %64 = vector.load %arg5[%c0_25, %c0_26, %c0_27] : memref<5x128x128xf32, #tpu.memory_space<vmem>>, vector<1x128x128xf32>
    %65 = vector.shape_cast %64 : vector<1x128x128xf32> to vector<128x128xf32>
    %66 = arith.truncf %65 : vector<128x128xf32> to vector<128x128xbf16>
    %cst_28 = arith.constant dense<0.000000e+00> : vector<16x128xf32>
    %67 = tpu.matmul %63, %66, %cst_28 {dimension_numbers = #tpu.dot_dimension_numbers<[1], [0], [0], [1], [0, 0, 1, 1], [], []>} : vector<16x128xbf16>, vector<128x128xbf16>, vector<16x128xf32> -> vector<16x128xf32>
    %68 = vector.extract_strided_slice %0 {offsets = [4, 0], sizes = [1, 128], strides = [1, 1]} : vector<8x128xf32> to vector<1x128xf32>
    %69 = vector.broadcast %68 : vector<1x128xf32> to vector<16x128xf32>
    %70 = arith.addf %67, %69 : vector<16x128xf32>
    %cst_29 = arith.constant dense<0.000000e+00> : vector<128xf32>
    %71 = vector.multi_reduction <add>, %70, %cst_29 [0] : vector<16x128xf32> to vector<128xf32>
    %72 = vector.shape_cast %71 : vector<128xf32> to vector<1x128xf32>
    %cst_30 = arith.constant 6.250000e-02 : f32
    %73 = vector.broadcast %cst_30 : f32 to vector<1x128xf32>
    %74 = arith.mulf %72, %73 : vector<1x128xf32>
    %75 = vector.broadcast %74 : vector<1x128xf32> to vector<16x128xf32>
    %76 = arith.subf %70, %75 : vector<16x128xf32>
    %77 = arith.mulf %76, %76 : vector<16x128xf32>
    %cst_31 = arith.constant dense<0.000000e+00> : vector<128xf32>
    %78 = vector.multi_reduction <add>, %77, %cst_31 [0] : vector<16x128xf32> to vector<128xf32>
    %79 = vector.shape_cast %78 : vector<128xf32> to vector<1x128xf32>
    %cst_32 = arith.constant 6.250000e-02 : f32
    %80 = vector.broadcast %cst_32 : f32 to vector<1x128xf32>
    %81 = arith.mulf %79, %80 : vector<1x128xf32>
    %cst_33 = arith.constant 9.99999974E-6 : f32
    %82 = vector.broadcast %cst_33 : f32 to vector<1x128xf32>
    %83 = arith.addf %81, %82 : vector<1x128xf32>
    %84 = math.rsqrt %83 : vector<1x128xf32>
    %85 = vector.broadcast %84 : vector<1x128xf32> to vector<16x128xf32>
    %86 = arith.mulf %76, %85 : vector<16x128xf32>
    %87 = vector.broadcast %1 : vector<1x128xf32> to vector<16x128xf32>
    %88 = arith.mulf %86, %87 : vector<16x128xf32>
    %89 = vector.broadcast %2 : vector<1x128xf32> to vector<16x128xf32>
    %90 = arith.addf %88, %89 : vector<16x128xf32>
    %cst_34 = arith.constant 0.000000e+00 : f32
    %91 = vector.broadcast %cst_34 : f32 to vector<16x128xf32>
    %92 = arith.cmpf ogt, %90, %91 : vector<16x128xf32>
    %cst_35 = arith.constant 0.000000e+00 : f32
    %93 = vector.broadcast %cst_35 : f32 to vector<16x128xf32>
    %94 = arith.minimumf %90, %93 : vector<16x128xf32>
    %95 = math.exp %94 : vector<16x128xf32>
    %cst_36 = arith.constant 1.000000e+00 : f32
    %96 = vector.broadcast %cst_36 : f32 to vector<16x128xf32>
    %97 = arith.subf %95, %96 : vector<16x128xf32>
    %98 = arith.select %92, %90, %97 : vector<16x128xi1>, vector<16x128xf32>
    %99 = arith.truncf %98 : vector<16x128xf32> to vector<16x128xbf16>
    %cst_37 = arith.constant dense<0.000000e+00> : vector<64x128xf32>
    %100 = tpu.matmul %50, %99, %cst_37 {dimension_numbers = #tpu.dot_dimension_numbers<[1], [0], [0], [1], [0, 0, 1, 1], [], []>} : vector<64x16xbf16>, vector<16x128xbf16>, vector<64x128xf32> -> vector<64x128xf32>
    %101 = arith.mulf %100, %57 : vector<64x128xf32>
    %102 = arith.truncf %101 : vector<64x128xf32> to vector<64x128xbf16>
    %cst_38 = arith.constant dense<0.000000e+00> : vector<16x128xf32>
    %103 = tpu.matmul %52, %102, %cst_38 {dimension_numbers = #tpu.dot_dimension_numbers<[1], [0], [0], [1], [0, 0, 1, 1], [], []>} : vector<16x64xbf16>, vector<64x128xbf16>, vector<16x128xf32> -> vector<16x128xf32>
    %104 = arith.truncf %103 : vector<16x128xf32> to vector<16x128xbf16>
    %c1 = arith.constant 1 : index
    %c0_39 = arith.constant 0 : index
    %c0_40 = arith.constant 0 : index
    %105 = vector.load %arg5[%c1, %c0_39, %c0_40] : memref<5x128x128xf32, #tpu.memory_space<vmem>>, vector<1x128x128xf32>
    %106 = vector.shape_cast %105 : vector<1x128x128xf32> to vector<128x128xf32>
    %107 = arith.truncf %106 : vector<128x128xf32> to vector<128x128xbf16>
    %cst_41 = arith.constant dense<0.000000e+00> : vector<16x128xf32>
    %108 = tpu.matmul %104, %107, %cst_41 {dimension_numbers = #tpu.dot_dimension_numbers<[1], [0], [0], [1], [0, 0, 1, 1], [], []>} : vector<16x128xbf16>, vector<128x128xbf16>, vector<16x128xf32> -> vector<16x128xf32>
    %109 = vector.extract_strided_slice %0 {offsets = [5, 0], sizes = [1, 128], strides = [1, 1]} : vector<8x128xf32> to vector<1x128xf32>
    %110 = vector.broadcast %109 : vector<1x128xf32> to vector<16x128xf32>
    %111 = arith.addf %108, %110 : vector<16x128xf32>
    %cst_42 = arith.constant dense<0.000000e+00> : vector<128xf32>
    %112 = vector.multi_reduction <add>, %111, %cst_42 [0] : vector<16x128xf32> to vector<128xf32>
    %113 = vector.shape_cast %112 : vector<128xf32> to vector<1x128xf32>
    %cst_43 = arith.constant 6.250000e-02 : f32
    %114 = vector.broadcast %cst_43 : f32 to vector<1x128xf32>
    %115 = arith.mulf %113, %114 : vector<1x128xf32>
    %116 = vector.broadcast %115 : vector<1x128xf32> to vector<16x128xf32>
    %117 = arith.subf %111, %116 : vector<16x128xf32>
    %118 = arith.mulf %117, %117 : vector<16x128xf32>
    %cst_44 = arith.constant dense<0.000000e+00> : vector<128xf32>
    %119 = vector.multi_reduction <add>, %118, %cst_44 [0] : vector<16x128xf32> to vector<128xf32>
    %120 = vector.shape_cast %119 : vector<128xf32> to vector<1x128xf32>
    %cst_45 = arith.constant 6.250000e-02 : f32
    %121 = vector.broadcast %cst_45 : f32 to vector<1x128xf32>
    %122 = arith.mulf %120, %121 : vector<1x128xf32>
    %cst_46 = arith.constant 9.99999974E-6 : f32
    %123 = vector.broadcast %cst_46 : f32 to vector<1x128xf32>
    %124 = arith.addf %122, %123 : vector<1x128xf32>
    %125 = math.rsqrt %124 : vector<1x128xf32>
    %126 = vector.broadcast %125 : vector<1x128xf32> to vector<16x128xf32>
    %127 = arith.mulf %117, %126 : vector<16x128xf32>
    %128 = vector.broadcast %1 : vector<1x128xf32> to vector<16x128xf32>
    %129 = arith.mulf %127, %128 : vector<16x128xf32>
    %130 = vector.broadcast %2 : vector<1x128xf32> to vector<16x128xf32>
    %131 = arith.addf %129, %130 : vector<16x128xf32>
    %cst_47 = arith.constant 0.000000e+00 : f32
    %132 = vector.broadcast %cst_47 : f32 to vector<16x128xf32>
    %133 = arith.cmpf ogt, %131, %132 : vector<16x128xf32>
    %cst_48 = arith.constant 0.000000e+00 : f32
    %134 = vector.broadcast %cst_48 : f32 to vector<16x128xf32>
    %135 = arith.minimumf %131, %134 : vector<16x128xf32>
    %136 = math.exp %135 : vector<16x128xf32>
    %cst_49 = arith.constant 1.000000e+00 : f32
    %137 = vector.broadcast %cst_49 : f32 to vector<16x128xf32>
    %138 = arith.subf %136, %137 : vector<16x128xf32>
    %139 = arith.select %133, %131, %138 : vector<16x128xi1>, vector<16x128xf32>
    %140 = arith.truncf %139 : vector<16x128xf32> to vector<16x128xbf16>
    %cst_50 = arith.constant dense<0.000000e+00> : vector<64x128xf32>
    %141 = tpu.matmul %50, %140, %cst_50 {dimension_numbers = #tpu.dot_dimension_numbers<[1], [0], [0], [1], [0, 0, 1, 1], [], []>} : vector<64x16xbf16>, vector<16x128xbf16>, vector<64x128xf32> -> vector<64x128xf32>
    %142 = arith.mulf %141, %57 : vector<64x128xf32>
    %143 = arith.truncf %142 : vector<64x128xf32> to vector<64x128xbf16>
    %cst_51 = arith.constant dense<0.000000e+00> : vector<16x128xf32>
    %144 = tpu.matmul %52, %143, %cst_51 {dimension_numbers = #tpu.dot_dimension_numbers<[1], [0], [0], [1], [0, 0, 1, 1], [], []>} : vector<16x64xbf16>, vector<64x128xbf16>, vector<16x128xf32> -> vector<16x128xf32>
    %145 = arith.truncf %144 : vector<16x128xf32> to vector<16x128xbf16>
    %c2 = arith.constant 2 : index
    %c0_52 = arith.constant 0 : index
    %c0_53 = arith.constant 0 : index
    %146 = vector.load %arg5[%c2, %c0_52, %c0_53] : memref<5x128x128xf32, #tpu.memory_space<vmem>>, vector<1x128x128xf32>
    %147 = vector.shape_cast %146 : vector<1x128x128xf32> to vector<128x128xf32>
    %148 = arith.truncf %147 : vector<128x128xf32> to vector<128x128xbf16>
    %cst_54 = arith.constant dense<0.000000e+00> : vector<16x128xf32>
    %149 = tpu.matmul %145, %148, %cst_54 {dimension_numbers = #tpu.dot_dimension_numbers<[1], [0], [0], [1], [0, 0, 1, 1], [], []>} : vector<16x128xbf16>, vector<128x128xbf16>, vector<16x128xf32> -> vector<16x128xf32>
    %150 = vector.extract_strided_slice %0 {offsets = [6, 0], sizes = [1, 128], strides = [1, 1]} : vector<8x128xf32> to vector<1x128xf32>
    %151 = vector.broadcast %150 : vector<1x128xf32> to vector<16x128xf32>
    %152 = arith.addf %149, %151 : vector<16x128xf32>
    %cst_55 = arith.constant dense<0.000000e+00> : vector<128xf32>
    %153 = vector.multi_reduction <add>, %152, %cst_55 [0] : vector<16x128xf32> to vector<128xf32>
    %154 = vector.shape_cast %153 : vector<128xf32> to vector<1x128xf32>
    %cst_56 = arith.constant 6.250000e-02 : f32
    %155 = vector.broadcast %cst_56 : f32 to vector<1x128xf32>
    %156 = arith.mulf %154, %155 : vector<1x128xf32>
    %157 = vector.broadcast %156 : vector<1x128xf32> to vector<16x128xf32>
    %158 = arith.subf %152, %157 : vector<16x128xf32>
    %159 = arith.mulf %158, %158 : vector<16x128xf32>
    %cst_57 = arith.constant dense<0.000000e+00> : vector<128xf32>
    %160 = vector.multi_reduction <add>, %159, %cst_57 [0] : vector<16x128xf32> to vector<128xf32>
    %161 = vector.shape_cast %160 : vector<128xf32> to vector<1x128xf32>
    %cst_58 = arith.constant 6.250000e-02 : f32
    %162 = vector.broadcast %cst_58 : f32 to vector<1x128xf32>
    %163 = arith.mulf %161, %162 : vector<1x128xf32>
    %cst_59 = arith.constant 9.99999974E-6 : f32
    %164 = vector.broadcast %cst_59 : f32 to vector<1x128xf32>
    %165 = arith.addf %163, %164 : vector<1x128xf32>
    %166 = math.rsqrt %165 : vector<1x128xf32>
    %167 = vector.broadcast %166 : vector<1x128xf32> to vector<16x128xf32>
    %168 = arith.mulf %158, %167 : vector<16x128xf32>
    %169 = vector.broadcast %1 : vector<1x128xf32> to vector<16x128xf32>
    %170 = arith.mulf %168, %169 : vector<16x128xf32>
    %171 = vector.broadcast %2 : vector<1x128xf32> to vector<16x128xf32>
    %172 = arith.addf %170, %171 : vector<16x128xf32>
    %173 = arith.truncf %172 : vector<16x128xf32> to vector<16x128xbf16>
    %c3 = arith.constant 3 : index
    %c0_60 = arith.constant 0 : index
    %c0_61 = arith.constant 0 : index
    %174 = vector.load %arg5[%c3, %c0_60, %c0_61] : memref<5x128x128xf32, #tpu.memory_space<vmem>>, vector<1x128x128xf32>
    %175 = vector.shape_cast %174 : vector<1x128x128xf32> to vector<128x128xf32>
    %176 = arith.truncf %175 : vector<128x128xf32> to vector<128x128xbf16>
    %cst_62 = arith.constant dense<0.000000e+00> : vector<16x128xf32>
    %177 = tpu.matmul %173, %176, %cst_62 {dimension_numbers = #tpu.dot_dimension_numbers<[1], [0], [0], [1], [0, 0, 1, 1], [], []>} : vector<16x128xbf16>, vector<128x128xbf16>, vector<16x128xf32> -> vector<16x128xf32>
    %178 = vector.broadcast %3 : vector<1x128xf32> to vector<16x128xf32>
    %179 = arith.addf %177, %178 : vector<16x128xf32>
    %180 = vector.shape_cast %48 : vector<64x4xf32> to vector<64x4x1xf32>
    %181 = vector.broadcast %180 : vector<64x4x1xf32> to vector<64x4x128xf32>
    %182 = arith.mulf %5, %181 : vector<64x4x128xf32>
    %cst_63 = arith.constant dense<0.000000e+00> : vector<64x128xf32>
    %183 = vector.multi_reduction <add>, %182, %cst_63 [1] : vector<64x4x128xf32> to vector<64x128xf32>
    %184 = arith.truncf %53 : vector<16x128xf32> to vector<16x128xbf16>
    %cst_64 = arith.constant dense<0.000000e+00> : vector<64x128xf32>
    %185 = tpu.matmul %50, %184, %cst_64 {dimension_numbers = #tpu.dot_dimension_numbers<[1], [0], [0], [1], [0, 0, 1, 1], [], []>} : vector<64x16xbf16>, vector<16x128xbf16>, vector<64x128xf32> -> vector<64x128xf32>
    %186 = arith.mulf %185, %183 : vector<64x128xf32>
    %187 = arith.truncf %186 : vector<64x128xf32> to vector<64x128xbf16>
    %cst_65 = arith.constant dense<0.000000e+00> : vector<16x128xf32>
    %188 = tpu.matmul %52, %187, %cst_65 {dimension_numbers = #tpu.dot_dimension_numbers<[1], [0], [0], [1], [0, 0, 1, 1], [], []>} : vector<16x64xbf16>, vector<64x128xbf16>, vector<16x128xf32> -> vector<16x128xf32>
    %189 = arith.truncf %188 : vector<16x128xf32> to vector<16x128xbf16>
    %c0_66 = arith.constant 0 : index
    %c0_67 = arith.constant 0 : index
    %c0_68 = arith.constant 0 : index
    %190 = vector.load %arg5[%c0_66, %c0_67, %c0_68] : memref<5x128x128xf32, #tpu.memory_space<vmem>>, vector<1x128x128xf32>
    %191 = vector.shape_cast %190 : vector<1x128x128xf32> to vector<128x128xf32>
    %192 = arith.truncf %191 : vector<128x128xf32> to vector<128x128xbf16>
    %cst_69 = arith.constant dense<0.000000e+00> : vector<16x128xf32>
    %193 = tpu.matmul %189, %192, %cst_69 {dimension_numbers = #tpu.dot_dimension_numbers<[1], [0], [0], [1], [0, 0, 1, 1], [], []>} : vector<16x128xbf16>, vector<128x128xbf16>, vector<16x128xf32> -> vector<16x128xf32>
    %194 = vector.extract_strided_slice %0 {offsets = [4, 0], sizes = [1, 128], strides = [1, 1]} : vector<8x128xf32> to vector<1x128xf32>
    %195 = vector.broadcast %194 : vector<1x128xf32> to vector<16x128xf32>
    %196 = arith.addf %193, %195 : vector<16x128xf32>
    %cst_70 = arith.constant dense<0.000000e+00> : vector<128xf32>
    %197 = vector.multi_reduction <add>, %196, %cst_70 [0] : vector<16x128xf32> to vector<128xf32>
    %198 = vector.shape_cast %197 : vector<128xf32> to vector<1x128xf32>
    %cst_71 = arith.constant 6.250000e-02 : f32
    %199 = vector.broadcast %cst_71 : f32 to vector<1x128xf32>
    %200 = arith.mulf %198, %199 : vector<1x128xf32>
    %201 = vector.broadcast %200 : vector<1x128xf32> to vector<16x128xf32>
    %202 = arith.subf %196, %201 : vector<16x128xf32>
    %203 = arith.mulf %202, %202 : vector<16x128xf32>
    %cst_72 = arith.constant dense<0.000000e+00> : vector<128xf32>
    %204 = vector.multi_reduction <add>, %203, %cst_72 [0] : vector<16x128xf32> to vector<128xf32>
    %205 = vector.shape_cast %204 : vector<128xf32> to vector<1x128xf32>
    %cst_73 = arith.constant 6.250000e-02 : f32
    %206 = vector.broadcast %cst_73 : f32 to vector<1x128xf32>
    %207 = arith.mulf %205, %206 : vector<1x128xf32>
    %cst_74 = arith.constant 9.99999974E-6 : f32
    %208 = vector.broadcast %cst_74 : f32 to vector<1x128xf32>
    %209 = arith.addf %207, %208 : vector<1x128xf32>
    %210 = math.rsqrt %209 : vector<1x128xf32>
    %211 = vector.broadcast %210 : vector<1x128xf32> to vector<16x128xf32>
    %212 = arith.mulf %202, %211 : vector<16x128xf32>
    %213 = vector.broadcast %1 : vector<1x128xf32> to vector<16x128xf32>
    %214 = arith.mulf %212, %213 : vector<16x128xf32>
    %215 = vector.broadcast %2 : vector<1x128xf32> to vector<16x128xf32>
    %216 = arith.addf %214, %215 : vector<16x128xf32>
    %cst_75 = arith.constant 0.000000e+00 : f32
    %217 = vector.broadcast %cst_75 : f32 to vector<16x128xf32>
    %218 = arith.cmpf ogt, %216, %217 : vector<16x128xf32>
    %cst_76 = arith.constant 0.000000e+00 : f32
    %219 = vector.broadcast %cst_76 : f32 to vector<16x128xf32>
    %220 = arith.minimumf %216, %219 : vector<16x128xf32>
    %221 = math.exp %220 : vector<16x128xf32>
    %cst_77 = arith.constant 1.000000e+00 : f32
    %222 = vector.broadcast %cst_77 : f32 to vector<16x128xf32>
    %223 = arith.subf %221, %222 : vector<16x128xf32>
    %224 = arith.select %218, %216, %223 : vector<16x128xi1>, vector<16x128xf32>
    %225 = arith.truncf %224 : vector<16x128xf32> to vector<16x128xbf16>
    %cst_78 = arith.constant dense<0.000000e+00> : vector<64x128xf32>
    %226 = tpu.matmul %50, %225, %cst_78 {dimension_numbers = #tpu.dot_dimension_numbers<[1], [0], [0], [1], [0, 0, 1, 1], [], []>} : vector<64x16xbf16>, vector<16x128xbf16>, vector<64x128xf32> -> vector<64x128xf32>
    %227 = arith.mulf %226, %183 : vector<64x128xf32>
    %228 = arith.truncf %227 : vector<64x128xf32> to vector<64x128xbf16>
    %cst_79 = arith.constant dense<0.000000e+00> : vector<16x128xf32>
    %229 = tpu.matmul %52, %228, %cst_79 {dimension_numbers = #tpu.dot_dimension_numbers<[1], [0], [0], [1], [0, 0, 1, 1], [], []>} : vector<16x64xbf16>, vector<64x128xbf16>, vector<16x128xf32> -> vector<16x128xf32>
    %230 = arith.truncf %229 : vector<16x128xf32> to vector<16x128xbf16>
    %c1_80 = arith.constant 1 : index
    %c0_81 = arith.constant 0 : index
    %c0_82 = arith.constant 0 : index
    %231 = vector.load %arg5[%c1_80, %c0_81, %c0_82] : memref<5x128x128xf32, #tpu.memory_space<vmem>>, vector<1x128x128xf32>
    %232 = vector.shape_cast %231 : vector<1x128x128xf32> to vector<128x128xf32>
    %233 = arith.truncf %232 : vector<128x128xf32> to vector<128x128xbf16>
    %cst_83 = arith.constant dense<0.000000e+00> : vector<16x128xf32>
    %234 = tpu.matmul %230, %233, %cst_83 {dimension_numbers = #tpu.dot_dimension_numbers<[1], [0], [0], [1], [0, 0, 1, 1], [], []>} : vector<16x128xbf16>, vector<128x128xbf16>, vector<16x128xf32> -> vector<16x128xf32>
    %235 = vector.extract_strided_slice %0 {offsets = [5, 0], sizes = [1, 128], strides = [1, 1]} : vector<8x128xf32> to vector<1x128xf32>
    %236 = vector.broadcast %235 : vector<1x128xf32> to vector<16x128xf32>
    %237 = arith.addf %234, %236 : vector<16x128xf32>
    %cst_84 = arith.constant dense<0.000000e+00> : vector<128xf32>
    %238 = vector.multi_reduction <add>, %237, %cst_84 [0] : vector<16x128xf32> to vector<128xf32>
    %239 = vector.shape_cast %238 : vector<128xf32> to vector<1x128xf32>
    %cst_85 = arith.constant 6.250000e-02 : f32
    %240 = vector.broadcast %cst_85 : f32 to vector<1x128xf32>
    %241 = arith.mulf %239, %240 : vector<1x128xf32>
    %242 = vector.broadcast %241 : vector<1x128xf32> to vector<16x128xf32>
    %243 = arith.subf %237, %242 : vector<16x128xf32>
    %244 = arith.mulf %243, %243 : vector<16x128xf32>
    %cst_86 = arith.constant dense<0.000000e+00> : vector<128xf32>
    %245 = vector.multi_reduction <add>, %244, %cst_86 [0] : vector<16x128xf32> to vector<128xf32>
    %246 = vector.shape_cast %245 : vector<128xf32> to vector<1x128xf32>
    %cst_87 = arith.constant 6.250000e-02 : f32
    %247 = vector.broadcast %cst_87 : f32 to vector<1x128xf32>
    %248 = arith.mulf %246, %247 : vector<1x128xf32>
    %cst_88 = arith.constant 9.99999974E-6 : f32
    %249 = vector.broadcast %cst_88 : f32 to vector<1x128xf32>
    %250 = arith.addf %248, %249 : vector<1x128xf32>
    %251 = math.rsqrt %250 : vector<1x128xf32>
    %252 = vector.broadcast %251 : vector<1x128xf32> to vector<16x128xf32>
    %253 = arith.mulf %243, %252 : vector<16x128xf32>
    %254 = vector.broadcast %1 : vector<1x128xf32> to vector<16x128xf32>
    %255 = arith.mulf %253, %254 : vector<16x128xf32>
    %256 = vector.broadcast %2 : vector<1x128xf32> to vector<16x128xf32>
    %257 = arith.addf %255, %256 : vector<16x128xf32>
    %cst_89 = arith.constant 0.000000e+00 : f32
    %258 = vector.broadcast %cst_89 : f32 to vector<16x128xf32>
    %259 = arith.cmpf ogt, %257, %258 : vector<16x128xf32>
    %cst_90 = arith.constant 0.000000e+00 : f32
    %260 = vector.broadcast %cst_90 : f32 to vector<16x128xf32>
    %261 = arith.minimumf %257, %260 : vector<16x128xf32>
    %262 = math.exp %261 : vector<16x128xf32>
    %cst_91 = arith.constant 1.000000e+00 : f32
    %263 = vector.broadcast %cst_91 : f32 to vector<16x128xf32>
    %264 = arith.subf %262, %263 : vector<16x128xf32>
    %265 = arith.select %259, %257, %264 : vector<16x128xi1>, vector<16x128xf32>
    %266 = arith.truncf %265 : vector<16x128xf32> to vector<16x128xbf16>
    %cst_92 = arith.constant dense<0.000000e+00> : vector<64x128xf32>
    %267 = tpu.matmul %50, %266, %cst_92 {dimension_numbers = #tpu.dot_dimension_numbers<[1], [0], [0], [1], [0, 0, 1, 1], [], []>} : vector<64x16xbf16>, vector<16x128xbf16>, vector<64x128xf32> -> vector<64x128xf32>
    %268 = arith.mulf %267, %183 : vector<64x128xf32>
    %269 = arith.truncf %268 : vector<64x128xf32> to vector<64x128xbf16>
    %cst_93 = arith.constant dense<0.000000e+00> : vector<16x128xf32>
    %270 = tpu.matmul %52, %269, %cst_93 {dimension_numbers = #tpu.dot_dimension_numbers<[1], [0], [0], [1], [0, 0, 1, 1], [], []>} : vector<16x64xbf16>, vector<64x128xbf16>, vector<16x128xf32> -> vector<16x128xf32>
    %271 = arith.truncf %270 : vector<16x128xf32> to vector<16x128xbf16>
    %c2_94 = arith.constant 2 : index
    %c0_95 = arith.constant 0 : index
    %c0_96 = arith.constant 0 : index
    %272 = vector.load %arg5[%c2_94, %c0_95, %c0_96] : memref<5x128x128xf32, #tpu.memory_space<vmem>>, vector<1x128x128xf32>
    %273 = vector.shape_cast %272 : vector<1x128x128xf32> to vector<128x128xf32>
    %274 = arith.truncf %273 : vector<128x128xf32> to vector<128x128xbf16>
    %cst_97 = arith.constant dense<0.000000e+00> : vector<16x128xf32>
    %275 = tpu.matmul %271, %274, %cst_97 {dimension_numbers = #tpu.dot_dimension_numbers<[1], [0], [0], [1], [0, 0, 1, 1], [], []>} : vector<16x128xbf16>, vector<128x128xbf16>, vector<16x128xf32> -> vector<16x128xf32>
    %276 = vector.extract_strided_slice %0 {offsets = [6, 0], sizes = [1, 128], strides = [1, 1]} : vector<8x128xf32> to vector<1x128xf32>
    %277 = vector.broadcast %276 : vector<1x128xf32> to vector<16x128xf32>
    %278 = arith.addf %275, %277 : vector<16x128xf32>
    %cst_98 = arith.constant dense<0.000000e+00> : vector<128xf32>
    %279 = vector.multi_reduction <add>, %278, %cst_98 [0] : vector<16x128xf32> to vector<128xf32>
    %280 = vector.shape_cast %279 : vector<128xf32> to vector<1x128xf32>
    %cst_99 = arith.constant 6.250000e-02 : f32
    %281 = vector.broadcast %cst_99 : f32 to vector<1x128xf32>
    %282 = arith.mulf %280, %281 : vector<1x128xf32>
    %283 = vector.broadcast %282 : vector<1x128xf32> to vector<16x128xf32>
    %284 = arith.subf %278, %283 : vector<16x128xf32>
    %285 = arith.mulf %284, %284 : vector<16x128xf32>
    %cst_100 = arith.constant dense<0.000000e+00> : vector<128xf32>
    %286 = vector.multi_reduction <add>, %285, %cst_100 [0] : vector<16x128xf32> to vector<128xf32>
    %287 = vector.shape_cast %286 : vector<128xf32> to vector<1x128xf32>
    %cst_101 = arith.constant 6.250000e-02 : f32
    %288 = vector.broadcast %cst_101 : f32 to vector<1x128xf32>
    %289 = arith.mulf %287, %288 : vector<1x128xf32>
    %cst_102 = arith.constant 9.99999974E-6 : f32
    %290 = vector.broadcast %cst_102 : f32 to vector<1x128xf32>
    %291 = arith.addf %289, %290 : vector<1x128xf32>
    %292 = math.rsqrt %291 : vector<1x128xf32>
    %293 = vector.broadcast %292 : vector<1x128xf32> to vector<16x128xf32>
    %294 = arith.mulf %284, %293 : vector<16x128xf32>
    %295 = vector.broadcast %1 : vector<1x128xf32> to vector<16x128xf32>
    %296 = arith.mulf %294, %295 : vector<16x128xf32>
    %297 = vector.broadcast %2 : vector<1x128xf32> to vector<16x128xf32>
    %298 = arith.addf %296, %297 : vector<16x128xf32>
    %299 = arith.truncf %298 : vector<16x128xf32> to vector<16x128xbf16>
    %c3_103 = arith.constant 3 : index
    %c0_104 = arith.constant 0 : index
    %c0_105 = arith.constant 0 : index
    %300 = vector.load %arg5[%c3_103, %c0_104, %c0_105] : memref<5x128x128xf32, #tpu.memory_space<vmem>>, vector<1x128x128xf32>
    %301 = vector.shape_cast %300 : vector<1x128x128xf32> to vector<128x128xf32>
    %302 = arith.truncf %301 : vector<128x128xf32> to vector<128x128xbf16>
    %cst_106 = arith.constant dense<0.000000e+00> : vector<16x128xf32>
    %303 = tpu.matmul %299, %302, %cst_106 {dimension_numbers = #tpu.dot_dimension_numbers<[1], [0], [0], [1], [0, 0, 1, 1], [], []>} : vector<16x128xbf16>, vector<128x128xbf16>, vector<16x128xf32> -> vector<16x128xf32>
    %304 = vector.broadcast %3 : vector<1x128xf32> to vector<16x128xf32>
    %305 = arith.addf %303, %304 : vector<16x128xf32>
    %c0_107 = arith.constant 0 : index
    %c0_108 = arith.constant 0 : index
    %306 = vector.load %arg7[%c0_107, %c0_108] : memref<16x128xf32, #tpu.memory_space<vmem>>, vector<16x128xf32>
    tpu.vector_store %arg7[%c0_107, %c0_108], %172 {strides = array<i32>} : memref<16x128xf32, #tpu.memory_space<vmem>>, vector<16x128xf32>,
    %c0_109 = arith.constant 0 : index
    %c0_110 = arith.constant 0 : index
    %307 = vector.load %arg8[%c0_109, %c0_110] : memref<16x128xf32, #tpu.memory_space<vmem>>, vector<16x128xf32>
    tpu.vector_store %arg8[%c0_109, %c0_110], %179 {strides = array<i32>} : memref<16x128xf32, #tpu.memory_space<vmem>>, vector<16x128xf32>,
    %c0_111 = arith.constant 0 : index
    %c0_112 = arith.constant 0 : index
    %308 = vector.load %arg9[%c0_111, %c0_112] : memref<16x128xf32, #tpu.memory_space<vmem>>, vector<16x128xf32>
    tpu.vector_store %arg9[%c0_111, %c0_112], %298 {strides = array<i32>} : memref<16x128xf32, #tpu.memory_space<vmem>>, vector<16x128xf32>,
    %c0_113 = arith.constant 0 : index
    %c0_114 = arith.constant 0 : index
    %309 = vector.load %arg10[%c0_113, %c0_114] : memref<16x128xf32, #tpu.memory_space<vmem>>, vector<16x128xf32>
    tpu.vector_store %arg10[%c0_113, %c0_114], %305 {strides = array<i32>} : memref<16x128xf32, #tpu.memory_space<vmem>>, vector<16x128xf32>,
    return
  }
}

</mosaic_0001>

<bundles_post_ra>
// kernel: modeler_nc_forward.1
= control target key start
LH: loop header
LB: loop body
LE: loop exit
PB: predicated region body
PF: predicated region fallthrough
CT: control target
= control target key end

     0   :  { %16 = vsyncpa [#allocation3], 0  ;;  %s8473_s0 = inlined_call_operand.hbm [shape: f32[64,4,128], index: 0, kind: input, shape index: {}]   ;;  %s8474_s1 = inlined_call_operand.vmem [shape: f32[64,4], index: 1, kind: input, shape index: {}]   ;;  %s8475_s2 = inlined_call_operand.vmem [shape: f32[64,16], index: 2, kind: input, shape index: {}]   ;;  %s8476_s3 = inlined_call_operand.vmem [shape: f32[16,64], index: 3, kind: input, shape index: {}]   ;;  %s8477_s4 = inlined_call_operand.vmem [shape: f32[16,128], index: 4, kind: input, shape index: {}]   ;;  %s8478_s5 = inlined_call_operand.hbm [shape: f32[5,128,128], index: 5, kind: input, shape index: {}]   ;;  %s8479_s6 = inlined_call_operand.vmem [shape: f32[8,128], index: 6, kind: input, shape index: {}]   ;;  %s8480_s7 = inlined_call_operand.hbm [shape: f32[16,128], index: 7, kind: output, shape index: {0}]   ;;  %s8481_s8 = inlined_call_operand.vmem [shape: f32[16,128], index: 8, kind: output, shape index: {1}]   ;;  %s8482_s9 = inlined_call_operand.hbm [shape: f32[16,128], index: 9, kind: output, shape index: {2}]   ;;  %s8483_s10 = inlined_call_operand.vmem [shape: f32[16,128], index: 10, kind: output, shape index: {3}]  }
   0x1   :  { %17 = vsyncpa [#allocation6], 0 }
   0x2   :  { %18 = vsyncpa [#allocation4], 0 }
   0x3   :  { %19 = vsyncpa [#allocation9], 0  ;;  %s6157_s13 = smov [#allocation2]   ;;  %s6061_s17 = scalar_lea.hbm %s8473_s0, 4096 }
   0x4   :  { %s25_s14 = sshll.u32 %s6157_s13, 4  ;;  %p6062_p0 = scmp.ne.s32.totalorder %s8473_s0, %s6061_s17  ;;  %s26_s14 = int_to_ptr.vmem [resolvable:$true] %s25_s14 }
   0x5   :  { %p6065_p1 = scmp.lt.u32.totalorder %s6061_s17, %s8473_s0 }
   0x7   :  { %p6067_p2 = pnand %p6065_p1, %p6062_p0 }
   0x9   :  { %6070 = shalt.err (!%p6067_p2)
}
   0xa   :  { %s6071_s22 = scalar_lea.vmem %s26_s14, 4096  ;;  %p6076_p4 = scmp.lt.s32.totalorder %s26_s14, %s26_s14 }
   0xb   :  { %p6072_p3 = scmp.ne.s32.totalorder %s26_s14, %s6071_s22  ;;  %p6077_p5 = scmp.lt.s32.totalorder %s6071_s22, %s6071_s22 }
   0xd   :  { %p6078_p6 = por %p6077_p5, %p6076_p4 }
   0xf   :  { %p6079_p7 = pnand %p6078_p6, %p6072_p3 }
  0x11   :  { %6082 = shalt.err (!%p6079_p7)
}
  0x12   :  { %s6158_s23 = smov 64   ;;  %s6159_s24 = smov 4  }
  0x13   :  { %31 = dma.hbm_to_vmem [thread:$0]  %s8473_s0, 4096, %s26_s14, [#allocation3], %s6158_s23, %s6158_s23, %s6159_s24  }
  0x14   :  { %s6160_s27 = smov [#allocation5]   ;;  %s6083_s11 = scalar_lea.hbm %s8478_s5, 10240 }
  0x15   :  { %s45_s28 = sshll.u32 %s6160_s27, 4  ;;  %p6084_p8 = scmp.ne.s32.totalorder %s8478_s5, %s6083_s11  ;;  %s46_s28 = int_to_ptr.vmem [resolvable:$true] %s45_s28 }
  0x16   :  { %p6087_p9 = scmp.lt.u32.totalorder %s6083_s11, %s8478_s5 }
  0x18   :  { %p6089_p10 = pnand %p6087_p9, %p6084_p8 }
  0x1a   :  { %6092 = shalt.err (!%p6089_p10)
}
  0x1b   :  { %s6093_s17 = scalar_lea.vmem %s46_s28, 10240  ;;  %p6098_p12 = scmp.lt.s32.totalorder %s46_s28, %s46_s28 }
  0x1c   :  { %p6094_p11 = scmp.ne.s32.totalorder %s46_s28, %s6093_s17  ;;  %p6099_p13 = scmp.lt.s32.totalorder %s6093_s17, %s6093_s17 }
  0x1e   :  { %p6100_p0 = por %p6099_p13, %p6098_p12 }
  0x20   :  { %p6101_p1 = pnand %p6100_p0, %p6094_p11 }
  0x22   :  { %6104 = shalt.err (!%p6101_p1)
}
  0x23   :  { %s6161_s0 = smov 128   ;;  %s6162_s14 = smov 8  }
  0x24   :  { %51 = dma.hbm_to_vmem [thread:$0]  %s8478_s5, 10240, %s46_s28, [#allocation6], %s6161_s0, %s6161_s0, %s6162_s14  }
  0x25   :  { %6149 = dma.done.wait [#allocation3], 4096  }
  0x26   :  { %6150 = vsyncadd [#allocation3], 4294963200 }
  0x27   :  { %6151 = dma.done.wait [#allocation6], 10240  }
  0x28   :  { %6152 = vsyncadd [#allocation6], 4294957056  ;;  %v127_v0 = vld [vmem:[#allocation5 + $0x200] sm:$0xff]  ;;  %v128_v1 = vld [vmem:[#allocation5 + $0x208] sm:$0xff]  ;;  %vm208_vm0 = vcmask 1041409   ;;  %vm211_vm1 = vcmask 1042434  }
  0x29   :  { %v129_v2 = vld [vmem:[#allocation5 + $0x210] sm:$0xff]  ;;  %v6252_v3 = vpack.c.bf16 %v128_v1, %v127_v0  ;;  %v130_v4 = vld [vmem:[#allocation5 + $0x218] sm:$0xff]  ;;  %v131_v5 = vld [vmem:[#allocation5 + $0x220] sm:$0xff]  ;;  %vm214_vm2 = vcmask 1043459   ;;  %vm217_vm3 = vcmask 1044484   ;;  %vm220_vm4 = vcmask 1045509  }
  0x2a   :  { %v132_v6 = vld [vmem:[#allocation5 + $0x228] sm:$0xff]  ;;  %v6254_v7 = vpack.c.bf16 %v130_v4, %v129_v2  ;;  %v133_v8 = vld [vmem:[#allocation5 + $0x230] sm:$0xff]  ;;  %v134_v9 = vld [vmem:[#allocation5 + $0x238] sm:$0xff]  ;;  %vm223_vm5 = vcmask 1046534   ;;  %vm226_vm6 = vcmask 1047559   ;;  %s6163_s21 = smov 1  }
  0x2b   :  { %v135_v10 = vld [vmem:[#allocation5 + $0x240] sm:$0xff]  ;;  %5730 = vmatprep.subr.bf16.mxu0 %v6252_v3  ;;  %5762 = vmatprep.subr.bf16.mxu1 %v6252_v3  ;;  %v136_v11 = vld [vmem:[#allocation5 + $0x248] sm:$0xff]  ;;  %v137_v12 = vld [vmem:[#allocation5 + $0x250] sm:$0xff]  ;;  %v6262_v17 = vpack.c.bf16 %v132_v6, %v131_v5  ;;  %v6268_v21 = vpack.c.bf16 %v134_v9, %v133_v8  ;;  %s6164_s22 = smov 2   ;;  %s6165_s23 = smov 3   ;;  %vm1210_vm7 = vcmask 7168  }
  0x2c   :  { %v138_v13 = vld [vmem:[#allocation5 + $0x258] sm:$0xff]  ;;  %5732 = vmatpush3.bf16.msra.mxu0 %v6252_v3  ;;  %5764 = vmatpush3.bf16.msra.mxu1 %v6252_v3  ;;  %v139_v14 = vld [vmem:[#allocation5 + $0x260] sm:$0xff]  ;;  %v140_v15 = vld [vmem:[#allocation5 + $0x268] sm:$0xff]  ;;  %v6276_v25 = vpack.c.bf16 %v136_v11, %v135_v10  ;;  %vm1219_vm8 = vcmask 15360   ;;  %vm1228_vm9 = vcmask 23552   ;;  %vm1266_vm10 = vcmask 31744  }
  0x2d   :  { %v141_v16 = vld [vmem:[#allocation5 + $0x270] sm:$0xff]  ;;  %5734 = vmatprep.subr.bf16.mxu0 %v6254_v7  ;;  %5766 = vmatprep.subr.bf16.mxu1 %v6254_v7  ;;  %v142_v18 = vld [vmem:[#allocation5 + $0x278] sm:$0xff]  ;;  %v6264_v19 = vld [vmem:[#allocation2] sm:$0xf]  ;;  %v6278_v26 = vpack.c.bf16 %v138_v13, %v137_v12  ;;  %v6280_v27 = vpack.c.bf16 %v140_v15, %v139_v14  ;;  %vm2401_vm11 = vcmask 130048   ;;  %vm1951_vm12 = vcmask 1043456  }
  0x2e   :  { %8612 = vst [vmem:[#allocation14_spill] sm:$0xff] %v6264_v19  ;;  %v6266_v20 = vld [vmem:[#allocation2 + $0x4] sm:$0xf]  ;;  %v6270_v22 = vld [vmem:[#allocation2 + $0x8] sm:$0xf]  ;;  %v6282_v28 = vpack.c.bf16 %v142_v18, %v141_v16  ;;  %v439_v39 = vrot.slane %v6264_v19, 1 }
  0x2f   :  { %8613 = vst [vmem:[#allocation15_spill] sm:$0xff] %v6266_v20  ;;  %8614 = vst [vmem:[#allocation16_spill] sm:$0xff] %v6270_v22  ;;  %v6272_v23 = vld [vmem:[#allocation2 + $0xc] sm:$0xf]  ;;  %v6274_v24 = vld [vmem:[#allocation2 + $0x10] sm:$0xf] }
  0x30   :  { %8615 = vst [vmem:[#allocation17_spill] sm:$0xff] %v6272_v23  ;;  %8616 = vst [vmem:[#allocation18_spill] sm:$0xff] %v6274_v24  ;;  %v6284_v29 = vld [vmem:[#allocation2 + $0x14] sm:$0xf]  ;;  %v6286_v30 = vld [vmem:[#allocation2 + $0x18] sm:$0xf]  ;;  %5736 = vmatpush3.bf16.msra.mxu0 %v6254_v7  ;;  %5768 = vmatpush3.bf16.msra.mxu1 %v6254_v7  ;;  %v440_v47 = vsel %vm208_vm0, %v6266_v20, %v439_v39 }
  0x31   :  { %8617 = vst [vmem:[#allocation19_spill] sm:$0xff] %v6280_v27  ;;  %8618 = vst [vmem:[#allocation20_spill] sm:$0xff] %v6282_v28  ;;  %v6288_v31 = vld [vmem:[#allocation2 + $0x1c] sm:$0xf]  ;;  %v207_v32 = vrot.slane %v6266_v20, 7  ;;  %v210_v33 = vrot.slane %v6270_v22, 6  ;;  %5738 = vmatprep.subr.bf16.mxu0 %v6262_v17  ;;  %5770 = vmatprep.subr.bf16.mxu1 %v6262_v17 }
  0x32   :  { %8619 = vst [vmem:[#allocation21_spill] sm:$0xff] %v6284_v29  ;;  %8620 = vst [vmem:[#allocation22_spill] sm:$0xff] %v6286_v30  ;;  %v213_v34 = vrot.slane %v6272_v23, 5  ;;  %v216_v35 = vrot.slane %v6274_v24, 4  ;;  %v219_v36 = vrot.slane %v6284_v29, 3  ;;  %v222_v37 = vrot.slane %v6286_v30, 2 }
  0x33   :  { %8621 = vst [vmem:[#allocation23_spill] sm:$0xff] %v6288_v31  ;;  %v225_v38 = vrot.slane %v6288_v31, 1  ;;  %v6302_v40 = vld [vmem:[#allocation2 + $0x24] sm:$0xf]  ;;  %v209_v41 = vsel %vm208_vm0, %v207_v32, %v6264_v19  ;;  %v441_v42 = vrot.slane %v6270_v22, 7  ;;  %v443_v43 = vrot.slane %v6272_v23, 6 }
  0x34   :  { %8622 = vst [vmem:[#allocation24_spill] sm:$0xff] %v6302_v40  ;;  %v445_v44 = vrot.slane %v6274_v24, 5  ;;  %v6309_v45 = vld [vmem:[#allocation2 + $0x28] sm:$0xf]  ;;  %v212_v46 = vsel %vm211_vm1, %v210_v33, %v209_v41  ;;  %v447_v48 = vrot.slane %v6284_v29, 4  ;;  %v449_v49 = vrot.slane %v6286_v30, 3  ;;  %5740 = vmatpush3.bf16.msra.mxu0 %v6262_v17  ;;  %5772 = vmatpush3.bf16.msra.mxu1 %v6262_v17 }
  0x35   :  { %8623 = vst [vmem:[#allocation25_spill] sm:$0xff] %v6309_v45  ;;  %v6316_v50 = vld [vmem:[#allocation2 + $0x2c] sm:$0xf]  ;;  %v6318_v51 = vld [vmem:[#allocation2 + $0x30] sm:$0xf]  ;;  %v215_v52 = vsel %vm214_vm2, %v213_v34, %v212_v46  ;;  %v442_v53 = vsel %vm211_vm1, %v441_v42, %v440_v47  ;;  %v451_v54 = vrot.slane %v6288_v31, 2  ;;  %5742 = vmatprep.subr.bf16.mxu0 %v6268_v21  ;;  %5774 = vmatprep.subr.bf16.mxu1 %v6268_v21 }
  0x36   :  { %8624 = vst [vmem:[#allocation26_spill] sm:$0xff] %v6316_v50  ;;  %8625 = vst [vmem:[#allocation27_spill] sm:$0xff] %v6318_v51  ;;  %v6325_v55 = vld [vmem:[#allocation2 + $0x34] sm:$0xf]  ;;  %v228_v56 = vrot.slane %v6302_v40, 7  ;;  %v218_v57 = vsel %vm217_vm3, %v216_v35, %v215_v52  ;;  %v444_v58 = vsel %vm214_vm2, %v443_v43, %v442_v53  ;;  %v230_v61 = vrot.slane %v6309_v45, 6 }
  0x37   :  { %8626 = vst [vmem:[#allocation28_spill] sm:$0xff] %v6325_v55  ;;  %v6332_v59 = vld [vmem:[#allocation2 + $0x20] sm:$0xf]  ;;  %v6334_v60 = vld [vmem:[#allocation2 + $0x38] sm:$0xf]  ;;  %v232_v62 = vrot.slane %v6316_v50, 5  ;;  %v221_v63 = vsel %vm220_vm4, %v219_v36, %v218_v57  ;;  %v446_v0 = vsel %vm217_vm3, %v445_v44, %v444_v58 }
  0x38   :  { %8627 = vst [vmem:[#allocation29_spill] sm:$0xff] %v6332_v59  ;;  %8628 = vst [vmem:[#allocation30_spill] sm:$0xff] %v6334_v60  ;;  %v6340_v1 = vld [vmem:[#allocation2 + $0x3c] sm:$0xf]  ;;  %v229_v2 = vsel %vm208_vm0, %v228_v56, %v6332_v59  ;;  %v234_v4 = vrot.slane %v6318_v51, 4  ;;  %v224_v5 = vsel %vm223_vm5, %v222_v37, %v221_v63  ;;  %v448_v6 = vsel %vm220_vm4, %v447_v48, %v446_v0  ;;  %s6169_s26 = smov [#allocation8]  }
  0x39   :  { %8629 = vst [vmem:[#allocation31_spill] sm:$0xff] %v6340_v1  ;;  %v231_v8 = vsel %vm211_vm1, %v230_v61, %v229_v2  ;;  %v236_v9 = vrot.slane %v6325_v55, 3  ;;  %v6349_v10 = vld [vmem:[#allocation2 + $0x40] sm:$0xf]  ;;  %5744 = vmatpush3.bf16.msra.mxu0 %v6268_v21  ;;  %5776 = vmatpush3.bf16.msra.mxu1 %v6268_v21  ;;  %v227_v11 = vsel %vm226_vm6, %v225_v38, %v224_v5  ;;  %v238_v14 = vrot.slane %v6334_v60, 2  ;;  %s4983_s27 = sshll.u32 %s6169_s26, 4  ;;  %s8428_s27 = int_to_ptr.vmem [resolvable:$true] %s4983_s27 }
  0x3a   :  { %v450_v12 = vsel %vm223_vm5, %v449_v49, %v448_v6  ;;  %v233_v13 = vsel %vm214_vm2, %v232_v62, %v231_v8  ;;  %v6357_v15 = vld [vmem:[#allocation2 + $0x48] sm:$0xf]  ;;  %v6359_v16 = vld [vmem:[#allocation2 + $0x4c] sm:$0xf]  ;;  %5746 = vmatprep.subr.bf16.mxu0 %v6276_v25  ;;  %5778 = vmatprep.subr.bf16.mxu1 %v6276_v25  ;;  %v240_v33 = vrot.slane %v6340_v1, 1  ;;  %v453_v34 = vrot.slane %v6332_v59, 1 }
  0x3b   :  { %v452_v18 = vsel %vm226_vm6, %v451_v54, %v450_v12  ;;  %v235_v32 = vsel %vm217_vm3, %v234_v4, %v233_v13  ;;  %v6367_v35 = vld [vmem:[#allocation2 + $0x44] sm:$0xf]  ;;  %v6369_v36 = vld [vmem:[#allocation2 + $0x50] sm:$0xf]  ;;  %v6371_v37 = vld [vmem:[#allocation2 + $0x54] sm:$0xf]  ;;  %5303 = vmatprep.mubr.f32.mxu0 %v227_v11 }
  0x3c   :  { %5347 = vmatprep.mubr.f32.mxu1 %v452_v18  ;;  %v237_v38 = vsel %vm220_vm4, %v236_v9, %v235_v32  ;;  %v455_v39 = vrot.slane %v6309_v45, 7  ;;  %v457_v41 = vrot.slane %v6316_v50, 6  ;;  %v459_v42 = vrot.slane %v6318_v51, 5  ;;  %v6377_v43 = vld [vmem:[#allocation2 + $0x58] sm:$0xf] }
  0x3d   :  { %v239_v44 = vsel %vm223_vm5, %v238_v14, %v237_v38  ;;  %v454_v46 = vsel %vm208_vm0, %v6302_v40, %v453_v34  ;;  %v461_v47 = vrot.slane %v6325_v55, 4  ;;  %v463_v48 = vrot.slane %v6334_v60, 3  ;;  %v6384_v49 = vld [vmem:[#allocation2 + $0x5c] sm:$0xf]  ;;  %v6386_v52 = vld [vmem:[#allocation2 + $0x60] sm:$0xf]  ;;  %5748 = vmatpush3.bf16.msra.mxu0 %v6276_v25  ;;  %5780 = vmatpush3.bf16.msra.mxu1 %v6276_v25 }
  0x3e   :  { %v6391_v53 = vsel %vm226_vm6, %v240_v33, %v239_v44  ;;  %v456_v54 = vsel %vm211_vm1, %v455_v39, %v454_v46  ;;  %v465_v56 = vrot.slane %v6340_v1, 2  ;;  %v467_v57 = vrot.slane %v6349_v10, 1  ;;  %v6396_v58 = vld [vmem:[#allocation2 + $0x64] sm:$0xf]  ;;  %v6398_v61 = vld [vmem:[#allocation2 + $0x68] sm:$0xf]  ;;  %5750 = vmatprep.subr.bf16.mxu0 %v6278_v26  ;;  %5782 = vmatprep.subr.bf16.mxu1 %v6278_v26 }
  0x3f   :  { %v6400_v62 = vld [vmem:[#allocation2 + $0x6c] sm:$0xf]  ;;  %v458_v63 = vsel %vm214_vm2, %v457_v41, %v456_v54  ;;  %v469_v0 = vrot.slane %v6357_v15, 7  ;;  %v471_v2 = vrot.slane %v6359_v16, 6  ;;  %v473_v4 = vrot.slane %v6369_v36, 5 }
  0x40   :  { %v6408_v5 = vld [vmem:[#allocation2 + $0x70] sm:$0xf]  ;;  %v460_v6 = vsel %vm217_vm3, %v459_v42, %v458_v63  ;;  %v468_v8 = vsel %vm208_vm0, %v6367_v35, %v467_v57  ;;  %v475_v9 = vrot.slane %v6371_v37, 4  ;;  %v477_v11 = vrot.slane %v6377_v43, 3  ;;  %v6415_v12 = vld [vmem:[#allocation2 + $0x74] sm:$0xf] }
  0x41   :  { %v6417_v13 = vld [vmem:[#allocation2 + $0x78] sm:$0xf]  ;;  %v462_v14 = vsel %vm220_vm4, %v461_v47, %v460_v6  ;;  %v470_v18 = vsel %vm211_vm1, %v469_v0, %v468_v8  ;;  %v479_v32 = vrot.slane %v6384_v49, 2  ;;  %v6422_v33 = vld [vmem:[#allocation2 + $0x7c] sm:$0xf]  ;;  %v481_v34 = vrot.slane %v6386_v52, 1  ;;  %5752 = vmatpush3.bf16.msra.mxu0 %v6278_v26  ;;  %5784 = vmatpush3.bf16.msra.mxu1 %v6278_v26 }
  0x42   :  { %v6425_v38 = vld [vmem:[#allocation2 + $0x80] sm:$0xf]  ;;  %v464_v39 = vsel %vm223_vm5, %v463_v48, %v462_v14  ;;  %v472_v41 = vsel %vm214_vm2, %v471_v2, %v470_v18  ;;  %v483_v42 = vrot.slane %v6398_v61, 7  ;;  %v485_v44 = vrot.slane %v6400_v62, 6  ;;  %v6433_v46 = vld [vmem:[#allocation2 + $0x84] sm:$0xf]  ;;  %5754 = vmatprep.subr.bf16.mxu0 %v6280_v27  ;;  %5786 = vmatprep.subr.bf16.mxu1 %v6280_v27 }
  0x43   :  { %v6435_v47 = vld [vmem:[#allocation2 + $0x88] sm:$0xf]  ;;  %v6437_v54 = vld [vmem:[#allocation2 + $0x8c] sm:$0xf]  ;;  %v6442_v57 = vsel %vm226_vm6, %v465_v56, %v464_v39  ;;  %v474_v48 = vsel %vm217_vm3, %v473_v4, %v472_v41  ;;  %v482_v63 = vsel %vm208_vm0, %v6396_v58, %v481_v34  ;;  %v487_v0 = vrot.slane %v6408_v5, 5 }
  0x44   :  { %v6448_v2 = vld [vmem:[#allocation2 + $0x90] sm:$0xf]  ;;  %v6450_v6 = vld [vmem:[#allocation2 + $0x94] sm:$0xf]  ;;  %v476_v8 = vsel %vm220_vm4, %v475_v9, %v474_v48  ;;  %v484_v14 = vsel %vm211_vm1, %v483_v42, %v482_v63  ;;  %v489_v18 = vrot.slane %v6415_v12, 4  ;;  %v491_v56 = vrot.slane %v6417_v13, 3 }
  0x45   :  { %v6456_v39 = vld [vmem:[#allocation2 + $0x98] sm:$0xf]  ;;  %v6458_v4 = vld [vmem:[#allocation2 + $0x9c] sm:$0xf]  ;;  %v478_v34 = vsel %vm223_vm5, %v477_v11, %v476_v8  ;;  %v486_v41 = vsel %vm214_vm2, %v485_v44, %v484_v14  ;;  %v493_v1 = vrot.slane %v6422_v33, 2  ;;  %v495_v45 = vrot.slane %v6425_v38, 1  ;;  %5756 = vmatpush3.bf16.msra.mxu0 %v6280_v27  ;;  %5788 = vmatpush3.bf16.msra.mxu1 %v6280_v27 }
  0x46   :  { %v6464_v60 = vld [vmem:[#allocation2 + $0xa0] sm:$0xf]  ;;  %v6466_v9 = vld [vmem:[#allocation2 + $0xa8] sm:$0xf]  ;;  %v6471_v42 = vsel %vm226_vm6, %v479_v32, %v478_v34  ;;  %v488_v48 = vsel %vm217_vm3, %v487_v0, %v486_v41  ;;  %v497_v11 = vrot.slane %v6435_v47, 7  ;;  %v499_v44 = vrot.slane %v6437_v54, 6  ;;  %5758 = vmatprep.subr.bf16.mxu0 %v6282_v28  ;;  %5790 = vmatprep.subr.bf16.mxu1 %v6282_v28 }
  0x47   :  { %v6476_v63 = vld [vmem:[#allocation2 + $0xa4] sm:$0xf]  ;;  %v6478_v8 = vld [vmem:[#allocation2 + $0xac] sm:$0xf]  ;;  %v6480_v14 = vld [vmem:[#allocation2 + $0xb0] sm:$0xf]  ;;  %v490_v55 = vsel %vm220_vm4, %v489_v18, %v488_v48  ;;  %v496_v32 = vsel %vm208_vm0, %v6433_v46, %v495_v45 }
  0x48   :  { %v501_v0 = vrot.slane %v6448_v2, 5  ;;  %v503_v34 = vrot.slane %v6450_v6, 4  ;;  %v6489_v41 = vld [vmem:[#allocation2 + $0xb4] sm:$0xf]  ;;  %v6491_v51 = vld [vmem:[#allocation2 + $0xb8] sm:$0xf]  ;;  %v492_v50 = vsel %vm223_vm5, %v491_v56, %v490_v55  ;;  %v498_v40 = vsel %vm211_vm1, %v497_v11, %v496_v32 }
  0x49   :  { %8630 = vst [vmem:[#allocation32_spill] sm:$0xff] %v6489_v41  ;;  %v505_v59 = vrot.slane %v6456_v39, 3  ;;  %v507_v31 = vrot.slane %v6458_v4, 2  ;;  %v6497_v18 = vld [vmem:[#allocation2 + $0xbc] sm:$0xf]  ;;  %v494_v45 = vsel %vm226_vm6, %v493_v1, %v492_v50  ;;  %v500_v22 = vsel %vm214_vm2, %v499_v44, %v498_v40  ;;  %5760 = vmatpush3.bf16.msra.mxu0 %v6282_v28  ;;  %5792 = vmatpush3.bf16.msra.mxu1 %v6282_v28 }
  0x4a   :  { %8631 = vst [vmem:[#allocation33_spill] sm:$0xff] %v6497_v18  ;;  %v6499_v48 = vld [vmem:[#allocation2 + $0xc0] sm:$0xf]  ;;  %v509_v30 = vrot.slane %v6464_v60, 1  ;;  %v511_v29 = vrot.slane %v6466_v9, 7  ;;  %v502_v56 = vsel %vm217_vm3, %v501_v0, %v500_v22  ;;  %v513_v11 = vrot.slane %v6478_v8, 6  ;;  %5794 = vmatprep.subr.bf16.mxu0 %v6252_v3  ;;  %5826 = vmatprep.subr.bf16.mxu1 %v6252_v3 }
  0x4b   :  { %8632 = vst [vmem:[#allocation34_spill] sm:$0xff] %v6499_v48  ;;  %v6505_v24 = vld [vmem:[#allocation2 + $0xc4] sm:$0xf]  ;;  %v6507_v55 = vld [vmem:[#allocation2 + $0xc8] sm:$0xf]  ;;  %v515_v50 = vrot.slane %v6480_v14, 5  ;;  %v504_v44 = vsel %vm220_vm4, %v503_v34, %v502_v56 }
  0x4c   :  { %8633 = vst [vmem:[#allocation35_spill] sm:$0xff] %v6507_v55  ;;  %v517_v40 = vrot.slane %v6489_v41, 4  ;;  %v6515_v1 = vld [vmem:[#allocation2 + $0xcc] sm:$0xf]  ;;  %v510_v32 = vsel %vm208_vm0, %v6476_v63, %v509_v30  ;;  %v519_v23 = vrot.slane %v6491_v51, 3  ;;  %v521_v22 = vrot.slane %v6497_v18, 2  ;;  %5304 = vmatmul.mubr.f32.vlgmr.msra.gmra.mrb[0].mxu0 %v6391_v53  ;;  %5348 = vmatmul.mubr.f32.vlgmr.msra.gmra.mrb[0].mxu1 %v6442_v57 }
  0x4d   :  { %8634 = vst [vmem:[#allocation36_spill] sm:$0xff] %v6515_v1  ;;  %v6524_v0 = vld [vmem:[#allocation2 + $0xd0] sm:$0xf]  ;;  %v6526_v20 = vld [vmem:[#allocation2 + $0xd4] sm:$0xf]  ;;  %v506_v19 = vsel %vm223_vm5, %v505_v59, %v504_v44  ;;  %v512_v28 = vsel %vm211_vm1, %v511_v29, %v510_v32  ;;  %v523_v34 = vrot.slane %v6499_v48, 1  ;;  %5796 = vmatpush3.bf16.msra.mxu0 %v6252_v3  ;;  %5828 = vmatpush3.bf16.msra.mxu1 %v6252_v3 }
  0x4e   :  { %8635 = vst [vmem:[#allocation37_spill] sm:$0xff] %v6524_v0  ;;  %8636 = vst [vmem:[#allocation38_spill] sm:$0xff] %v6526_v20  ;;  %v6530_v27 = vld [vmem:[#allocation2 + $0xd8] sm:$0xf]  ;;  %v6532_v41 = vld [vmem:[#allocation2 + $0xdc] sm:$0xf]  ;;  %v508_v56 = vsel %vm226_vm6, %v507_v31, %v506_v19  ;;  %v514_v18 = vsel %vm214_vm2, %v513_v11, %v512_v28  ;;  %5350 = vmatprep.mubr.f32.mxu1 %v6471_v42  ;;  %5798 = vmatprep.subr.bf16.mxu0 %v6254_v7 }
  0x4f   :  { %8637 = vst [vmem:[#allocation39_spill] sm:$0xff] %v6530_v27  ;;  %8638 = vst [vmem:[#allocation40_spill] sm:$0xff] %v6532_v41  ;;  %v525_v30 = vrot.slane %v6507_v55, 7  ;;  %v527_v59 = vrot.slane %v6515_v1, 6  ;;  %v529_v29 = vrot.slane %v6524_v0, 5  ;;  %v516_v53 = vsel %vm217_vm3, %v515_v50, %v514_v18  ;;  %5830 = vmatprep.subr.bf16.mxu1 %v6254_v7 }
  0x50   :  { %v6542_v44 = vld [vmem:[#allocation2 + $0xe0] sm:$0xf]  ;;  %v6544_v32 = vld [vmem:[#allocation2 + $0xe4] sm:$0xf]  ;;  %v524_v57 = vsel %vm208_vm0, %v6505_v24, %v523_v34  ;;  %v531_v19 = vrot.slane %v6526_v20, 4  ;;  %v533_v28 = vrot.slane %v6530_v27, 3  ;;  %v518_v0 = vsel %vm220_vm4, %v517_v40, %v516_v53  ;;  %5351 = vmatmul.mubr.f32.gmra.mrb[2].mxu1 %v494_v45 }
  0x51   :  { %8639 = vst [vmem:[#allocation41_spill] sm:$0xff] %v6542_v44  ;;  %8640 = vst [vmem:[#allocation42_spill] sm:$0xff] %v6544_v32  ;;  %v6553_v31 = vld [vmem:[#allocation2 + $0xe8] sm:$0xf]  ;;  %v6555_v11 = vld [vmem:[#allocation2 + $0xec] sm:$0xf]  ;;  %v526_v3 = vsel %vm211_vm1, %v525_v30, %v524_v57  ;;  %v520_v20 = vsel %vm223_vm5, %v519_v23, %v518_v0  ;;  %5800 = vmatpush3.bf16.msra.mxu0 %v6254_v7  ;;  %5832 = vmatpush3.bf16.msra.mxu1 %v6254_v7 }
  0x52   :  { %8641 = vst [vmem:[#allocation43_spill] sm:$0xff] %v6553_v31  ;;  %8642 = vst [vmem:[#allocation44_spill] sm:$0xff] %v6555_v11  ;;  %v535_v18 = vrot.slane %v6532_v41, 2  ;;  %v6562_v50 = vld [vmem:[#allocation2 + $0xf0] sm:$0xf]  ;;  %v537_v27 = vrot.slane %v6542_v44, 1  ;;  %v528_v42 = vsel %vm214_vm2, %v527_v59, %v526_v3  ;;  %v522_v53 = vsel %vm226_vm6, %v521_v22, %v520_v20  ;;  %5353 = vmatprep.mubr.f32.mxu1 %v508_v56 }
  0x53   :  { %8643 = vst [vmem:[#allocation45_spill] sm:$0xff] %v6562_v50  ;;  %v6564_v34 = vld [vmem:[#allocation2 + $0xf4] sm:$0xf]  ;;  %v6570_v48 = vld [vmem:[#allocation2 + $0xf8] sm:$0xf]  ;;  %v539_v40 = vrot.slane %v6553_v31, 7  ;;  %v530_v57 = vsel %vm217_vm3, %v529_v29, %v528_v42  ;;  %5802 = vmatprep.subr.bf16.mxu0 %v6262_v17  ;;  %5834 = vmatprep.subr.bf16.mxu1 %v6262_v17 }
  0x54   :  { %8644 = vst [vmem:[#allocation46_spill] sm:$0xff] %v6564_v34  ;;  %8645 = vst [vmem:[#allocation47_spill] sm:$0xff] %v6570_v48  ;;  %v6572_v1 = vld [vmem:[#allocation2 + $0xfc] sm:$0xf]  ;;  %v541_v30 = vrot.slane %v6555_v11, 6  ;;  %v538_v44 = vsel %vm208_vm0, %v6544_v32, %v537_v27  ;;  %v543_v23 = vrot.slane %v6562_v50, 5  ;;  %v532_v0 = vsel %vm220_vm4, %v531_v19, %v530_v57  ;;  %5354 = vmatmul.mubr.f32.gmra.mrb[4].mxu1 %v522_v53 }
  0x55   :  { %8646 = vst [vmem:[#allocation48_spill] sm:$0xff] %v6572_v1  ;;  %v540_v59 = vsel %vm211_vm1, %v539_v40, %v538_v44  ;;  %v545_v3 = vrot.slane %v6564_v34, 4  ;;  %v547_v45 = vrot.slane %v6570_v48, 3  ;;  %v534_v20 = vsel %vm223_vm5, %v533_v28, %v532_v0  ;;  %5804 = vmatpush3.bf16.msra.mxu0 %v6262_v17  ;;  %5836 = vmatpush3.bf16.msra.mxu1 %v6262_v17 }
  0x56   :  { %v542_v27 = vsel %vm214_vm2, %v541_v30, %v540_v59  ;;  %v549_v22 = vrot.slane %v6572_v1, 2  ;;  %v242_v29 = vrot.slane %v6367_v35, 7  ;;  %v536_v7 = vsel %vm226_vm6, %v535_v18, %v534_v20  ;;  %5806 = vmatprep.subr.bf16.mxu0 %v6268_v21  ;;  %5838 = vmatprep.subr.bf16.mxu1 %v6268_v21 }
  0x57   :  { %v544_v44 = vsel %vm217_vm3, %v543_v23, %v542_v27  ;;  %v244_v19 = vrot.slane %v6357_v15, 6  ;;  %v246_v56 = vrot.slane %v6359_v16, 5  ;;  %v248_v40 = vrot.slane %v6369_v36, 4  ;;  %5356 = vmatprep.mubr.f32.mxu1 %v536_v7 }
  0x58   :  { %v546_v42 = vsel %vm220_vm4, %v545_v3, %v544_v44  ;;  %v243_v28 = vsel %vm208_vm0, %v242_v29, %v6349_v10  ;;  %v250_v30 = vrot.slane %v6371_v37, 3  ;;  %v252_v23 = vrot.slane %v6377_v43, 2 }
  0x59   :  { %v548_v18 = vsel %vm223_vm5, %v547_v45, %v546_v42  ;;  %v245_v57 = vsel %vm211_vm1, %v244_v19, %v243_v28  ;;  %v254_v53 = vrot.slane %v6384_v49, 1  ;;  %v256_v3 = vrot.slane %v6396_v58, 7  ;;  %5808 = vmatpush3.bf16.msra.mxu0 %v6268_v21  ;;  %5840 = vmatpush3.bf16.msra.mxu1 %v6268_v21 }
  0x5a   :  { %v550_v0 = vsel %vm226_vm6, %v549_v22, %v548_v18  ;;  %v247_v59 = vsel %vm214_vm2, %v246_v56, %v245_v57  ;;  %v258_v20 = vrot.slane %v6398_v61, 6  ;;  %v260_v45 = vrot.slane %v6400_v62, 5  ;;  %5810 = vmatprep.subr.bf16.mxu0 %v6276_v25  ;;  %5842 = vmatprep.subr.bf16.mxu1 %v6276_v25 }
  0x5b   :  { %v249_v17 = vsel %vm217_vm3, %v248_v40, %v247_v59  ;;  %v262_v27 = vrot.slane %v6408_v5, 4  ;;  %v264_v29 = vrot.slane %v6415_v12, 3  ;;  %5357 = vmatmul.mubr.f32.gmra.mrb[6].mxu1 %v550_v0  ;;  %v257_v7 = vsel %vm208_vm0, %v256_v3, %v6386_v52 }
  0x5c   :  { %v251_v22 = vsel %vm220_vm4, %v250_v30, %v249_v17  ;;  %v266_v44 = vrot.slane %v6417_v13, 2  ;;  %v268_v19 = vrot.slane %v6422_v33, 1  ;;  %v259_v42 = vsel %vm211_vm1, %v258_v20, %v257_v7 }
  0x5d   :  { %v253_v56 = vsel %vm223_vm5, %v252_v23, %v251_v22  ;;  %v270_v28 = vrot.slane %v6433_v46, 7  ;;  %v272_v40 = vrot.slane %v6435_v47, 6  ;;  %v261_v18 = vsel %vm214_vm2, %v260_v45, %v259_v42  ;;  %5812 = vmatpush3.bf16.msra.mxu0 %v6276_v25  ;;  %5844 = vmatpush3.bf16.msra.mxu1 %v6276_v25 }
  0x5e   :  { %v255_v30 = vsel %vm226_vm6, %v254_v53, %v253_v56  ;;  %v274_v57 = vrot.slane %v6437_v54, 5  ;;  %v276_v21 = vrot.slane %v6448_v2, 4  ;;  %v263_v23 = vsel %vm217_vm3, %v262_v27, %v261_v18  ;;  %5814 = vmatprep.subr.bf16.mxu0 %v6278_v26  ;;  %5846 = vmatprep.subr.bf16.mxu1 %v6278_v26 }
  0x5f   :  { %5306 = vmatprep.mubr.f32.mxu0 %v255_v30  ;;  %v271_v0 = vsel %vm208_vm0, %v270_v28, %v6425_v38  ;;  %v278_v59 = vrot.slane %v6450_v6, 3  ;;  %v280_v3 = vrot.slane %v6456_v39, 2  ;;  %v265_v20 = vsel %vm220_vm4, %v264_v29, %v263_v23  ;;  %v8647_v30 = vld [vmem:[#allocation32_spill] sm:$0xff] }
  0x60   :  { %v273_v53 = vsel %vm211_vm1, %v272_v40, %v271_v0  ;;  %v282_v17 = vrot.slane %v6458_v4, 1  ;;  %v284_v45 = vrot.slane %v6476_v63, 7  ;;  %v267_v27 = vsel %vm223_vm5, %v266_v44, %v265_v20  ;;  %v8648_v0 = vld [vmem:[#allocation33_spill] sm:$0xff] }
  0x61   :  { %v275_v22 = vsel %vm214_vm2, %v274_v57, %v273_v53  ;;  %v286_v7 = vrot.slane %v6466_v9, 6  ;;  %v288_v56 = vrot.slane %v6478_v8, 5  ;;  %v269_v29 = vsel %vm226_vm6, %v268_v19, %v267_v27  ;;  %5816 = vmatpush3.bf16.msra.mxu0 %v6278_v26  ;;  %5848 = vmatpush3.bf16.msra.mxu1 %v6278_v26  ;;  %v8649_v27 = vld [vmem:[#allocation36_spill] sm:$0xff] }
  0x62   :  { %v277_v42 = vsel %vm217_vm3, %v276_v21, %v275_v22  ;;  %v285_v28 = vsel %vm208_vm0, %v284_v45, %v6464_v60  ;;  %v290_v25 = vrot.slane %v6480_v14, 4  ;;  %5307 = vmatmul.mubr.f32.gmra.mrb[2].mxu0 %v269_v29  ;;  %v292_v18 = vrot.slane %v8647_v30, 3 }
  0x63   :  { %v279_v44 = vsel %vm220_vm4, %v278_v59, %v277_v42  ;;  %v287_v40 = vsel %vm211_vm1, %v286_v7, %v285_v28  ;;  %v294_v19 = vrot.slane %v6491_v51, 2  ;;  %v296_v21 = vrot.slane %v8648_v0, 1  ;;  %v8650_v7 = vld [vmem:[#allocation19_spill] sm:$0xff]  ;;  %v8652_v42 = vld [vmem:[#allocation37_spill] sm:$0xff] }
  0x64   :  { %v281_v57 = vsel %vm223_vm5, %v280_v3, %v279_v44  ;;  %v289_v23 = vsel %vm214_vm2, %v288_v56, %v287_v40  ;;  %v298_v20 = vrot.slane %v6505_v24, 7  ;;  %v300_v45 = vrot.slane %v6507_v55, 6  ;;  %5818 = vmatprep.subr.bf16.mxu0 %v8650_v7  ;;  %v8651_v56 = vld [vmem:[#allocation34_spill] sm:$0xff]  ;;  %5850 = vmatprep.subr.bf16.mxu1 %v8650_v7  ;;  %v8654_v40 = vld [vmem:[#allocation39_spill] sm:$0xff] }
  0x65   :  { %v283_v59 = vsel %vm226_vm6, %v282_v17, %v281_v57  ;;  %v291_v53 = vsel %vm217_vm3, %v290_v25, %v289_v23  ;;  %v302_v22 = vrot.slane %v8649_v27, 5  ;;  %v304_v28 = vrot.slane %v8652_v42, 4  ;;  %v8653_v44 = vld [vmem:[#allocation38_spill] sm:$0xff]  ;;  %5852 = vmatpush3.bf16.msra.mxu1 %v8650_v7  ;;  %5820 = vmatpush3.bf16.msra.mxu0 %v8650_v7  ;;  %v8658_v7 = vld [vmem:[#allocation15_spill] sm:$0xff] }
  0x66   :  { %5309 = vmatprep.mubr.f32.mxu0 %v283_v59  ;;  %v293_v3 = vsel %vm220_vm4, %v292_v18, %v291_v53  ;;  %v299_v29 = vsel %vm208_vm0, %v298_v20, %v8651_v56  ;;  %v306_v26 = vrot.slane %v8653_v44, 3  ;;  %v308_v57 = vrot.slane %v8654_v40, 2 }
  0x67   :  { %v295_v17 = vsel %vm223_vm5, %v294_v19, %v293_v3  ;;  %v301_v25 = vsel %vm211_vm1, %v300_v45, %v299_v29  ;;  %v310_v23 = vrot.slane %v6532_v41, 1  ;;  %v312_v20 = vrot.slane %v6544_v32, 7  ;;  %v8660_v32 = vld [vmem:[#allocation18_spill] sm:$0xff] }
  0x68   :  { %v297_v18 = vsel %vm226_vm6, %v296_v21, %v295_v17  ;;  %v303_v59 = vsel %vm214_vm2, %v302_v22, %v301_v25  ;;  %v314_v53 = vrot.slane %v6553_v31, 6  ;;  %v316_v3 = vrot.slane %v6555_v11, 5  ;;  %v8655_v22 = vld [vmem:[#allocation41_spill] sm:$0xff]  ;;  %v8656_v31 = vld [vmem:[#allocation20_spill] sm:$0xff] }
  0x69   :  { %5310 = vmatmul.mubr.f32.gmra.mrb[4].mxu0 %v297_v18  ;;  %v305_v19 = vsel %vm217_vm3, %v304_v28, %v303_v59  ;;  %v318_v45 = vrot.slane %v6562_v50, 4  ;;  %v320_v29 = vrot.slane %v6564_v34, 3  ;;  %v313_v17 = vsel %vm208_vm0, %v312_v20, %v8655_v22  ;;  %5854 = vmatprep.subr.bf16.mxu1 %v8656_v31  ;;  %v8657_v34 = vld [vmem:[#allocation14_spill] sm:$0xff] }
  0x6a   :  { %v307_v21 = vsel %vm220_vm4, %v306_v26, %v305_v19  ;;  %v322_v25 = vrot.slane %v6570_v48, 2  ;;  %v324_v18 = vrot.slane %v6572_v1, 1  ;;  %v315_v59 = vsel %vm211_vm1, %v314_v53, %v313_v17  ;;  %5822 = vmatprep.subr.bf16.mxu0 %v8656_v31  ;;  %v8659_v19 = vld [vmem:[#allocation17_spill] sm:$0xff]  ;;  %5856 = vmatpush3.bf16.msra.mxu1 %v8656_v31  ;;  %v8662_v17 = vld [vmem:[#allocation22_spill] sm:$0xff] }
  0x6b   :  { %v309_v28 = vsel %vm223_vm5, %v308_v57, %v307_v21  ;;  %v664_v50 = vrot.slane %v8657_v34, 2  ;;  %v665_v11 = vrot.slane %v8658_v7, 1  ;;  %v317_v20 = vsel %vm214_vm2, %v316_v3, %v315_v59  ;;  %v8661_v53 = vld [vmem:[#allocation21_spill] sm:$0xff]  ;;  %5824 = vmatpush3.bf16.msra.mxu0 %v8656_v31 }
  0x6c   :  { %v311_v26 = vsel %vm226_vm6, %v310_v23, %v309_v28  ;;  %v668_v48 = vrot.slane %v8659_v19, 7  ;;  %v670_v1 = vrot.slane %v8660_v32, 6  ;;  %v319_v22 = vsel %vm217_vm3, %v318_v45, %v317_v20  ;;  %v8663_v23 = vld [vmem:[#allocation16_spill] sm:$0xff]  ;;  %v8664_v28 = vld [vmem:[#allocation23_spill] sm:$0xff] }
  0x6d   :  { %5312 = vmatprep.mubr.f32.mxu0 %v311_v26  ;;  %v666_v57 = vsel %vm208_vm0, %v665_v11, %v664_v50  ;;  %v672_v21 = vrot.slane %v8661_v53, 5  ;;  %v674_v41 = vrot.slane %v8662_v17, 4  ;;  %v321_v55 = vsel %vm220_vm4, %v320_v29, %v319_v22 }
  0x6e   :  { %v667_v3 = vsel %vm211_vm1, %v8663_v23, %v666_v57  ;;  %v676_v59 = vrot.slane %v8664_v28, 3  ;;  %v889_v26 = vrot.slane %v8657_v34, 3  ;;  %v323_v45 = vsel %vm223_vm5, %v322_v25, %v321_v55 }
  0x6f   :  { %v669_v20 = vsel %vm214_vm2, %v668_v48, %v667_v3  ;;  %v890_v11 = vrot.slane %v8658_v7, 2  ;;  %v892_v50 = vrot.slane %v8663_v23, 1  ;;  %v325_v40 = vsel %vm226_vm6, %v324_v18, %v323_v45  ;;  %v8665_v18 = vld [vmem:[#allocation29_spill] sm:$0xff] }
  0x70   :  { %v671_v29 = vsel %vm217_vm3, %v670_v1, %v669_v20  ;;  %v895_v31 = vrot.slane %v8660_v32, 7  ;;  %v897_v22 = vrot.slane %v8661_v53, 6  ;;  %5313 = vmatmul.mubr.f32.gmra.mrb[6].mxu0 %v325_v40  ;;  %v899_v55 = vrot.slane %v8662_v17, 5  ;;  %v8666_v1 = vld [vmem:[#allocation24_spill] sm:$0xff]  ;;  %v8667_v53 = vld [vmem:[#allocation26_spill] sm:$0xff] }
  0x71   :  { %v673_v57 = vsel %vm220_vm4, %v672_v21, %v671_v29  ;;  %v891_v34 = vsel %vm208_vm0, %v890_v11, %v889_v26  ;;  %v901_v48 = vrot.slane %v8664_v28, 4  ;;  %v678_v23 = vrot.slane %v8665_v18, 2  ;;  %v8668_v26 = vld [vmem:[#allocation27_spill] sm:$0xff]  ;;  %v8669_v28 = vld [vmem:[#allocation28_spill] sm:$0xff]  ;;  %v8670_v11 = vld [vmem:[#allocation30_spill] sm:$0xff] }
  0x72   :  { %v675_v25 = vsel %vm223_vm5, %v674_v41, %v673_v57  ;;  %v893_v7 = vsel %vm211_vm1, %v892_v50, %v891_v34  ;;  %v679_v3 = vrot.slane %v8666_v1, 1  ;;  %v682_v21 = vrot.slane %v8667_v53, 7  ;;  %v8671_v57 = vld [vmem:[#allocation25_spill] sm:$0xff]  ;;  %v8672_v34 = vld [vmem:[#allocation31_spill] sm:$0xff] }
  0x73   :  { %v677_v32 = vsel %vm226_vm6, %v676_v59, %v675_v25  ;;  %v894_v40 = vsel %vm214_vm2, %v8659_v19, %v893_v7  ;;  %v684_v45 = vrot.slane %v8668_v26, 6  ;;  %v686_v20 = vrot.slane %v8669_v28, 5 }
  0x74   :  { %5391 = vmatprep.mubr.f32.mxu0 %v677_v32  ;;  %v896_v17 = vsel %vm217_vm3, %v895_v31, %v894_v40  ;;  %v680_v41 = vsel %vm208_vm0, %v679_v3, %v678_v23  ;;  %v688_v50 = vrot.slane %v8670_v11, 4  ;;  %v690_v19 = vrot.slane %v8672_v34, 3 }
  0x75   :  { %v898_v29 = vsel %vm220_vm4, %v897_v22, %v896_v17  ;;  %v681_v59 = vsel %vm211_vm1, %v8671_v57, %v680_v41  ;;  %v903_v25 = vrot.slane %v8665_v18, 3  ;;  %v904_v31 = vrot.slane %v8666_v1, 2 }
  0x76   :  { %v900_v7 = vsel %vm223_vm5, %v899_v55, %v898_v29  ;;  %v683_v32 = vsel %vm214_vm2, %v682_v21, %v681_v59  ;;  %v906_v23 = vrot.slane %v8671_v57, 1  ;;  %v909_v22 = vrot.slane %v8668_v26, 7 }
  0x77   :  { %v902_v3 = vsel %vm226_vm6, %v901_v48, %v900_v7  ;;  %v685_v40 = vsel %vm217_vm3, %v684_v45, %v683_v32  ;;  %v911_v17 = vrot.slane %v8669_v28, 6  ;;  %v905_v18 = vsel %vm208_vm0, %v904_v31, %v903_v25 }
  0x78   :  { %5435 = vmatprep.mubr.f32.mxu1 %v902_v3  ;;  %v687_v41 = vsel %vm220_vm4, %v686_v20, %v685_v40  ;;  %v913_v55 = vrot.slane %v8670_v11, 5  ;;  %v915_v21 = vrot.slane %v8672_v34, 4  ;;  %v907_v29 = vsel %vm211_vm1, %v906_v23, %v905_v18 }
  0x79   :  { %v689_v1 = vsel %vm223_vm5, %v688_v50, %v687_v41  ;;  %v692_v48 = vrot.slane %v6349_v10, 2  ;;  %v693_v45 = vrot.slane %v6367_v35, 1  ;;  %v908_v28 = vsel %vm214_vm2, %v8667_v53, %v907_v29 }
  0x7a   :  { %v691_v26 = vsel %vm226_vm6, %v690_v19, %v689_v1  ;;  %v696_v20 = vrot.slane %v6359_v16, 7  ;;  %v698_v57 = vrot.slane %v6369_v36, 6  ;;  %v910_v11 = vsel %vm217_vm3, %v909_v22, %v908_v28 }
  0x7b   :  { %5392 = vmatmul.mubr.f32.vlgmr.msra.gmra.mrb[8].mxu0 %v691_v26  ;;  %v694_v50 = vsel %vm208_vm0, %v693_v45, %v692_v48  ;;  %v700_v59 = vrot.slane %v6371_v37, 5  ;;  %v702_v34 = vrot.slane %v6377_v43, 4  ;;  %v912_v25 = vsel %vm220_vm4, %v911_v17, %v910_v11 }
  0x7c   :  { %v695_v19 = vsel %vm211_vm1, %v6357_v15, %v694_v50  ;;  %v704_v53 = vrot.slane %v6384_v49, 3  ;;  %v706_v7 = vrot.slane %v6386_v52, 2  ;;  %v914_v32 = vsel %vm223_vm5, %v913_v55, %v912_v25 }
  0x7d   :  { %v697_v31 = vsel %vm214_vm2, %v696_v20, %v695_v19  ;;  %v707_v23 = vrot.slane %v6396_v58, 1  ;;  %v710_v3 = vrot.slane %v6400_v62, 7  ;;  %v916_v40 = vsel %vm226_vm6, %v915_v21, %v914_v32 }
  0x7e   :  { %v699_v22 = vsel %vm217_vm3, %v698_v57, %v697_v31  ;;  %v712_v17 = vrot.slane %v6408_v5, 6  ;;  %v714_v41 = vrot.slane %v6415_v12, 5  ;;  %5436 = vmatmul.mubr.f32.vlgmr.msra.gmra.mrb[8].mxu1 %v916_v40  ;;  %v716_v55 = vrot.slane %v6417_v13, 4 }
  0x7f   :  { %v701_v18 = vsel %vm220_vm4, %v700_v59, %v699_v22  ;;  %v708_v1 = vsel %vm208_vm0, %v707_v23, %v706_v7  ;;  %v718_v29 = vrot.slane %v6422_v33, 3  ;;  %v917_v45 = vrot.slane %v6349_v10, 3 }
  0x80   :  { %v703_v48 = vsel %vm223_vm5, %v702_v34, %v701_v18  ;;  %v709_v21 = vsel %vm211_vm1, %v6398_v61, %v708_v1  ;;  %v918_v26 = vrot.slane %v6367_v35, 2  ;;  %v920_v57 = vrot.slane %v6357_v15, 1 }
  0x81   :  { %v705_v28 = vsel %vm226_vm6, %v704_v53, %v703_v48  ;;  %v711_v20 = vsel %vm214_vm2, %v710_v3, %v709_v21  ;;  %v923_v11 = vrot.slane %v6369_v36, 7  ;;  %v925_v34 = vrot.slane %v6371_v37, 6 }
  0x82   :  { %5394 = vmatprep.mubr.f32.mxu0 %v705_v28  ;;  %v713_v50 = vsel %vm217_vm3, %v712_v17, %v711_v20  ;;  %v919_v59 = vsel %vm208_vm0, %v918_v26, %v917_v45  ;;  %v927_v25 = vrot.slane %v6377_v43, 5  ;;  %v929_v19 = vrot.slane %v6384_v49, 4 }
  0x83   :  { %v715_v10 = vsel %vm220_vm4, %v714_v41, %v713_v50  ;;  %v921_v35 = vsel %vm211_vm1, %v920_v57, %v919_v59  ;;  %v931_v53 = vrot.slane %v6386_v52, 3  ;;  %v932_v7 = vrot.slane %v6396_v58, 2 }
  0x84   :  { %v717_v15 = vsel %vm223_vm5, %v716_v55, %v715_v10  ;;  %v922_v36 = vsel %vm214_vm2, %v6359_v16, %v921_v35  ;;  %v934_v32 = vrot.slane %v6398_v61, 1  ;;  %v937_v31 = vrot.slane %v6408_v5, 7 }
  0x85   :  { %v719_v37 = vsel %vm226_vm6, %v718_v29, %v717_v15  ;;  %v924_v43 = vsel %vm217_vm3, %v923_v11, %v922_v36  ;;  %v939_v23 = vrot.slane %v6415_v12, 6  ;;  %v933_v52 = vsel %vm208_vm0, %v932_v7, %v931_v53 }
  0x86   :  { %5395 = vmatmul.mubr.f32.gmra.mrb[10].mxu0 %v719_v37  ;;  %v926_v49 = vsel %vm220_vm4, %v925_v34, %v924_v43  ;;  %v941_v3 = vrot.slane %v6417_v13, 5  ;;  %v943_v16 = vrot.slane %v6422_v33, 4  ;;  %v935_v61 = vsel %vm211_vm1, %v934_v32, %v933_v52 }
  0x87   :  { %v928_v58 = vsel %vm223_vm5, %v927_v25, %v926_v49  ;;  %v720_v40 = vrot.slane %v6425_v38, 2  ;;  %v721_v22 = vrot.slane %v6433_v46, 1  ;;  %v936_v12 = vsel %vm214_vm2, %v6400_v62, %v935_v61 }
  0x88   :  { %v930_v5 = vsel %vm226_vm6, %v929_v19, %v928_v58  ;;  %v724_v17 = vrot.slane %v6437_v54, 7  ;;  %v726_v41 = vrot.slane %v6448_v2, 6  ;;  %v938_v13 = vsel %vm217_vm3, %v937_v31, %v936_v12 }
  0x89   :  { %5438 = vmatprep.mubr.f32.mxu1 %v930_v5  ;;  %v722_v33 = vsel %vm208_vm0, %v721_v22, %v720_v40  ;;  %v728_v18 = vrot.slane %v6450_v6, 5  ;;  %v730_v1 = vrot.slane %v6456_v39, 4  ;;  %v940_v55 = vsel %vm220_vm4, %v939_v23, %v938_v13 }
  0x8a   :  { %v723_v29 = vsel %vm211_vm1, %v6435_v47, %v722_v33  ;;  %v732_v62 = vrot.slane %v6458_v4, 3  ;;  %v734_v48 = vrot.slane %v6464_v60, 2  ;;  %v942_v21 = vsel %vm223_vm5, %v941_v3, %v940_v55  ;;  %v8673_v33 = vld [vmem:[#allocation39_spill] sm:$0xff] }
  0x8b   :  { %v725_v45 = vsel %vm214_vm2, %v724_v17, %v723_v29  ;;  %v735_v26 = vrot.slane %v6476_v63, 1  ;;  %v738_v28 = vrot.slane %v6478_v8, 7  ;;  %v944_v20 = vsel %vm226_vm6, %v943_v16, %v942_v21  ;;  %v8674_v55 = vld [vmem:[#allocation35_spill] sm:$0xff] }
  0x8c   :  { %v727_v57 = vsel %vm217_vm3, %v726_v41, %v725_v45  ;;  %v740_v11 = vrot.slane %v6480_v14, 6  ;;  %v742_v50 = vrot.slane %v8647_v30, 5  ;;  %5439 = vmatmul.mubr.f32.gmra.mrb[10].mxu1 %v944_v20  ;;  %v744_v25 = vrot.slane %v6491_v51, 4 }
  0x8d   :  { %v729_v59 = vsel %vm220_vm4, %v728_v18, %v727_v57  ;;  %v736_v34 = vsel %vm208_vm0, %v735_v26, %v734_v48  ;;  %v746_v10 = vrot.slane %v8648_v0, 3  ;;  %v945_v53 = vrot.slane %v6425_v38, 3  ;;  %v8676_v48 = vld [vmem:[#allocation41_spill] sm:$0xff]  ;;  %v8678_v57 = vld [vmem:[#allocation44_spill] sm:$0xff] }
  0x8e   :  { %v731_v35 = vsel %vm223_vm5, %v730_v1, %v729_v59  ;;  %v737_v19 = vsel %vm211_vm1, %v6466_v9, %v736_v34  ;;  %v946_v15 = vrot.slane %v6433_v46, 2  ;;  %v948_v32 = vrot.slane %v6435_v47, 1  ;;  %v8679_v34 = vld [vmem:[#allocation45_spill] sm:$0xff] }
  0x8f   :  { %v733_v36 = vsel %vm226_vm6, %v732_v62, %v731_v35  ;;  %v739_v7 = vsel %vm214_vm2, %v738_v28, %v737_v19  ;;  %v951_v37 = vrot.slane %v6448_v2, 7  ;;  %v953_v23 = vrot.slane %v6450_v6, 6  ;;  %v8675_v62 = vld [vmem:[#allocation40_spill] sm:$0xff]  ;;  %v8677_v28 = vld [vmem:[#allocation42_spill] sm:$0xff] }
  0x90   :  { %5397 = vmatprep.mubr.f32.mxu0 %v733_v36  ;;  %v741_v43 = vsel %vm217_vm3, %v740_v11, %v739_v7  ;;  %v947_v31 = vsel %vm208_vm0, %v946_v15, %v945_v53  ;;  %v955_v49 = vrot.slane %v6456_v39, 5  ;;  %v957_v52 = vrot.slane %v6458_v4, 4  ;;  %v8681_v15 = vld [vmem:[#allocation47_spill] sm:$0xff]  ;;  %v8682_v7 = vld [vmem:[#allocation48_spill] sm:$0xff] }
  0x91   :  { %v743_v38 = vsel %vm220_vm4, %v742_v50, %v741_v43  ;;  %v949_v46 = vsel %vm211_vm1, %v948_v32, %v947_v31  ;;  %v959_v3 = vrot.slane %v6464_v60, 3  ;;  %v960_v16 = vrot.slane %v6476_v63, 2  ;;  %v8683_v43 = vld [vmem:[#allocation43_spill] sm:$0xff] }
  0x92   :  { %v745_v47 = vsel %vm223_vm5, %v744_v25, %v743_v38  ;;  %v950_v2 = vsel %vm214_vm2, %v6437_v54, %v949_v46  ;;  %v962_v58 = vrot.slane %v6466_v9, 1  ;;  %v965_v61 = vrot.slane %v6480_v14, 7 }
  0x93   :  { %v747_v6 = vsel %vm226_vm6, %v746_v10, %v745_v47  ;;  %v952_v39 = vsel %vm217_vm3, %v951_v37, %v950_v2  ;;  %v967_v40 = vrot.slane %v8647_v30, 6  ;;  %v961_v4 = vsel %vm208_vm0, %v960_v16, %v959_v3  ;;  %v8680_v10 = vld [vmem:[#allocation46_spill] sm:$0xff] }
  0x94   :  { %5398 = vmatmul.mubr.f32.gmra.mrb[12].mxu0 %v747_v6  ;;  %v954_v60 = vsel %vm220_vm4, %v953_v23, %v952_v39  ;;  %v969_v22 = vrot.slane %v6491_v51, 5  ;;  %v971_v54 = vrot.slane %v8648_v0, 4  ;;  %v963_v9 = vsel %vm211_vm1, %v962_v58, %v961_v4 }
  0x95   :  { %v956_v63 = vsel %vm223_vm5, %v955_v49, %v954_v60  ;;  %v748_v5 = vrot.slane %v8651_v56, 2  ;;  %v749_v12 = vrot.slane %v6505_v24, 1  ;;  %v964_v30 = vsel %vm214_vm2, %v6478_v8, %v963_v9 }
  0x96   :  { %v958_v14 = vsel %vm226_vm6, %v957_v52, %v956_v63  ;;  %v752_v17 = vrot.slane %v8649_v27, 7  ;;  %v754_v41 = vrot.slane %v8652_v42, 6  ;;  %v966_v51 = vsel %vm217_vm3, %v965_v61, %v964_v30 }
  0x97   :  { %5441 = vmatprep.mubr.f32.mxu1 %v958_v14  ;;  %v750_v0 = vsel %vm208_vm0, %v749_v12, %v748_v5  ;;  %v756_v13 = vrot.slane %v8653_v44, 5  ;;  %v758_v18 = vrot.slane %v8673_v33, 4  ;;  %v968_v1 = vsel %vm220_vm4, %v967_v40, %v966_v51 }
  0x98   :  { %v751_v29 = vsel %vm211_vm1, %v8674_v55, %v750_v0  ;;  %v760_v8 = vrot.slane %v8675_v62, 3  ;;  %v762_v21 = vrot.slane %v8676_v48, 2  ;;  %v970_v45 = vsel %vm223_vm5, %v969_v22, %v968_v1 }
  0x99   :  { %v753_v26 = vsel %vm214_vm2, %v752_v17, %v751_v29  ;;  %v763_v20 = vrot.slane %v8677_v28, 1  ;;  %v766_v11 = vrot.slane %v8678_v57, 7  ;;  %v972_v50 = vsel %vm226_vm6, %v971_v54, %v970_v45 }
  0x9a   :  { %v755_v59 = vsel %vm217_vm3, %v754_v41, %v753_v26  ;;  %v768_v25 = vrot.slane %v8679_v34, 6  ;;  %v770_v35 = vrot.slane %v8680_v10, 5  ;;  %5442 = vmatmul.mubr.f32.gmra.mrb[12].mxu1 %v972_v50  ;;  %v772_v36 = vrot.slane %v8681_v15, 4 }
  0x9b   :  { %v757_v19 = vsel %vm220_vm4, %v756_v13, %v755_v59  ;;  %v764_v53 = vsel %vm208_vm0, %v763_v20, %v762_v21  ;;  %v774_v32 = vrot.slane %v8682_v7, 3  ;;  %v973_v23 = vrot.slane %v8651_v56, 3 }
  0x9c   :  { %v759_v37 = vsel %vm223_vm5, %v758_v18, %v757_v19  ;;  %v765_v31 = vsel %vm211_vm1, %v8683_v43, %v764_v53  ;;  %v974_v49 = vrot.slane %v6505_v24, 2  ;;  %v976_v52 = vrot.slane %v8674_v55, 1 }
  0x9d   :  { %v761_v38 = vsel %vm226_vm6, %v760_v8, %v759_v37  ;;  %v767_v46 = vsel %vm214_vm2, %v766_v11, %v765_v31  ;;  %v979_v3 = vrot.slane %v8652_v42, 7  ;;  %v981_v16 = vrot.slane %v8653_v44, 6 }
  0x9e   :  { %5400 = vmatprep.mubr.f32.mxu0 %v761_v38  ;;  %v769_v47 = vsel %vm217_vm3, %v768_v25, %v767_v46  ;;  %v975_v2 = vsel %vm208_vm0, %v974_v49, %v973_v23  ;;  %v983_v58 = vrot.slane %v8673_v33, 5  ;;  %v985_v6 = vrot.slane %v8675_v62, 4  ;;  %v61_v33 = vld [vmem:[%s8479_s6] sm:$0xff] }
  0x9f   :  { %v771_v56 = vsel %vm220_vm4, %v770_v35, %v769_v47  ;;  %v977_v24 = vsel %vm211_vm1, %v976_v52, %v975_v2  ;;  %v987_v39 = vrot.slane %v8676_v48, 3  ;;  %v988_v40 = vrot.slane %v8677_v28, 2 }
  0xa0   :  { %v773_v61 = vsel %vm223_vm5, %v772_v36, %v771_v56  ;;  %v978_v42 = vsel %vm214_vm2, %v8649_v27, %v977_v24  ;;  %v990_v60 = vrot.slane %v8683_v43, 1  ;;  %v993_v22 = vrot.slane %v8679_v34, 7 }
  0xa1   :  { %v775_v44 = vsel %vm226_vm6, %v774_v32, %v773_v61  ;;  %v980_v4 = vsel %vm217_vm3, %v979_v3, %v978_v42  ;;  %v989_v63 = vsel %vm208_vm0, %v988_v40, %v987_v39  ;;  %v995_v9 = vrot.slane %v8680_v10, 6 }
  0xa2   :  { %5401 = vmatmul.mubr.f32.gmra.mrb[14].mxu0 %v775_v44  ;;  %v982_v54 = vsel %vm220_vm4, %v981_v16, %v980_v4  ;;  %v991_v27 = vsel %vm211_vm1, %v990_v60, %v989_v63  ;;  %v997_v12 = vrot.slane %v8681_v15, 5  ;;  %v999_v17 = vrot.slane %v8682_v7, 4  ;;  %v1251_v44 = vld [vmem:[%s8474_s1 + $0x8] sm:$0xff] }
  0xa3   :  { %v984_v5 = vsel %vm223_vm5, %v983_v58, %v982_v54  ;;  %v992_v30 = vsel %vm214_vm2, %v8678_v57, %v991_v27  ;;  %v1238_v18 = vrot.slane %v61_v33, 7 }
  0xa4   :  { %v986_v14 = vsel %vm226_vm6, %v985_v6, %v984_v5  ;;  %v994_v41 = vsel %vm217_vm3, %v993_v22, %v992_v30 }
  0xa5   :  { %5444 = vmatprep.mubr.f32.mxu1 %v986_v14  ;;  %v996_v51 = vsel %vm220_vm4, %v995_v9, %v994_v41  ;;  %5857 = vpush %v1238_v18  ;;  %v1250_v14 = vld [vmem:[%s8474_s1] sm:$0xff] }
  0xa6   :  { %v998_v0 = vsel %vm223_vm5, %v997_v12, %v996_v51 }
  0xa7   :  { %v1000_v13 = vsel %vm226_vm6, %v999_v17, %v998_v0 }
  0xa8   :  { %5445 = vmatmul.mubr.f32.gmra.mrb[14].mxu1 %v1000_v13 }
  0xd6   :  { %s5858_s24 = spop %5857 }
  0xd7   :  { %v6974_v61 = vstv %s5858_s24 }
 0x11f   :  { %v6952_v1 = vpop.f32.mrb[0].mxu0  ;;  %v5349_v55 = vpop.f32.mrb[0].mxu1 }
 0x120   :  { %1124 = vrot.lane.b32.xlu0 %v5349_v55, %s6163_s21  ;;  %v6954_v29 = vpop.f32.mrb[1].mxu0  ;;  %v625_v62 = vpop.f32.mrb[1].mxu1 }
 0x123   :  { %v5352_v8 = vpop.f32.mrb[2].mxu1 }
 0x124   :  { %1122 = vrot.lane.b32.xlu0 %v625_v62, %s6163_s21  ;;  %1128 = vrot.lane.b32.xlu1 %v5352_v8, %s6163_s21  ;;  %v635_v48 = vpop.f32.mrb[3].mxu1  ;;  %v1253_v62 = vld [vmem:[%s8474_s1 + $0x18] sm:$0xff] }
 0x127   :  { %v5355_v21 = vpop.f32.mrb[4].mxu1 }
 0x128   :  { %1126 = vrot.lane.b32.xlu0 %v635_v48, %s6163_s21  ;;  %1132 = vrot.lane.b32.xlu1 %v5355_v21, %s6163_s21  ;;  %v645_v45 = vpop.f32.mrb[5].mxu1 }
 0x12c   :  { %1130 = vrot.lane.b32.xlu0 %v645_v45, %s6163_s21  ;;  %v1252_v45 = vld [vmem:[%s8474_s1 + $0x10] sm:$0xff] }
 0x12e   :  { %v5358_v26 = vpop.f32.mrb[6].mxu1 }
 0x12f   :  { %1136 = vrot.lane.b32.xlu1 %v5358_v26, %s6163_s21  ;;  %v655_v28 = vpop.f32.mrb[7].mxu1 }
 0x130   :  { %1134 = vrot.lane.b32.xlu0 %v655_v28, %s6163_s21 }
 0x135   :  { %v6956_v20 = vpop.f32.mrb[2].mxu0 }
 0x136   :  { %v6958_v57 = vpop.f32.mrb[3].mxu0 }
 0x13c   :  { %v6960_v11 = vpop.f32.mrb[4].mxu0 }
 0x13d   :  { %v6962_v50 = vpop.f32.mrb[5].mxu0 }
 0x143   :  { %v6964_v59 = vpop.f32.mrb[6].mxu0 }
 0x144   :  { %v6966_v34 = vpop.f32.mrb[7].mxu0 }
 0x14e   :  { %v5393_v25 = vpop.f32.mrb[8].mxu0 }
 0x14f   :  { %1156 = vrot.lane.b32.xlu1 %v5393_v25, %s6164_s22  ;;  %v850_v10 = vpop.f32.mrb[9].mxu0 }
 0x151   :  { %v5437_v35 = vpop.f32.mrb[8].mxu1 }
 0x152   :  { %v1075_v19 = vpop.f32.mrb[9].mxu1 }
 0x153   :  { %1188 = vrot.lane.b32.xlu1 %v5437_v35, %s6165_s23  ;;  %1186 = vrot.lane.b32.xlu0 %v1075_v19, %s6165_s23 }
 0x157   :  { %1154 = vrot.lane.b32.xlu1 %v850_v10, %s6164_s22 }
 0x159   :  { %v5396_v53 = vpop.f32.mrb[10].mxu0 }
 0x15a   :  { %v860_v15 = vpop.f32.mrb[11].mxu0 }
 0x15b   :  { %1158 = vrot.lane.b32.xlu0 %v860_v15, %s6164_s22  ;;  %1160 = vrot.lane.b32.xlu1 %v5396_v53, %s6164_s22 }
 0x15f   :  { %v5440_v36 = vpop.f32.mrb[10].mxu1 }
 0x160   :  { %v1085_v7 = vpop.f32.mrb[11].mxu1  ;;  %1192 = vrot.lane.b32.xlu1 %v5440_v36, %s6165_s23 }
 0x161   :  { %1190 = vrot.lane.b32.xlu0 %v1085_v7, %s6165_s23 }
 0x167   :  { %v5399_v32 = vpop.f32.mrb[12].mxu0 }
 0x168   :  { %v870_v37 = vpop.f32.mrb[13].mxu0  ;;  %1164 = vrot.lane.b32.xlu1 %v5399_v32, %s6164_s22 }
 0x169   :  { %1162 = vrot.lane.b32.xlu0 %v870_v37, %s6164_s22  ;;  %v1255_v37 = vld [vmem:[%s8474_s1 + $0x28] sm:$0xff] }
 0x16d   :  { %v5443_v43 = vpop.f32.mrb[12].mxu1 }
 0x16e   :  { %v1095_v31 = vpop.f32.mrb[13].mxu1  ;;  %1196 = vrot.lane.b32.xlu1 %v5443_v43, %s6165_s23 }
 0x16f   :  { %1194 = vrot.lane.b32.xlu0 %v1095_v31, %s6165_s23  ;;  %v1254_v31 = vld [vmem:[%s8474_s1 + $0x20] sm:$0xff] }
 0x175   :  { %v5402_v23 = vpop.f32.mrb[14].mxu0 }
 0x176   :  { %v880_v49 = vpop.f32.mrb[15].mxu0  ;;  %1168 = vrot.lane.b32.xlu1 %v5402_v23, %s6164_s22 }
 0x177   :  { %1166 = vrot.lane.b32.xlu0 %v880_v49, %s6164_s22 }
 0x17b   :  { %v5446_v38 = vpop.f32.mrb[14].mxu1 }
 0x17c   :  { %v1105_v46 = vpop.f32.mrb[15].mxu1  ;;  %1200 = vrot.lane.b32.xlu1 %v5446_v38, %s6165_s23 }
 0x17d   :  { %1198 = vrot.lane.b32.xlu0 %v1105_v46, %s6165_s23 }
 0x192   :  { %v1125_v52 = vpop.permute.xlu0 %1124 }
 0x193   :  { %v1212_v6 = vsel %vm1210_vm7, %v6952_v1, %v1125_v52 }
 0x196   :  { %v1129_v3 = vpop.permute.xlu1 %1128  ;;  %v1123_v47 = vpop.permute.xlu0 %1122 }
 0x197   :  { %v1211_v54 = vsel %vm1210_vm7, %v6954_v29, %v1123_v47  ;;  %v1214_v13 = vsel %vm1210_vm7, %v6956_v20, %v1129_v3 }
 0x19a   :  { %v1133_v2 = vpop.permute.xlu1 %1132  ;;  %v1127_v16 = vpop.permute.xlu0 %1126 }
 0x19b   :  { %v1213_v33 = vsel %vm1210_vm7, %v6958_v57, %v1127_v16  ;;  %v1216_v19 = vsel %vm1210_vm7, %v6960_v11, %v1133_v2 }
 0x19e   :  { %v1131_v56 = vpop.permute.xlu0 %1130 }
 0x19f   :  { %v1215_v53 = vsel %vm1210_vm7, %v6962_v50, %v1131_v56 }
 0x1a1   :  { %v6968_v58 = vpop.permute.xlu1 %1136 }
 0x1a2   :  { %v6972_v39 = vpop.permute.xlu0 %1134  ;;  %v1218_v2 = vsel %vm1210_vm7, %v6964_v59, %v6968_v58  ;;  %v1256_v59 = vld [vmem:[%s8474_s1 + $0x30] sm:$0xff] }
 0x1a3   :  { %v1217_v16 = vsel %vm1210_vm7, %v6966_v34, %v6972_v39 }
 0x1c1   :  { %v1157_v24 = vpop.permute.xlu1 %1156 }
 0x1c2   :  { %v1221_v42 = vsel %vm1219_vm8, %v1212_v6, %v1157_v24 }
 0x1c5   :  { %v1189_v40 = vpop.permute.xlu1 %1188  ;;  %v1187_v22 = vpop.permute.xlu0 %1186 }
 0x1c6   :  { %v1230_v60 = vsel %vm1228_vm9, %v1221_v42, %v1189_v40  ;;  %v1257_v40 = vld [vmem:[%s8474_s1 + $0x38] sm:$0xff] }
 0x1c7   :  { %v1243_v4 = vadd.f32 %v6974_v61, %v1230_v60 }
 0x1c9   :  { %v1155_v63 = vpop.permute.xlu1 %1154  ;;  %v6984_v9 = vadd.f32 %v1251_v44, %v1243_v4 }
 0x1ca   :  { %v1220_v5 = vsel %vm1219_vm8, %v1211_v54, %v1155_v63  ;;  %v1437_v63 = vld [vmem:[%s8477_s4] sm:$0xff] }
 0x1cb   :  { %v1229_v27 = vsel %vm1228_vm9, %v1220_v5, %v1187_v22  ;;  %v1270_v12 = vsel %vm1266_vm10, %v6984_v9, -inf  ;;  %v1422_v5 = vld [vmem:[%s8475_s2] sm:$0xff] }
 0x1cc   :  { %v1242_v30 = vadd.f32 %v6974_v61, %v1229_v27  ;;  %1271 = vmax.xlane.f32.xlu1 %v1270_v12  ;;  %v1423_v12 = vld [vmem:[%s8475_s2 + $0x8] sm:$0xff] }
 0x1cd   :  { %v1161_v17 = vpop.permute.xlu1 %1160  ;;  %v1159_v41 = vpop.permute.xlu0 %1158 }
 0x1ce   :  { %v6994_v51 = vadd.f32 %v1250_v14, %v1242_v30  ;;  %v1223_v18 = vsel %vm1219_vm8, %v1214_v13, %v1161_v17  ;;  %v1222_v55 = vsel %vm1219_vm8, %v1213_v33, %v1159_v41  ;;  %v1424_v14 = vld [vmem:[%s8475_s2 + $0x10] sm:$0xff]  ;;  %v1425_v30 = vld [vmem:[%s8475_s2 + $0x18] sm:$0xff]  ;;  %v7090_v17 = vpack.c.bf16 %v1423_v12, %v1422_v5 }
 0x1cf   :  { %v7092_v41 = vpack.c.bf16 %v1425_v30, %v1424_v14 }
 0x1d0   :  { %v1267_v0 = vsel %vm1266_vm10, %v6994_v51, -inf  ;;  %8684 = vst [vmem:[#allocation32_spill] sm:$0xff] %v7090_v17  ;;  %5449 = vmatprep.mubr.msk.bf16.mxu0 %vm2401_vm11, %v7090_v17 }
 0x1d1   :  { %1268 = vmax.xlane.f32.xlu0 %v1267_v0  ;;  %8685 = vst [vmem:[#allocation33_spill] sm:$0xff] %v7092_v41 }
 0x1d2   :  { %v1193_v1 = vpop.permute.xlu1 %1192 }
 0x1d3   :  { %v1191_v29 = vpop.permute.xlu0 %1190  ;;  %v1232_v8 = vsel %vm1228_vm9, %v1223_v18, %v1193_v1 }
 0x1d4   :  { %v1231_v48 = vsel %vm1228_vm9, %v1222_v55, %v1191_v29  ;;  %v1245_v21 = vadd.f32 %v6974_v61, %v1232_v8 }
 0x1d5   :  { %v1244_v26 = vadd.f32 %v6974_v61, %v1231_v48 }
 0x1d6   :  { %v7014_v28 = vadd.f32 %v1253_v62, %v1245_v21 }
 0x1d7   :  { %v7016_v20 = vadd.f32 %v1252_v45, %v1244_v26 }
 0x1d8   :  { %v1276_v57 = vsel %vm1266_vm10, %v7014_v28, -inf }
 0x1d9   :  { %1277 = vmax.xlane.f32.xlu0 %v1276_v57  ;;  %v1273_v35 = vsel %vm1266_vm10, %v7016_v20, -inf }
 0x1da   :  { %v1165_v25 = vpop.permute.xlu1 %1164 }
 0x1db   :  { %v1163_v10 = vpop.permute.xlu0 %1162  ;;  %v1225_v15 = vsel %vm1219_vm8, %v1216_v19, %v1165_v25 }
 0x1dc   :  { %v1224_v7 = vsel %vm1219_vm8, %v1215_v53, %v1163_v10 }
 0x1dd   :  { %1274 = vmax.xlane.f32.xlu0 %v1273_v35 }
 0x1e0   :  { %v1197_v36 = vpop.permute.xlu1 %1196 }
 0x1e1   :  { %v1195_v32 = vpop.permute.xlu0 %1194  ;;  %v1234_v43 = vsel %vm1228_vm9, %v1225_v15, %v1197_v36 }
 0x1e2   :  { %v1233_v11 = vsel %vm1228_vm9, %v1224_v7, %v1195_v32  ;;  %v1247_v50 = vadd.f32 %v6974_v61, %v1234_v43 }
 0x1e3   :  { %v1246_v23 = vadd.f32 %v6974_v61, %v1233_v11 }
 0x1e4   :  { %v7038_v49 = vadd.f32 %v1255_v37, %v1247_v50 }
 0x1e5   :  { %v7040_v38 = vadd.f32 %v1254_v31, %v1246_v23 }
 0x1e6   :  { %v1282_v46 = vsel %vm1266_vm10, %v7038_v49, -inf }
 0x1e7   :  { %v1279_v52 = vsel %vm1266_vm10, %v7040_v38, -inf  ;;  %1283 = vmax.xlane.f32.xlu0 %v1282_v46 }
 0x1e8   :  { %1280 = vmax.xlane.f32.xlu1 %v1279_v52  ;;  %v1169_v3 = vpop.permute.xlu1 %1168 }
 0x1e9   :  { %v1167_v47 = vpop.permute.xlu0 %1166  ;;  %v1227_v56 = vsel %vm1219_vm8, %v1218_v2, %v1169_v3 }
 0x1ea   :  { %v1226_v6 = vsel %vm1219_vm8, %v1217_v16, %v1167_v47 }
 0x1ee   :  { %v1201_v24 = vpop.permute.xlu1 %1200 }
 0x1ef   :  { %v1199_v42 = vpop.permute.xlu0 %1198  ;;  %v1236_v60 = vsel %vm1228_vm9, %v1227_v56, %v1201_v24 }
 0x1f0   :  { %v1235_v58 = vsel %vm1228_vm9, %v1226_v6, %v1199_v42  ;;  %v1249_v34 = vadd.f32 %v6974_v61, %v1236_v60  ;;  %v1426_v60 = vld [vmem:[%s8475_s2 + $0x20] sm:$0xff] }
 0x1f1   :  { %v1248_v39 = vadd.f32 %v6974_v61, %v1235_v58  ;;  %v1438_v61 = vld [vmem:[%s8477_s4 + $0x8] sm:$0xff]  ;;  %v1428_v58 = vld [vmem:[%s8475_s2 + $0x30] sm:$0xff] }
 0x1f2   :  { %v7064_v44 = vadd.f32 %v1257_v40, %v1249_v34  ;;  %v2400_v27 = vpack.c.bf16 %v1438_v61, %v1437_v63  ;;  %v1355_v63 = vlaneseq }
 0x1f3   :  { %v7066_v4 = vadd.f32 %v1256_v59, %v1248_v39  ;;  %v1427_v59 = vld [vmem:[%s8475_s2 + $0x28] sm:$0xff]  ;;  %v1429_v39 = vld [vmem:[%s8475_s2 + $0x38] sm:$0xff] }
 0x1f4   :  { %v1288_v22 = vsel %vm1266_vm10, %v7064_v44, -inf  ;;  %5447 = vmatprep.subr.bf16.mxu0 %v2400_v27  ;;  %v7168_v34 = vpack.c.bf16 %v1427_v59, %v1426_v60  ;;  %v1440_v5 = vshrl.u32 %v1355_v63, 7 }
 0x1f5   :  { %v1285_v54 = vsel %vm1266_vm10, %v7066_v4, -inf  ;;  %1289 = vmax.xlane.f32.xlu0 %v1288_v22  ;;  %5448 = vmatpush3.bf16.msra.mxu0 %v2400_v27  ;;  %v7173_v22 = vpack.c.bf16 %v1429_v39, %v1428_v58 }
 0x1f6   :  { %1286 = vmax.xlane.f32.xlu1 %v1285_v54  ;;  %8686 = vst [vmem:[#allocation36_spill] sm:$0xff] %v7168_v34  ;;  %v7180_v27 = vsub.s32 0, %v1440_v5  ;;  %v7183_v30 = vsub.s32 1, %v1440_v5 }
 0x1f7   :  { %8687 = vst [vmem:[#allocation19_spill] sm:$0xff] %v7173_v22 }
 0x1f8   :  { %5450 = vmatmul.mubr.msk.bf16.vlgmr.msra.gmra.mrb[16].mxu0 %vm2401_vm11, %v7092_v41 }
 0x1f9   :  { %5453 = vmatprep.mubr.msk.bf16.mxu0 %vm2401_vm11, %v7168_v34 }
 0x200   :  { %5454 = vmatmul.mubr.msk.bf16.gmra.mrb[20].mxu0 %vm2401_vm11, %v7173_v22 }
 0x259   :  { %v7098_v0 = vpop.xlane.xlu1 %1271 }
 0x25a   :  { %v1292_v13 = vsub.f32 %v6984_v9, %v7098_v0  ;;  %vm1359_vm13 = vcmp.ge.f32.partialorder %v6984_v9, %v7098_v0 }
 0x25c   :  { %v1301_v33 = vmul.f32 1.442695, %v1292_v13 }
 0x25e   :  { %5872 = vpow2.f32 %v1301_v33  ;;  %v7102_v18 = vpop.xlane.xlu0 %1268 }
 0x25f   :  { %v1291_v1 = vsub.f32 %v6994_v51, %v7102_v18  ;;  %vm1358_vm14 = vcmp.ge.f32.partialorder %v6994_v51, %v7102_v18 }
 0x261   :  { %v1299_v55 = vmul.f32 1.442695, %v1291_v1 }
 0x263   :  { %5874 = vpow2.f32 %v1299_v55  ;;  %v7186_v55 = vsub.s32 2, %v1440_v5 }
 0x265   :  { %8688 = vst [vmem:[#allocation34_spill] sm:$0xff] %v7186_v55 }
 0x266   :  { %v7106_v29 = vpop.xlane.xlu0 %1277 }
 0x267   :  { %v1294_v8 = vsub.f32 %v7014_v28, %v7106_v29  ;;  %vm1361_vm15 = vcmp.ge.f32.partialorder %v7014_v28, %v7106_v29 }
 0x268   :  { %v7108_v62 = vpop.eup %5872 }
 0x269   :  { %v1318_v48 = vsel %vm1266_vm10, %v7108_v62, 0.0  ;;  %v1305_v21 = vmul.f32 1.442695, %v1294_v8 }
 0x26a   :  { %1319 = vadd.xlane.f32.xlu0 %v1318_v48  ;;  %v7114_v45 = vpop.xlane.xlu0 %1274 }
 0x26b   :  { %5876 = vpow2.f32 %v1305_v21  ;;  %v1293_v26 = vsub.f32 %v7016_v20, %v7114_v45  ;;  %vm1360_vm7 = vcmp.ge.f32.partialorder %v7016_v20, %v7114_v45 }
 0x26d   :  { %v5875_v57 = vpop.eup %5874  ;;  %v1303_v25 = vmul.f32 1.442695, %v1293_v26  ;;  %v7191_v26 = vsub.s32 3, %v1440_v5 }
 0x26e   :  { %v1315_v10 = vsel %vm1266_vm10, %v5875_v57, 0.0 }
 0x26f   :  { %1316 = vadd.xlane.f32.xlu1 %v1315_v10  ;;  %5878 = vpow2.f32 %v1303_v25  ;;  %8689 = vst [vmem:[#allocation37_spill] sm:$0xff] %v7191_v26  ;;  %v7195_v10 = vsub.s32 4, %v1440_v5 }
 0x271   :  { %8690 = vst [vmem:[#allocation38_spill] sm:$0xff] %v7195_v10 }
 0x274   :  { %v7119_v35 = vpop.xlane.xlu0 %1283 }
 0x275   :  { %v7121_v19 = vpop.eup %5876  ;;  %v7123_v53 = vpop.xlane.xlu1 %1280  ;;  %v1296_v15 = vsub.f32 %v7038_v49, %v7119_v35  ;;  %vm1363_vm8 = vcmp.ge.f32.partialorder %v7038_v49, %v7119_v35 }
 0x276   :  { %v1295_v36 = vsub.f32 %v7040_v38, %v7123_v53  ;;  %v1324_v7 = vsel %vm1266_vm10, %v7121_v19, 0.0  ;;  %vm1362_vm9 = vcmp.ge.f32.partialorder %v7040_v38, %v7123_v53 }
 0x277   :  { %v1309_v32 = vmul.f32 1.442695, %v1296_v15  ;;  %1325 = vadd.xlane.f32.xlu0 %v1324_v7  ;;  %v7199_v7 = vsub.s32 5, %v1440_v5 }
 0x278   :  { %v1307_v37 = vmul.f32 1.442695, %v1295_v36 }
 0x279   :  { %v7131_v43 = vpop.eup %5878  ;;  %5880 = vpow2.f32 %v1309_v32  ;;  %8691 = vst [vmem:[#allocation20_spill] sm:$0xff] %v7199_v7 }
 0x27a   :  { %5882 = vpow2.f32 %v1307_v37  ;;  %v1321_v31 = vsel %vm1266_vm10, %v7131_v43, 0.0 }
 0x27b   :  { %1322 = vadd.xlane.f32.xlu1 %v1321_v31 }
 0x282   :  { %v7135_v11 = vpop.xlane.xlu0 %1289 }
 0x283   :  { %v7137_v50 = vpop.eup %5880  ;;  %v7139_v23 = vpop.xlane.xlu1 %1286  ;;  %v1298_v46 = vsub.f32 %v7064_v44, %v7135_v11 }
 0x284   :  { %v7143_v52 = vpop.eup %5882  ;;  %v1297_v3 = vsub.f32 %v7066_v4, %v7139_v23  ;;  %v1330_v47 = vsel %vm1266_vm10, %v7137_v50, 0.0 }
 0x285   :  { %v1313_v2 = vmul.f32 1.442695, %v1298_v46  ;;  %v1327_v16 = vsel %vm1266_vm10, %v7143_v52, 0.0  ;;  %1331 = vadd.xlane.f32.xlu0 %v1330_v47  ;;  %v7203_v46 = vsub.s32 6, %v1440_v5 }
 0x286   :  { %v1311_v56 = vmul.f32 1.442695, %v1297_v3  ;;  %1328 = vadd.xlane.f32.xlu1 %v1327_v16 }
 0x287   :  { %5884 = vpow2.f32 %v1313_v2  ;;  %8692 = vst [vmem:[#allocation14_spill] sm:$0xff] %v7203_v46  ;;  %v7207_v2 = vsub.s32 7, %v1440_v5 }
 0x288   :  { %5886 = vpow2.f32 %v1311_v56 }
 0x289   :  { %8693 = vst [vmem:[#allocation15_spill] sm:$0xff] %v7207_v2 }
 0x291   :  { %v7151_v24 = vpop.eup %5884 }
 0x292   :  { %v7153_v6 = vpop.eup %5886  ;;  %v1336_v42 = vsel %vm1266_vm10, %v7151_v24, 0.0 }
 0x293   :  { %v1333_v40 = vsel %vm1266_vm10, %v7153_v6, 0.0  ;;  %1337 = vadd.xlane.f32.xlu0 %v1336_v42 }
 0x294   :  { %1334 = vadd.xlane.f32.xlu1 %v1333_v40 }
 0x2f7   :  { %v1320_v54 = vpop.xlane.xlu0 %1319 }
 0x2f8   :  { %5888 = vrcp.f32 %v1320_v54 }
 0x2fc   :  { %v1317_v61 = vpop.xlane.xlu1 %1316 }
 0x2fd   :  { %5890 = vrcp.f32 %v1317_v61 }
 0x302   :  { %v5889_v12 = vpop.eup %5888 }
 0x303   :  { %v1342_v14 = vmul.f32 %v5889_v12, %v7108_v62 }
 0x305   :  { %v1498_v13 = vrot.slane %v1342_v14, %v7180_v27  ;;  %v1505_v8 = vrot.slane %v1342_v14, %v7183_v30  ;;  %v1512_v21 = vrot.slane %v1342_v14, %v7186_v55  ;;  %v1519_v25 = vrot.slane %v1342_v14, %v7191_v26 }
 0x306   :  { %v1526_v36 = vrot.slane %v1342_v14, %v7195_v10  ;;  %v1533_v31 = vrot.slane %v1342_v14, %v7199_v7  ;;  %v1540_v47 = vrot.slane %v1342_v14, %v7203_v46  ;;  %v1547_v42 = vrot.slane %v1342_v14, %v7207_v2 }
 0x307   :  { %v5891_v33 = vpop.eup %5890  ;;  %1500 = vbcast.lane.b32.xlu1 %v1498_v13, 256  ;;  %v7221_v13 = vpop.f32.mrb[16].mxu0 }
 0x308   :  { %v1340_v1 = vmul.f32 %v5891_v33, %v5875_v57  ;;  %v1326_v57 = vpop.xlane.xlu0 %1325  ;;  %v1323_v32 = vpop.xlane.xlu1 %1322 }
 0x309   :  { %5892 = vrcp.f32 %v1326_v57 }
 0x30a   :  { %v1449_v48 = vrot.slane %v1340_v1, %v7183_v30  ;;  %v1456_v62 = vrot.slane %v1340_v1, %v7186_v55  ;;  %v1463_v15 = vrot.slane %v1340_v1, %v7191_v26  ;;  %v1470_v37 = vrot.slane %v1340_v1, %v7195_v10 }
 0x30b   :  { %1507 = vbcast.lane.b32.xlu1 %v1505_v8, 256  ;;  %5894 = vrcp.f32 %v1323_v32  ;;  %v1477_v3 = vrot.slane %v1340_v1, %v7199_v7  ;;  %v1484_v16 = vrot.slane %v1340_v1, %v7203_v46  ;;  %v1491_v60 = vrot.slane %v1340_v1, %v7207_v2 }
 0x30c   :  { %1451 = vbcast.lane.b32.xlu0 %v1449_v48, 256  ;;  %v1442_v58 = vrot.slane %v1340_v1, %v7180_v27  ;;  %v7224_v1 = vpop.f32.mrb[17].mxu0 }
 0x30d   :  { %v7226_v8 = vpop.f32.mrb[18].mxu0 }
 0x30e   :  { %v7228_v48 = vpop.f32.mrb[19].mxu0 }
 0x30f   :  { %1514 = vbcast.lane.b32.xlu1 %v1512_v21, 256 }
 0x310   :  { %1458 = vbcast.lane.b32.xlu0 %v1456_v62, 256 }
 0x313   :  { %1521 = vbcast.lane.b32.xlu1 %v1519_v25, 256  ;;  %v5893_v56 = vpop.eup %5892  ;;  %v1329_v62 = vpop.xlane.xlu1 %1328 }
 0x314   :  { %1465 = vbcast.lane.b32.xlu0 %v1463_v15, 256  ;;  %v1346_v40 = vmul.f32 %v5893_v56, %v7121_v19 }
 0x315   :  { %v5895_v59 = vpop.eup %5894 }
 0x316   :  { %v1344_v39 = vmul.f32 %v5895_v59, %v7131_v43  ;;  %v1610_v54 = vrot.slane %v1346_v40, %v7180_v27  ;;  %v1617_v61 = vrot.slane %v1346_v40, %v7183_v30  ;;  %v1624_v19 = vrot.slane %v1346_v40, %v7186_v55  ;;  %v1332_v43 = vpop.xlane.xlu0 %1331 }
 0x317   :  { %1528 = vbcast.lane.b32.xlu1 %v1526_v36, 256  ;;  %v1631_v14 = vrot.slane %v1346_v40, %v7191_v26  ;;  %5896 = vrcp.f32 %v1332_v43  ;;  %v1638_v21 = vrot.slane %v1346_v40, %v7195_v10  ;;  %v1645_v57 = vrot.slane %v1346_v40, %v7199_v7 }
 0x318   :  { %1472 = vbcast.lane.b32.xlu0 %v1470_v37, 256  ;;  %v1554_v5 = vrot.slane %v1344_v39, %v7180_v27  ;;  %v1568_v12 = vrot.slane %v1344_v39, %v7186_v55  ;;  %v1575_v33 = vrot.slane %v1344_v39, %v7191_v26  ;;  %v1582_v25 = vrot.slane %v1344_v39, %v7195_v10 }
 0x319   :  { %5898 = vrcp.f32 %v1329_v62  ;;  %v1589_v15 = vrot.slane %v1344_v39, %v7199_v7  ;;  %v1652_v36 = vrot.slane %v1346_v40, %v7203_v46  ;;  %v1596_v32 = vrot.slane %v1344_v39, %v7203_v46 }
 0x31a   :  { %v1561_v56 = vrot.slane %v1344_v39, %v7183_v30  ;;  %v8554_v59 = vmov 0.0  }
 0x31b   :  { %1535 = vbcast.lane.b32.xlu1 %v1533_v31, 256  ;;  %v1659_v31 = vrot.slane %v1346_v40, %v7207_v2  ;;  %5457 = vmatprep.subr.bf16.mxu1 %v8554_v59 }
 0x31c   :  { %1479 = vbcast.lane.b32.xlu0 %v1477_v3, 256  ;;  %5469 = vmatprep.subr.bf16.mxu0 %v8554_v59 }
 0x31f   :  { %1542 = vbcast.lane.b32.xlu1 %v1540_v47, 256  ;;  %v1603_v47 = vrot.slane %v1344_v39, %v7207_v2 }
 0x320   :  { %1486 = vbcast.lane.b32.xlu0 %v1484_v16, 256 }
 0x321   :  { %v5897_v37 = vpop.eup %5896 }
 0x322   :  { %v1350_v3 = vmul.f32 %v5897_v37, %v7137_v50 }
 0x323   :  { %1549 = vbcast.lane.b32.xlu1 %v1547_v42, 256  ;;  %v5899_v16 = vpop.eup %5898 }
 0x324   :  { %1493 = vbcast.lane.b32.xlu0 %v1491_v60, 256  ;;  %v1348_v42 = vmul.f32 %v5899_v16, %v7143_v52  ;;  %v1722_v60 = vrot.slane %v1350_v3, %v7180_v27  ;;  %v1729_v50 = vrot.slane %v1350_v3, %v7183_v30  ;;  %v1743_v52 = vrot.slane %v1350_v3, %v7191_v26 }
 0x326   :  { %v1666_v40 = vrot.slane %v1348_v42, %v7180_v27  ;;  %v1680_v39 = vrot.slane %v1348_v42, %v7186_v55  ;;  %v1701_v43 = vrot.slane %v1348_v42, %v7199_v7 }
 0x327   :  { %1444 = vbcast.lane.b32.xlu1 %v1442_v58, 256  ;;  %v1736_v58 = vrot.slane %v1350_v3, %v7186_v55 }
 0x328   :  { %1612 = vbcast.lane.b32.xlu0 %v1610_v54, 256  ;;  %v1338_v54 = vpop.xlane.xlu0 %1337 }
 0x329   :  { %5900 = vrcp.f32 %v1338_v54 }
 0x32b   :  { %1619 = vbcast.lane.b32.xlu1 %v1617_v61, 256  ;;  %v1687_v61 = vrot.slane %v1348_v42, %v7191_v26 }
 0x32c   :  { %1556 = vbcast.lane.b32.xlu0 %v1554_v5, 256  ;;  %v1750_v5 = vrot.slane %v1350_v3, %v7195_v10 }
 0x32f   :  { %1626 = vbcast.lane.b32.xlu1 %v1624_v19, 256  ;;  %v1335_v19 = vpop.xlane.xlu1 %1334 }
 0x330   :  { %1570 = vbcast.lane.b32.xlu0 %v1568_v12, 256  ;;  %v1694_v12 = vrot.slane %v1348_v42, %v7195_v10  ;;  %5902 = vrcp.f32 %v1335_v19 }
 0x333   :  { %1633 = vbcast.lane.b32.xlu1 %v1631_v14, 256  ;;  %v1757_v14 = vrot.slane %v1350_v3, %v7199_v7  ;;  %v5901_v62 = vpop.eup %5900 }
 0x334   :  { %1577 = vbcast.lane.b32.xlu0 %v1575_v33, 256  ;;  %v1764_v33 = vrot.slane %v1350_v3, %v7203_v46 }
 0x337   :  { %1640 = vbcast.lane.b32.xlu1 %v1638_v21, 256  ;;  %v1708_v21 = vrot.slane %v1348_v42, %v7203_v46 }
 0x338   :  { %1584 = vbcast.lane.b32.xlu0 %v1582_v25, 256  ;;  %v1771_v25 = vrot.slane %v1350_v3, %v7207_v2 }
 0x33b   :  { %1647 = vbcast.lane.b32.xlu1 %v1645_v57, 256  ;;  %v7258_v57 = vmul.f32 %v5901_v62, %v7151_v24 }
 0x33c   :  { %1591 = vbcast.lane.b32.xlu0 %v1589_v15, 256  ;;  %v1715_v15 = vrot.slane %v1348_v42, %v7207_v2 }
 0x33d   :  { %v1841_v3 = vrot.slane %v7258_v57, %v7183_v30  ;;  %v1855_v16 = vrot.slane %v7258_v57, %v7191_v26 }
 0x33f   :  { %1654 = vbcast.lane.b32.xlu1 %v1652_v36, 256  ;;  %v5903_v36 = vpop.eup %5902 }
 0x340   :  { %1598 = vbcast.lane.b32.xlu0 %v1596_v32, 256  ;;  %v1673_v32 = vrot.slane %v1348_v42, %v7183_v30  ;;  %v7263_v37 = vmul.f32 %v5903_v36, %v7153_v6  ;;  %v1862_v42 = vrot.slane %v7258_v57, %v7195_v10 }
 0x342   :  { %v1778_v24 = vrot.slane %v7263_v37, %v7180_v27  ;;  %v1792_v6 = vrot.slane %v7263_v37, %v7186_v55  ;;  %v1785_v51 = vrot.slane %v7263_v37, %v7183_v30  ;;  %v1820_v62 = vrot.slane %v7263_v37, %v7203_v46 }
 0x343   :  { %1661 = vbcast.lane.b32.xlu1 %v1659_v31, 256  ;;  %v1834_v31 = vrot.slane %v7258_v57, %v7180_v27  ;;  %v1827_v28 = vrot.slane %v7263_v37, %v7207_v2 }
 0x344   :  { %1605 = vbcast.lane.b32.xlu0 %v1603_v47, 256  ;;  %v1848_v47 = vrot.slane %v7258_v57, %v7186_v55 }
 0x347   :  { %1563 = vbcast.lane.b32.xlu1 %v1561_v56, 256  ;;  %v1799_v56 = vrot.slane %v7263_v37, %v7191_v26 }
 0x348   :  { %1724 = vbcast.lane.b32.xlu0 %v1722_v60, 256  ;;  %v1356_v60 = vand.u32 127, %v1355_v63  ;;  %v5932_v63 = vld [vmem:[#allocation2 + $0x20] sm:$0xf] }
 0x34b   :  { %1731 = vbcast.lane.b32.xlu1 %v1729_v50, 256  ;;  %v1806_v50 = vrot.slane %v7263_v37, %v7195_v10 }
 0x34c   :  { %1668 = vbcast.lane.b32.xlu0 %v1666_v40, 256  ;;  %v7284_v40 = vpop.f32.mrb[20].mxu0 }
 0x34f   :  { %1738 = vbcast.lane.b32.xlu1 %v1736_v58, 256 }
 0x350   :  { %1682 = vbcast.lane.b32.xlu0 %v1680_v39, 256  ;;  %v1869_v39 = vrot.slane %v7258_v57, %v7199_v7 }
 0x353   :  { %1745 = vbcast.lane.b32.xlu1 %v1743_v52, 256  ;;  %v7288_v52 = vcvt.s32.f32 %v1356_v60  ;;  %v5935_v60 = vld [vmem:[#allocation2 + $0x28] sm:$0xf] }
 0x354   :  { %1689 = vbcast.lane.b32.xlu0 %v1687_v61, 256  ;;  %v1813_v61 = vrot.slane %v7263_v37, %v7199_v7 }
 0x355   :  { %v1366_v0 = vsel %vm1358_vm14, %v7288_v52, 4.0  ;;  %v1367_v18 = vsel %vm1359_vm13, %v7288_v52, 4.0  ;;  %vm1365_vm13 = vcmp.ge.f32.partialorder %v7064_v44, %v7135_v11  ;;  %vm1364_vm14 = vcmp.ge.f32.partialorder %v7066_v4, %v7139_v23  ;;  %v5942_v11 = vld [vmem:[#allocation2 + $0x14] sm:$0xf]  ;;  %v5943_v4 = vld [vmem:[#allocation2 + $0x38] sm:$0xf] }
 0x357   :  { %1752 = vbcast.lane.b32.xlu1 %v1750_v5, 256  ;;  %v7296_v5 = vpop.f32.mrb[21].mxu0 }
 0x358   :  { %1696 = vbcast.lane.b32.xlu0 %v1694_v12, 256  ;;  %v7298_v19 = vpop.f32.mrb[22].mxu0 }
 0x35b   :  { %1759 = vbcast.lane.b32.xlu1 %v1757_v14, 256  ;;  %v7301_v14 = vpop.f32.mrb[23].mxu0 }
 0x35c   :  { %1703 = vbcast.lane.b32.xlu0 %v1701_v43, 256  ;;  %v5933_v43 = vld [vmem:[#allocation2 + $0x24] sm:$0xf] }
 0x35f   :  { %1766 = vbcast.lane.b32.xlu1 %v1764_v33, 256 }
 0x360   :  { %1710 = vbcast.lane.b32.xlu0 %v1708_v21, 256 }
 0x363   :  { %1773 = vbcast.lane.b32.xlu1 %v1771_v25, 256 }
 0x364   :  { %1717 = vbcast.lane.b32.xlu0 %v1715_v15, 256  ;;  %v5934_v15 = vld [vmem:[#allocation2 + $0x4] sm:$0xf] }
 0x367   :  { %1675 = vbcast.lane.b32.xlu1 %v1673_v32, 256 }
 0x368   :  { %1836 = vbcast.lane.b32.xlu0 %v1834_v31, 256  ;;  %v7313_v31 = vsel %vm1266_vm10, %v1366_v0, inf }
 0x36b   :  { %1843 = vbcast.lane.b32.xlu1 %v1841_v3, 256  ;;  %v7316_v3 = vsel %vm1266_vm10, %v1367_v18, inf }
 0x36c   :  { %1780 = vbcast.lane.b32.xlu0 %v1778_v24, 256  ;;  %v1369_v24 = vsel %vm1361_vm15, %v7288_v52, 4.0  ;;  %vm2619_vm15 = vcmask 523264  }
 0x36d   :  { %v7339_v0 = vsel %vm1266_vm10, %v1369_v24, inf  ;;  %v5938_v24 = vld [vmem:[#allocation2 + $0xc] sm:$0xf] }
 0x36f   :  { %1850 = vbcast.lane.b32.xlu1 %v1848_v47, 256 }
 0x370   :  { %1794 = vbcast.lane.b32.xlu0 %v1792_v6, 256 }
 0x373   :  { %1857 = vbcast.lane.b32.xlu1 %v1855_v16, 256 }
 0x374   :  { %1801 = vbcast.lane.b32.xlu0 %v1799_v56, 256  ;;  %v1876_v56 = vrot.slane %v7258_v57, %v7203_v46 }
 0x377   :  { %1864 = vbcast.lane.b32.xlu1 %v1862_v42, 256 }
 0x378   :  { %1808 = vbcast.lane.b32.xlu0 %v1806_v50, 256 }
 0x379   :  { %v1501_v58 = vpop.permute.xlu1 %1500 }
 0x37a   :  { %v1895_v54 = vmul.f32 %v5932_v63, %v1501_v58  ;;  %v5936_v63 = vld [vmem:[#allocation2 + $0x8] sm:$0xf] }
 0x37b   :  { %1871 = vbcast.lane.b32.xlu1 %v1869_v39, 256 }
 0x37c   :  { %v2008_v12 = vsel %vm1951_vm12, %v1895_v54, 0.0  ;;  %1815 = vbcast.lane.b32.xlu0 %v1813_v61, 256 }
 0x37d   :  { %v1508_v9 = vpop.permute.xlu1 %1507  ;;  %v2009_v25 = vrot.slane %v2008_v12, 4 }
 0x37e   :  { %v1896_v33 = vmul.f32 %v5933_v43, %v1508_v9  ;;  %v1452_v21 = vpop.permute.xlu0 %1451  ;;  %v1883_v43 = vrot.slane %v7258_v57, %v7207_v2 }
 0x37f   :  { %v1888_v36 = vmul.f32 %v5934_v15, %v1452_v21  ;;  %1787 = vbcast.lane.b32.xlu1 %v1785_v51, 256  ;;  %v2010_v29 = vadd.f32 %v2009_v25, %v2008_v12  ;;  %v1368_v51 = vsel %vm1360_vm7, %v7288_v52, 4.0  ;;  %v5937_v25 = vld [vmem:[#allocation2 + $0x2c] sm:$0xf]  ;;  %v1370_v15 = vsel %vm1362_vm9, %v7288_v52, 4.0 }
 0x380   :  { %v2015_v32 = vsel %vm1951_vm12, %v1896_v33, 0.0  ;;  %1822 = vbcast.lane.b32.xlu0 %v1820_v62, 256  ;;  %v1371_v33 = vsel %vm1363_vm8, %v7288_v52, 4.0  ;;  %v7353_v57 = vsel %vm1266_vm10, %v1368_v51, inf }
 0x381   :  { %v2016_v47 = vrot.slane %v2015_v32, 4  ;;  %v1959_v6 = vsel %vm1951_vm12, %v1888_v36, 0.0  ;;  %v1515_v16 = vpop.permute.xlu1 %1514  ;;  %v2011_v36 = vrot.slane %v2010_v29, 2 }
 0x382   :  { %v1960_v42 = vrot.slane %v1959_v6, 4  ;;  %v1897_v50 = vmul.f32 %v5935_v60, %v1515_v16  ;;  %v1459_v58 = vpop.permute.xlu0 %1458  ;;  %v7357_v16 = vsel %vm1266_vm10, %v1371_v33, inf  ;;  %v7361_v60 = vsel %vm1266_vm10, %v1370_v15, inf }
 0x383   :  { %v2017_v39 = vadd.f32 %v2016_v47, %v2015_v32  ;;  %v1889_v54 = vmul.f32 %v5936_v63, %v1459_v58  ;;  %1878 = vbcast.lane.b32.xlu1 %v1876_v56, 256 }
 0x384   :  { %v1961_v61 = vadd.f32 %v1960_v42, %v1959_v6  ;;  %v2022_v9 = vsel %vm1951_vm12, %v1897_v50, 0.0  ;;  %1829 = vbcast.lane.b32.xlu0 %v1827_v28, 256  ;;  %v5939_v28 = vld [vmem:[#allocation2 + $0x30] sm:$0xf] }
 0x385   :  { %v2023_v37 = vrot.slane %v2022_v9, 4  ;;  %v1966_v18 = vsel %vm1951_vm12, %v1889_v54, 0.0  ;;  %v1522_v12 = vpop.permute.xlu1 %1521  ;;  %v2018_v21 = vrot.slane %v2017_v39, 2 }
 0x386   :  { %v1967_v62 = vrot.slane %v1966_v18, 4  ;;  %v1898_v20 = vmul.f32 %v5937_v25, %v1522_v12  ;;  %v1466_v45 = vpop.permute.xlu0 %1465  ;;  %v1962_v49 = vrot.slane %v1961_v61, 2 }
 0x387   :  { %v2024_v32 = vadd.f32 %v2023_v37, %v2022_v9  ;;  %v1890_v47 = vmul.f32 %v5938_v24, %v1466_v45  ;;  %1885 = vbcast.lane.b32.xlu1 %v1883_v43, 256  ;;  %v2019_v50 = vadd.f32 %v2018_v21, %v2017_v39  ;;  %v2012_v9 = vadd.f32 %v2011_v36, %v2010_v29  ;;  %v5941_v24 = vld [vmem:[#allocation2 + $0x34] sm:$0xf] }
 0x388   :  { %v1968_v35 = vadd.f32 %v1967_v62, %v1966_v18  ;;  %v2029_v6 = vsel %vm1951_vm12, %v1898_v20, 0.0  ;;  %v5940_v18 = vld [vmem:[#allocation2 + $0x10] sm:$0xf]  ;;  %v1963_v43 = vadd.f32 %v1962_v49, %v1961_v61  ;;  %v1373_v29 = vsel %vm1365_vm13, %v7288_v52, 4.0 }
 0x389   :  { %v2025_v56 = vrot.slane %v2024_v32, 2  ;;  %v2030_v42 = vrot.slane %v2029_v6, 4  ;;  %v1973_v38 = vsel %vm1951_vm12, %v1890_v47, 0.0  ;;  %v1529_v53 = vpop.permute.xlu1 %1528  ;;  %v2020_v21 = vrot.slane %v2019_v50, 1 }
 0x38a   :  { %v1974_v58 = vrot.slane %v1973_v38, 4  ;;  %v1899_v63 = vmul.f32 %v5939_v28, %v1529_v53  ;;  %v1473_v54 = vpop.permute.xlu0 %1472  ;;  %v1969_v51 = vrot.slane %v1968_v35, 2  ;;  %v2013_v61 = vrot.slane %v2012_v9, 1 }
 0x38b   :  { %v2031_v37 = vadd.f32 %v2030_v42, %v2029_v6  ;;  %v1891_v12 = vmul.f32 %v5940_v18, %v1473_v54  ;;  %v2026_v25 = vadd.f32 %v2025_v56, %v2024_v32  ;;  %v7377_v32 = vsel %vm1364_vm14, %v7288_v52, 4.0 }
 0x38c   :  { %v1975_v33 = vadd.f32 %v1974_v58, %v1973_v38  ;;  %v2036_v62 = vsel %vm1951_vm12, %v1899_v63, 0.0  ;;  %v1970_v49 = vadd.f32 %v1969_v51, %v1968_v35  ;;  %v1964_v56 = vrot.slane %v1963_v43, 1 }
 0x38d   :  { %v2032_v20 = vrot.slane %v2031_v37, 2  ;;  %v2037_v45 = vrot.slane %v2036_v62, 4  ;;  %v1536_v39 = vpop.permute.xlu1 %1535  ;;  %v1980_v36 = vsel %vm1951_vm12, %v1891_v12, 0.0  ;;  %v2027_v58 = vrot.slane %v2026_v25, 1 }
 0x38e   :  { %v1976_v15 = vrot.slane %v1975_v33, 2  ;;  %v1900_v47 = vmul.f32 %v5941_v24, %v1536_v39  ;;  %v1480_v6 = vpop.permute.xlu0 %1479  ;;  %v1981_v38 = vrot.slane %v1980_v36, 4  ;;  %v7381_v18 = vsel %vm1266_vm10, %v1373_v29, inf }
 0x38f   :  { %v2038_v42 = vadd.f32 %v2037_v45, %v2036_v62  ;;  %v1892_v53 = vmul.f32 %v5942_v11, %v1480_v6  ;;  %v2033_v28 = vadd.f32 %v2032_v20, %v2031_v37  ;;  %v2021_v35 = vadd.f32 %v2020_v21, %v2019_v50 }
 0x390   :  { %v2043_v44 = vsel %vm1951_vm12, %v1900_v47, 0.0  ;;  %v1977_v63 = vadd.f32 %v1976_v15, %v1975_v33  ;;  %v2014_v45 = vadd.f32 %v2013_v61, %v2012_v9  ;;  %v1971_v39 = vrot.slane %v1970_v49, 1  ;;  %v5944_v33 = vld [vmem:[#allocation2 + $0x18] sm:$0xf]  ;;  %v5945_v61 = vld [vmem:[#allocation2 + $0x3c] sm:$0xf] }
 0x391   :  { %v1543_v54 = vpop.permute.xlu1 %1542  ;;  %v2044_v51 = vrot.slane %v2043_v44, 4  ;;  %v1987_v12 = vsel %vm1951_vm12, %v1892_v53, 0.0  ;;  %v2039_v24 = vrot.slane %v2038_v42, 2  ;;  %v7384_v59 = vadd.f32 %v1964_v56, %v1963_v43 }
 0x392   :  { %v1901_v23 = vmul.f32 %v5943_v4, %v1543_v54  ;;  %v1487_v62 = vpop.permute.xlu0 %1486  ;;  %v1988_v47 = vrot.slane %v1987_v12, 4  ;;  %v1982_v6 = vadd.f32 %v1981_v38, %v1980_v36  ;;  %v2028_v29 = vadd.f32 %v2027_v58, %v2026_v25 }
 0x393   :  { %v1893_v20 = vmul.f32 %v5944_v33, %v1487_v62  ;;  %v2034_v15 = vrot.slane %v2033_v28, 1  ;;  %v1978_v50 = vrot.slane %v1977_v63, 1  ;;  %v2550_v53 = vsel %vm208_vm0, %v2021_v35, %v2014_v45  ;;  %v5946_v62 = vld [vmem:[#allocation2 + $0x1c] sm:$0xf] }
 0x394   :  { %v2050_v37 = vsel %vm1951_vm12, %v1901_v23, 0.0  ;;  %v2045_v54 = vadd.f32 %v2044_v51, %v2043_v44  ;;  %v7389_v43 = vadd.f32 %v1971_v39, %v1970_v49  ;;  %v7391_v36 = vadd.f32 %v2039_v24, %v2038_v42  ;;  %v5947_v39 = vld [vmem:[#allocation2] sm:$0xf] }
 0x395   :  { %v2051_v21 = vrot.slane %v2050_v37, 4  ;;  %v1550_v11 = vpop.permute.xlu1 %1549  ;;  %v1994_v9 = vsel %vm1951_vm12, %v1893_v20, 0.0  ;;  %v1989_v56 = vadd.f32 %v1988_v47, %v1987_v12  ;;  %v1983_v23 = vrot.slane %v1982_v6, 2 }
 0x396   :  { %v1902_v4 = vmul.f32 %v5945_v61, %v1550_v11  ;;  %v1494_v22 = vpop.permute.xlu0 %1493  ;;  %v1995_v25 = vrot.slane %v1994_v9, 4  ;;  %v2551_v35 = vsel %vm211_vm1, %v2028_v29, %v2550_v53  ;;  %v2035_v44 = vadd.f32 %v2034_v15, %v2033_v28 }
 0x397   :  { %v2052_v38 = vadd.f32 %v2051_v21, %v2050_v37  ;;  %v1894_v33 = vmul.f32 %v5946_v62, %v1494_v22  ;;  %v7395_v51 = vadd.f32 %v1978_v50, %v1977_v63  ;;  %v2046_v11 = vrot.slane %v2045_v54, 2  ;;  %v5948_v63 = vld [vmem:[#allocation2 + $0x60] sm:$0xf] }
 0x398   :  { %v2057_v58 = vsel %vm1951_vm12, %v1902_v4, 0.0  ;;  %v1996_v49 = vadd.f32 %v1995_v25, %v1994_v9  ;;  %v1990_v47 = vrot.slane %v1989_v56, 2  ;;  %v2041_v22 = vrot.slane %v7391_v36, 1 }
 0x399   :  { %v2058_v45 = vrot.slane %v2057_v58, 4  ;;  %v1445_v20 = vpop.permute.xlu1 %1444  ;;  %v2001_v42 = vsel %vm1951_vm12, %v1894_v33, 0.0  ;;  %v2053_v37 = vrot.slane %v2052_v38, 2  ;;  %v1984_v4 = vadd.f32 %v1983_v23, %v1982_v6 }
 0x39a   :  { %v1887_v12 = vmul.f32 %v5947_v39, %v1445_v20  ;;  %v1613_v24 = vpop.permute.xlu0 %1612  ;;  %v2002_v61 = vrot.slane %v2001_v42, 4  ;;  %v1997_v15 = vrot.slane %v1996_v49, 2  ;;  %v7401_v25 = vsel %vm214_vm2, %v2035_v44, %v2551_v35 }
 0x39b   :  { %v2059_v21 = vadd.f32 %v2058_v45, %v2057_v58  ;;  %v1911_v29 = vmul.f32 %v5948_v63, %v1613_v24  ;;  %v2047_v62 = vadd.f32 %v2046_v11, %v2045_v54  ;;  %v5949_v58 = vld [vmem:[#allocation2 + $0x64] sm:$0xf]  ;;  %v1991_v34 = vadd.f32 %v1990_v47, %v1989_v56 }
 0x39c   :  { %v1952_v28 = vsel %vm1951_vm12, %v1887_v12, 0.0  ;;  %v2003_v53 = vadd.f32 %v2002_v61, %v2001_v42  ;;  %v2054_v6 = vadd.f32 %v2053_v37, %v2052_v38  ;;  %v1985_v41 = vrot.slane %v1984_v4, 1  ;;  %v5950_v42 = vld [vmem:[#allocation2 + $0x40] sm:$0xf] }
 0x39d   :  { %v2060_v50 = vrot.slane %v2059_v21, 2  ;;  %v1620_v9 = vpop.permute.xlu1 %1619  ;;  %v1953_v33 = vrot.slane %v1952_v28, 4  ;;  %v2120_v20 = vsel %vm1951_vm12, %v1911_v29, 0.0  ;;  %v1998_v2 = vadd.f32 %v1997_v15, %v1996_v49 }
 0x39e   :  { %v1912_v45 = vmul.f32 %v5949_v58, %v1620_v9  ;;  %v1557_v39 = vpop.permute.xlu0 %1556  ;;  %v2004_v23 = vrot.slane %v2003_v53, 2  ;;  %v2121_v12 = vrot.slane %v2120_v20, 4  ;;  %v5951_v58 = vld [vmem:[#allocation2 + $0x68] sm:$0xf]  ;;  %v2048_v47 = vrot.slane %v2047_v62, 1 }
 0x39f   :  { %v1954_v24 = vadd.f32 %v1953_v33, %v1952_v28  ;;  %v1903_v61 = vmul.f32 %v5950_v42, %v1557_v39  ;;  %v2061_v35 = vadd.f32 %v2060_v50, %v2059_v21  ;;  %v1992_v37 = vrot.slane %v1991_v34, 1  ;;  %v5952_v21 = vld [vmem:[#allocation2 + $0x48] sm:$0xf] }
 0x3a0   :  { %v2127_v63 = vsel %vm1951_vm12, %v1912_v45, 0.0  ;;  %v2122_v44 = vadd.f32 %v2121_v12, %v2120_v20  ;;  %v2005_v46 = vadd.f32 %v2004_v23, %v2003_v53  ;;  %v2055_v7 = vrot.slane %v2054_v6, 1 }
 0x3a1   :  { %v2128_v54 = vrot.slane %v2127_v63, 4  ;;  %v1627_v11 = vpop.permute.xlu1 %1626  ;;  %v1955_v29 = vrot.slane %v1954_v24, 2  ;;  %v2064_v9 = vsel %vm1951_vm12, %v1903_v61, 0.0  ;;  %v1999_v50 = vrot.slane %v1998_v2, 1 }
 0x3a2   :  { %v1913_v56 = vmul.f32 %v5951_v58, %v1627_v11  ;;  %v1571_v38 = vpop.permute.xlu0 %1570  ;;  %v2065_v45 = vrot.slane %v2064_v9, 4  ;;  %v2062_v53 = vrot.slane %v2061_v35, 1  ;;  %v2123_v20 = vrot.slane %v2122_v44, 2 }
 0x3a3   :  { %v2129_v28 = vadd.f32 %v2128_v54, %v2127_v63  ;;  %1375 = vmin.xlane.f32.xlu0 %v7313_v31  ;;  %v1956_v33 = vadd.f32 %v1955_v29, %v1954_v24  ;;  %v1905_v15 = vmul.f32 %v5952_v21, %v1571_v38  ;;  %v2042_v12 = vadd.f32 %v2041_v22, %v7391_v36  ;;  %v5953_v21 = vld [vmem:[#allocation2 + $0x6c] sm:$0xf] }
 0x3a4   :  { %v2134_v49 = vsel %vm1951_vm12, %v1913_v56, 0.0  ;;  %v1986_v42 = vadd.f32 %v1985_v41, %v1984_v4  ;;  %v2006_v61 = vrot.slane %v2005_v46, 1  ;;  %v2049_v63 = vadd.f32 %v2048_v47, %v2047_v62 }
 0x3a5   :  { %v2135_v39 = vrot.slane %v2134_v49, 4  ;;  %v1634_v23 = vpop.permute.xlu1 %1633  ;;  %v1957_v11 = vrot.slane %v1956_v33, 1  ;;  %v1993_v54 = vadd.f32 %v1992_v37, %v1991_v34  ;;  %v2130_v31 = vrot.slane %v2129_v28, 2 }
 0x3a6   :  { %v1578_v58 = vpop.permute.xlu0 %1577  ;;  %v2078_v24 = vsel %vm1951_vm12, %v1905_v15, 0.0  ;;  %v2056_v29 = vadd.f32 %v2055_v7, %v2054_v6  ;;  %v2066_v38 = vadd.f32 %v2065_v45, %v2064_v9  ;;  %v1914_v10 = vmul.f32 %v5953_v21, %v1634_v23  ;;  %v5954_v15 = vld [vmem:[#allocation2 + $0x4c] sm:$0xf] }
 0x3a7   :  { %1381 = vmin.xlane.f32.xlu0 %v7353_v57  ;;  %v1958_v56 = vadd.f32 %v1957_v11, %v1956_v33  ;;  %v2000_v26 = vadd.f32 %v1999_v50, %v1998_v2  ;;  %v7411_v55 = vadd.f32 %v2123_v20, %v2122_v44  ;;  %v2136_v36 = vadd.f32 %v2135_v39, %v2134_v49 }
 0x3a8   :  { %v2063_v41 = vadd.f32 %v2062_v53, %v2061_v35  ;;  %v2079_v34 = vrot.slane %v2078_v24, 4  ;;  %v2007_v62 = vadd.f32 %v2006_v61, %v2005_v46  ;;  %v2141_v47 = vsel %vm1951_vm12, %v1914_v10, 0.0  ;;  %v5955_v53 = vld [vmem:[#allocation2 + $0x70] sm:$0xf] }
 0x3a9   :  { %v1641_v22 = vpop.permute.xlu1 %1640  ;;  %v2543_v4 = vsel %vm208_vm0, %v7384_v59, %v1958_v56  ;;  %v7416_v57 = vadd.f32 %v2130_v31, %v2129_v28  ;;  %v2553_v2 = vsel %vm217_vm3, %v2042_v12, %v7401_v25  ;;  %v1392_v59 = vsel %vm1266_vm10, %v7377_v32, inf }
 0x3aa   :  { %v1585_v37 = vpop.permute.xlu0 %1584  ;;  %v2544_v7 = vsel %vm211_vm1, %v7389_v43, %v2543_v4  ;;  %v2067_v6 = vrot.slane %v2066_v38, 2  ;;  %v2554_v46 = vsel %vm220_vm4, %v2049_v63, %v2553_v2  ;;  %v2142_v35 = vrot.slane %v2141_v47, 4  ;;  %v5959_v2 = vld [vmem:[#allocation2 + $0x78] sm:$0xf] }
 0x3ab   :  { %1378 = vmin.xlane.f32.xlu1 %v7316_v3  ;;  %1384 = vmin.xlane.f32.xlu0 %v7339_v0  ;;  %v2545_v10 = vsel %vm214_vm2, %v7395_v51, %v2544_v7  ;;  %v2125_v44 = vrot.slane %v7411_v55, 1  ;;  %v2137_v43 = vrot.slane %v2136_v36, 2  ;;  %v2555_v25 = vsel %vm223_vm5, %v2056_v29, %v2554_v46 }
 0x3ac   :  { %v2546_v9 = vsel %vm217_vm3, %v1986_v42, %v2545_v10  ;;  %v2080_v28 = vadd.f32 %v2079_v34, %v2078_v24  ;;  %v7434_v32 = vsel %vm226_vm6, %v2063_v41, %v2555_v25  ;;  %v2143_v33 = vadd.f32 %v2142_v35, %v2141_v47  ;;  %v5956_v42 = vld [vmem:[#allocation2 + $0x50] sm:$0xf]  ;;  %v5960_v10 = vld [vmem:[#allocation2 + $0x58] sm:$0xf] }
 0x3ad   :  { %v1648_v3 = vpop.permute.xlu1 %1647  ;;  %v2547_v0 = vsel %vm220_vm4, %v1993_v54, %v2546_v9  ;;  %8694 = vst [vmem:[#allocation17_spill] sm:$0xff] %v7434_v32  ;;  %v2132_v51 = vrot.slane %v7416_v57, 1  ;;  %v1906_v50 = vmul.f32 %v5954_v15, %v1578_v58  ;;  %v1915_v20 = vmul.f32 %v5955_v53, %v1641_v22  ;;  %v5958_v22 = vld [vmem:[#allocation2 + $0x54] sm:$0xf] }
 0x3ae   :  { %v1592_v45 = vpop.permute.xlu0 %1591  ;;  %v2548_v49 = vsel %vm223_vm5, %v2000_v26, %v2547_v0  ;;  %v7439_v39 = vadd.f32 %v2067_v6, %v2066_v38  ;;  %v2144_v12 = vrot.slane %v2143_v33, 2  ;;  %v1907_v61 = vmul.f32 %v5956_v42, %v1585_v37 }
 0x3af   :  { %1387 = vmin.xlane.f32.xlu1 %v7361_v60  ;;  %v7442_v23 = vsel %vm226_vm6, %v2007_v62, %v2548_v49  ;;  %1390 = vmin.xlane.f32.xlu0 %v7357_v16  ;;  %v2608_v26 = vmul.f32 %v7434_v32, %v7228_v48  ;;  %v2085_v58 = vsel %vm1951_vm12, %v1906_v50, 0.0  ;;  %v2148_v60 = vsel %vm1951_vm12, %v1915_v20, 0.0  ;;  %v5957_v16 = vld [vmem:[#allocation2 + $0x74] sm:$0xf] }
 0x3b0   :  { %8695 = vst [vmem:[#allocation18_spill] sm:$0xff] %v7442_v23  ;;  %v2607_v11 = vmul.f32 %v7442_v23, %v7224_v1  ;;  %v2138_v54 = vadd.f32 %v2137_v43, %v2136_v36  ;;  %v2081_v31 = vrot.slane %v2080_v28, 2  ;;  %v2086_v24 = vrot.slane %v2085_v58, 4 }
 0x3b1   :  { %v1655_v63 = vpop.permute.xlu1 %1654  ;;  %v2149_v29 = vrot.slane %v2148_v60, 4  ;;  %v2092_v21 = vsel %vm1951_vm12, %v1907_v61, 0.0  ;;  %v1916_v41 = vmul.f32 %v5957_v16, %v1648_v3  ;;  %v1908_v4 = vmul.f32 %v5958_v22, %v1592_v45 }
 0x3b2   :  { %v1599_v56 = vpop.permute.xlu0 %1598  ;;  %v2615_v38 = vpack.c.bf16 %v2608_v26, %v2607_v11  ;;  %v2145_v34 = vadd.f32 %v2144_v12, %v2143_v33  ;;  %v2087_v62 = vadd.f32 %v2086_v24, %v2085_v58  ;;  %v2093_v37 = vrot.slane %v2092_v21, 4 }
 0x3b3   :  { %1393 = vmin.xlane.f32.xlu1 %v1392_v59  ;;  %v2150_v47 = vadd.f32 %v2149_v29, %v2148_v60  ;;  %1396 = vmin.xlane.f32.xlu0 %v7381_v18  ;;  %v2155_v36 = vsel %vm1951_vm12, %v1916_v41, 0.0  ;;  %v2099_v7 = vsel %vm1951_vm12, %v1908_v4, 0.0  ;;  %v1917_v6 = vmul.f32 %v5959_v2, %v1655_v63  ;;  %v5961_v63 = vld [vmem:[#allocation2 + $0x7c] sm:$0xf] }
 0x3b4   :  { %v1909_v46 = vmul.f32 %v5960_v10, %v1599_v56  ;;  %5458 = vmatpush3.bf16.msra.mxu1 %v2615_v38  ;;  %v2139_v43 = vrot.slane %v2138_v54, 1  ;;  %v2088_v9 = vrot.slane %v2087_v62, 2  ;;  %v2094_v59 = vadd.f32 %v2093_v37, %v2092_v21  ;;  %v5962_v37 = vld [vmem:[#allocation2 + $0x5c] sm:$0xf] }
 0x3b5   :  { %v1662_v35 = vpop.permute.xlu1 %1661  ;;  %v2151_v25 = vrot.slane %v2150_v47, 2  ;;  %v8696_v0 = vmov 0.0   ;;  %v2082_v33 = vadd.f32 %v2081_v31, %v2080_v28  ;;  %v2156_v45 = vrot.slane %v2155_v36, 4 }
 0x3b6   :  { %v1606_v3 = vpop.permute.xlu0 %1605  ;;  %5459 = vmatprep.subr.bf16.mxu1 %v8696_v0  ;;  %v2100_v18 = vrot.slane %v2099_v7, 4  ;;  %v2162_v49 = vsel %vm1951_vm12, %v1917_v6, 0.0  ;;  %v2133_v15 = vadd.f32 %v2132_v51, %v7416_v57  ;;  %v2069_v50 = vrot.slane %v7439_v39, 1 }
 0x3b7   :  { %v2152_v53 = vadd.f32 %v2151_v25, %v2150_v47  ;;  %v2106_v20 = vsel %vm1951_vm12, %v1909_v46, 0.0  ;;  %v2146_v12 = vrot.slane %v2145_v34, 1  ;;  %v2089_v42 = vadd.f32 %v2088_v9, %v2087_v62  ;;  %v5964_v9 = vld [vmem:[#allocation2 + $0xa0] sm:$0xf] }
 0x3b8   :  { %v2095_v61 = vrot.slane %v2094_v59, 2  ;;  %v2163_v11 = vrot.slane %v2162_v49, 4  ;;  %v2126_v28 = vadd.f32 %v2125_v44, %v7411_v55  ;;  %v2140_v58 = vadd.f32 %v2139_v43, %v2138_v54 }
 0x3b9   :  { %v1564_v26 = vpop.permute.xlu1 %1563  ;;  %v2157_v60 = vadd.f32 %v2156_v45, %v2155_v36  ;;  %v1918_v31 = vmul.f32 %v5961_v63, %v1662_v35  ;;  %v2083_v57 = vrot.slane %v2082_v33, 1  ;;  %v2153_v51 = vrot.slane %v2152_v53, 1  ;;  %v5965_v63 = vld [vmem:[#allocation2 + $0xa4] sm:$0xf] }
 0x3ba   :  { %v1725_v24 = vpop.permute.xlu0 %1724  ;;  %v2101_v29 = vadd.f32 %v2100_v18, %v2099_v7  ;;  %v2107_v56 = vrot.slane %v2106_v20, 4  ;;  %v2564_v38 = vsel %vm208_vm0, %v2133_v15, %v2126_v28  ;;  %v2164_v21 = vadd.f32 %v2163_v11, %v2162_v49 }
 0x3bb   :  { %v2169_v16 = vsel %vm1951_vm12, %v1918_v31, 0.0  ;;  %v7466_v41 = vadd.f32 %v2069_v50, %v7439_v39  ;;  %v2147_v22 = vadd.f32 %v2146_v12, %v2145_v34  ;;  %v2090_v4 = vrot.slane %v2089_v42, 1  ;;  %v5963_v34 = vld [vmem:[#allocation2 + $0x44] sm:$0xf] }
 0x3bc   :  { %v7468_v55 = vadd.f32 %v2095_v61, %v2094_v59  ;;  %v2565_v54 = vsel %vm211_vm1, %v2140_v58, %v2564_v38  ;;  %v2158_v62 = vrot.slane %v2157_v60, 2  ;;  %v2170_v47 = vrot.slane %v2169_v16, 4 }
 0x3bd   :  { %v1732_v44 = vpop.permute.xlu1 %1731  ;;  %v1910_v36 = vmul.f32 %v5962_v37, %v1606_v3  ;;  %v7471_v2 = vadd.f32 %v2083_v57, %v2082_v33  ;;  %v2154_v6 = vadd.f32 %v2153_v51, %v2152_v53  ;;  %v2102_v10 = vrot.slane %v2101_v29, 2  ;;  %v5966_v51 = vld [vmem:[#allocation2 + $0x80] sm:$0xf] }
 0x3be   :  { %v1669_v7 = vpop.permute.xlu0 %1668  ;;  %v2108_v46 = vadd.f32 %v2107_v56, %v2106_v20  ;;  %v2165_v35 = vrot.slane %v2164_v21, 2  ;;  %v1904_v43 = vmul.f32 %v5963_v34, %v1564_v26  ;;  %v1927_v25 = vmul.f32 %v5964_v9, %v1725_v24  ;;  %v5967_v56 = vld [vmem:[#allocation2 + $0xa8] sm:$0xf] }
 0x3bf   :  { %v2113_v39 = vsel %vm1951_vm12, %v1910_v36, 0.0  ;;  %v2566_v59 = vsel %vm214_vm2, %v2147_v22, %v2565_v54  ;;  %v7475_v45 = vadd.f32 %v2090_v4, %v2089_v42  ;;  %v2097_v18 = vrot.slane %v7468_v55, 1 }
 0x3c0   :  { %v2171_v3 = vadd.f32 %v2170_v47, %v2169_v16  ;;  %v2159_v33 = vadd.f32 %v2158_v62, %v2157_v60  ;;  %v2114_v15 = vrot.slane %v2113_v39, 4  ;;  %v2071_v50 = vsel %vm1951_vm12, %v1904_v43, 0.0  ;;  %v5968_v43 = vld [vmem:[#allocation2 + $0x88] sm:$0xf] }
 0x3c1   :  { %v1739_v49 = vpop.permute.xlu1 %1738  ;;  %v2232_v53 = vsel %vm1951_vm12, %v1927_v25, 0.0  ;;  %v2567_v12 = vsel %vm217_vm3, %v2154_v6, %v2566_v59  ;;  %v2103_v61 = vadd.f32 %v2102_v10, %v2101_v29  ;;  %v2109_v11 = vrot.slane %v2108_v46, 2 }
 0x3c2   :  { %v1683_v20 = vpop.permute.xlu0 %1682  ;;  %v2072_v26 = vrot.slane %v2071_v50, 4  ;;  %v2166_v28 = vadd.f32 %v2165_v35, %v2164_v21  ;;  %v2115_v58 = vadd.f32 %v2114_v15, %v2113_v39  ;;  %v2233_v42 = vrot.slane %v2232_v53, 4 }
 0x3c3   :  { %v1928_v31 = vmul.f32 %v5965_v63, %v1732_v44  ;;  %v2172_v24 = vrot.slane %v2171_v3, 2  ;;  %v1919_v60 = vmul.f32 %v5966_v51, %v1669_v7  ;;  %v1929_v38 = vmul.f32 %v5967_v56, %v1739_v49 }
 0x3c4   :  { %v2073_v57 = vadd.f32 %v2072_v26, %v2071_v50  ;;  %v2160_v22 = vrot.slane %v2159_v33, 1  ;;  %v2116_v4 = vrot.slane %v2115_v58, 2  ;;  %v2234_v54 = vadd.f32 %v2233_v42, %v2232_v53  ;;  %v5969_v50 = vld [vmem:[#allocation2 + $0xac] sm:$0xf] }
 0x3c5   :  { %v1746_v16 = vpop.permute.xlu1 %1745  ;;  %v2239_v62 = vsel %vm1951_vm12, %v1928_v31, 0.0  ;;  %v2176_v21 = vsel %vm1951_vm12, %v1919_v60, 0.0  ;;  %v2246_v36 = vsel %vm1951_vm12, %v1929_v38, 0.0  ;;  %v2104_v44 = vrot.slane %v2103_v61, 1 }
 0x3c6   :  { %v1690_v29 = vpop.permute.xlu0 %1689  ;;  %v2074_v47 = vrot.slane %v2073_v57, 2  ;;  %v2240_v37 = vrot.slane %v2239_v62, 4  ;;  %v2167_v6 = vrot.slane %v2166_v28, 1  ;;  %v2110_v10 = vadd.f32 %v2109_v11, %v2108_v46 }
 0x3c7   :  { %v2177_v35 = vrot.slane %v2176_v21, 4  ;;  %v2173_v7 = vadd.f32 %v2172_v24, %v2171_v3  ;;  %v2247_v34 = vrot.slane %v2246_v36, 4  ;;  %v1921_v9 = vmul.f32 %v5968_v43, %v1683_v20 }
 0x3c8   :  { %v2075_v39 = vadd.f32 %v2074_v47, %v2073_v57  ;;  %v2117_v59 = vadd.f32 %v2116_v4, %v2115_v58  ;;  %v2235_v49 = vrot.slane %v2234_v54, 2  ;;  %v2241_v15 = vadd.f32 %v2240_v37, %v2239_v62 }
 0x3c9   :  { %v1753_v25 = vpop.permute.xlu1 %1752  ;;  %v1930_v53 = vmul.f32 %v5969_v50, %v1746_v16  ;;  %v2161_v42 = vadd.f32 %v2160_v22, %v2159_v33  ;;  %v2178_v31 = vadd.f32 %v2177_v35, %v2176_v21  ;;  %v2190_v51 = vsel %vm1951_vm12, %v1921_v9, 0.0 }
 0x3ca   :  { %v1697_v26 = vpop.permute.xlu0 %1696  ;;  %v2076_v63 = vrot.slane %v2075_v39, 1  ;;  %v7486_v46 = vadd.f32 %v2097_v18, %v7468_v55  ;;  %v2111_v3 = vrot.slane %v2110_v10, 1  ;;  %v2248_v11 = vadd.f32 %v2247_v34, %v2246_v36  ;;  %v5970_v18 = vld [vmem:[#allocation2 + $0x8c] sm:$0xf] }
 0x3cb   :  { %v2191_v24 = vrot.slane %v2190_v51, 4  ;;  %v2168_v57 = vadd.f32 %v2167_v6, %v2166_v28  ;;  %v2174_v20 = vrot.slane %v2173_v7, 1  ;;  %v2253_v58 = vsel %vm1951_vm12, %v1930_v53, 0.0  ;;  %v5972_v53 = vld [vmem:[#allocation2 + $0x90] sm:$0xf] }
 0x3cc   :  { %v2077_v60 = vadd.f32 %v2076_v63, %v2075_v39  ;;  %v2118_v38 = vrot.slane %v2117_v59, 1  ;;  %v7489_v16 = vadd.f32 %v2235_v49, %v2234_v54  ;;  %v2242_v33 = vrot.slane %v2241_v15, 2  ;;  %v5971_v49 = vld [vmem:[#allocation2 + $0xb0] sm:$0xf] }
 0x3cd   :  { %v1760_v56 = vpop.permute.xlu1 %1759  ;;  %v2254_v22 = vrot.slane %v2253_v58, 4  ;;  %v2568_v62 = vsel %vm220_vm4, %v2161_v42, %v2567_v12  ;;  %v7492_v47 = vadd.f32 %v2104_v44, %v2103_v61  ;;  %v2179_v55 = vrot.slane %v2178_v31, 2 }
 0x3ce   :  { %v1704_v4 = vpop.permute.xlu0 %1703  ;;  %v1922_v37 = vmul.f32 %v5970_v18, %v1690_v29  ;;  %v7494_v21 = vadd.f32 %v2111_v3, %v2110_v10  ;;  %v2557_v28 = vsel %vm208_vm0, %v2077_v60, %v7466_v41  ;;  %v2249_v36 = vrot.slane %v2248_v11, 2  ;;  %v5973_v3 = vld [vmem:[#allocation2 + $0xb4] sm:$0xf] }
 0x3cf   :  { %v2192_v6 = vadd.f32 %v2191_v24, %v2190_v51  ;;  %v7499_v54 = vsel %vm223_vm5, %v2168_v57, %v2568_v62  ;;  %v7501_v35 = vadd.f32 %v2174_v20, %v2173_v7  ;;  %v2255_v39 = vadd.f32 %v2254_v22, %v2253_v58  ;;  %v5974_v20 = vld [vmem:[#allocation2 + $0x94] sm:$0xf]  ;;  %v5975_v22 = vld [vmem:[#allocation2 + $0xb8] sm:$0xf] }
 0x3d0   :  { %v2197_v12 = vsel %vm1951_vm12, %v1922_v37, 0.0  ;;  %v7504_v44 = vadd.f32 %v2118_v38, %v2117_v59  ;;  %v2237_v29 = vrot.slane %v7489_v16, 1  ;;  %v2243_v10 = vadd.f32 %v2242_v33, %v2241_v15 }
 0x3d1   :  { %v1767_v61 = vpop.permute.xlu1 %1766  ;;  %v2198_v34 = vrot.slane %v2197_v12, 4  ;;  %v2558_v41 = vsel %vm211_vm1, %v7471_v2, %v2557_v28  ;;  %v2180_v9 = vadd.f32 %v2179_v55, %v2178_v31  ;;  %v1931_v50 = vmul.f32 %v5971_v49, %v1753_v25 }
 0x3d2   :  { %v1711_v43 = vpop.permute.xlu0 %1710  ;;  %v1923_v7 = vmul.f32 %v5972_v53, %v1697_v26  ;;  %v2250_v42 = vadd.f32 %v2249_v36, %v2248_v11  ;;  %v2193_v63 = vrot.slane %v2192_v6, 2  ;;  %v1932_v24 = vmul.f32 %v5973_v3, %v1760_v56 }
 0x3d3   :  { %v2199_v51 = vadd.f32 %v2198_v34, %v2197_v12  ;;  %v2256_v59 = vrot.slane %v2255_v39, 2  ;;  %v2260_v57 = vsel %vm1951_vm12, %v1931_v50, 0.0  ;;  %v1924_v60 = vmul.f32 %v5974_v20, %v1704_v4 }
 0x3d4   :  { %v2204_v15 = vsel %vm1951_vm12, %v1923_v7, 0.0  ;;  %v2559_v2 = vsel %vm214_vm2, %v7475_v45, %v2558_v41  ;;  %v2244_v31 = vrot.slane %v2243_v10, 1  ;;  %v2261_v38 = vrot.slane %v2260_v57, 4  ;;  %v5976_v45 = vld [vmem:[#allocation2 + $0x98] sm:$0xf] }
 0x3d5   :  { %v1774_v58 = vpop.permute.xlu1 %1773  ;;  %v2200_v25 = vrot.slane %v2199_v51, 2  ;;  %v2205_v11 = vrot.slane %v2204_v15, 4  ;;  %v2267_v33 = vsel %vm1951_vm12, %v1932_v24, 0.0  ;;  %v2211_v56 = vsel %vm1951_vm12, %v1924_v60, 0.0 }
 0x3d6   :  { %v1718_v26 = vpop.permute.xlu0 %1717  ;;  %v1933_v62 = vmul.f32 %v5975_v22, %v1767_v61  ;;  %v2251_v55 = vrot.slane %v2250_v42, 1  ;;  %v2194_v18 = vadd.f32 %v2193_v63, %v2192_v6  ;;  %v2262_v37 = vadd.f32 %v2261_v38, %v2260_v57 }
 0x3d7   :  { %v2268_v28 = vrot.slane %v2267_v33, 4  ;;  %v2257_v4 = vadd.f32 %v2256_v59, %v2255_v39  ;;  %v2201_v36 = vadd.f32 %v2200_v25, %v2199_v51  ;;  %v1925_v34 = vmul.f32 %v5976_v45, %v1711_v43 }
 0x3d8   :  { %v2274_v12 = vsel %vm1951_vm12, %v1933_v62, 0.0  ;;  %v2181_v49 = vrot.slane %v2180_v9, 1  ;;  %v2206_v50 = vadd.f32 %v2205_v11, %v2204_v15  ;;  %v2212_v53 = vrot.slane %v2211_v56, 4 }
 0x3d9   :  { %v1676_v41 = vpop.permute.xlu1 %1675  ;;  %v2275_v7 = vrot.slane %v2274_v12, 4  ;;  %v2238_v24 = vadd.f32 %v2237_v29, %v7489_v16  ;;  %v2245_v20 = vadd.f32 %v2244_v31, %v2243_v10  ;;  %v2263_v61 = vrot.slane %v2262_v37, 2 }
 0x3da   :  { %v1837_v3 = vpop.permute.xlu0 %1836  ;;  %v2560_v6 = vsel %vm217_vm3, %v7486_v46, %v2559_v2  ;;  %v2252_v63 = vadd.f32 %v2251_v55, %v2250_v42  ;;  %v2195_v39 = vrot.slane %v2194_v18, 1  ;;  %v2269_v51 = vadd.f32 %v2268_v28, %v2267_v33 }
 0x3db   :  { %v2218_v59 = vsel %vm1951_vm12, %v1925_v34, 0.0  ;;  %v2258_v57 = vrot.slane %v2257_v4, 1  ;;  %v2202_v43 = vrot.slane %v2201_v36, 1  ;;  %v2276_v60 = vadd.f32 %v2275_v7, %v2274_v12  ;;  %v5977_v12 = vld [vmem:[#allocation2 + $0xbc] sm:$0xf] }
 0x3dc   :  { %v2561_v15 = vsel %vm220_vm4, %v7492_v47, %v2560_v6  ;;  %v7522_v38 = vadd.f32 %v2181_v49, %v2180_v9  ;;  %v2207_v16 = vrot.slane %v2206_v50, 2  ;;  %v2213_v29 = vadd.f32 %v2212_v53, %v2211_v56  ;;  %v5979_v49 = vld [vmem:[#allocation2 + $0x84] sm:$0xf] }
 0x3dd   :  { %v1844_v25 = vpop.permute.xlu1 %1843  ;;  %v2562_v10 = vsel %vm223_vm5, %v7494_v21, %v2561_v15  ;;  %v2578_v42 = vsel %vm208_vm0, %v2245_v20, %v2238_v24  ;;  %v7527_v2 = vadd.f32 %v2263_v61, %v2262_v37  ;;  %v2219_v31 = vrot.slane %v2218_v59, 4 }
 0x3de   :  { %v1781_v46 = vpop.permute.xlu0 %1780  ;;  %v7531_v11 = vsel %vm226_vm6, %v7504_v44, %v2562_v10  ;;  %v7534_v47 = vsel %vm211_vm1, %v2252_v63, %v2578_v42  ;;  %v7536_v9 = vadd.f32 %v2195_v39, %v2194_v18  ;;  %v2270_v33 = vrot.slane %v2269_v51, 2  ;;  %v5982_v42 = vld [vmem:[#allocation2 + $0xc0] sm:$0xf] }
 0x3df   :  { %8697 = vst [vmem:[#allocation21_spill] sm:$0xff] %v7531_v11  ;;  %v7541_v21 = vsel %vm226_vm6, %v7501_v35, %v7499_v54  ;;  %v7543_v56 = vadd.f32 %v2258_v57, %v2257_v4  ;;  %v7545_v22 = vadd.f32 %v2202_v43, %v2201_v36  ;;  %v2277_v62 = vrot.slane %v2276_v60, 2  ;;  %v5978_v4 = vld [vmem:[#allocation2 + $0x9c] sm:$0xf] }
 0x3e0   :  { %8698 = vst [vmem:[#allocation22_spill] sm:$0xff] %v7541_v21  ;;  %v2609_v44 = vmul.f32 %v7221_v13, %v7531_v11  ;;  %v7549_v37 = vadd.f32 %v2207_v16, %v2206_v50  ;;  %v2214_v28 = vrot.slane %v2213_v29, 2  ;;  %v2610_v18 = vmul.f32 %v7226_v8, %v7541_v21  ;;  %v5980_v50 = vld [vmem:[#allocation2 + $0xe0] sm:$0xf]  ;;  %v6050_v11 = vld [vmem:[#allocation2 + $0xd0] sm:$0xf] }
 0x3e1   :  { %v1851_v55 = vpop.permute.xlu1 %1850  ;;  %v1934_v45 = vmul.f32 %v5977_v12, %v1774_v58  ;;  %v2265_v54 = vrot.slane %v7527_v2, 1  ;;  %v2220_v35 = vadd.f32 %v2219_v31, %v2218_v59  ;;  %v1926_v36 = vmul.f32 %v5978_v4, %v1718_v26  ;;  %v5981_v26 = vld [vmem:[#allocation2 + $0xe4] sm:$0xf] }
 0x3e2   :  { %v1795_v34 = vpop.permute.xlu0 %1794  ;;  %v1920_v53 = vmul.f32 %v5979_v49, %v1676_v41  ;;  %v2271_v7 = vadd.f32 %v2270_v33, %v2269_v51  ;;  %v2616_v24 = vpack.c.bf16 %v2610_v18, %v2609_v44  ;;  %v1943_v61 = vmul.f32 %v5980_v50, %v1837_v3 }
 0x3e3   :  { %v2281_v20 = vsel %vm1951_vm12, %v1934_v45, 0.0  ;;  %v2278_v6 = vadd.f32 %v2277_v62, %v2276_v60  ;;  %v2225_v39 = vsel %vm1951_vm12, %v1926_v36, 0.0  ;;  %v1944_v15 = vmul.f32 %v5981_v26, %v1844_v25  ;;  %v5983_v62 = vld [vmem:[#allocation2 + $0xe8] sm:$0xf] }
 0x3e4   :  { %v2282_v63 = vrot.slane %v2281_v20, 4  ;;  %v2183_v58 = vsel %vm1951_vm12, %v1920_v53, 0.0  ;;  %5460 = vmatpush3.bf16.msra.mxu1 %v2616_v24  ;;  %v2226_v57 = vrot.slane %v2225_v39, 4  ;;  %v2344_v59 = vsel %vm1951_vm12, %v1943_v61, 0.0 }
 0x3e5   :  { %v2184_v43 = vrot.slane %v2183_v58, 4  ;;  %v7558_v41 = vpop.permute.xlu1 %1857  ;;  %v2221_v51 = vrot.slane %v2220_v35, 2  ;;  %v2345_v10 = vrot.slane %v2344_v59, 4  ;;  %v1935_v3 = vmul.f32 %v5982_v42, %v1781_v46  ;;  %5461 = vmatprep.subr.bf16.mxu1 %v8696_v0 }
 0x3e6   :  { %v2283_v16 = vadd.f32 %v2282_v63, %v2281_v20  ;;  %v2227_v60 = vadd.f32 %v2226_v57, %v2225_v39  ;;  %v2351_v33 = vsel %vm1951_vm12, %v1944_v15, 0.0  ;;  %v1945_v44 = vmul.f32 %v5983_v62, %v1851_v55  ;;  %v7562_v18 = vpop.permute.xlu0 %1801 }
 0x3e7   :  { %v2185_v31 = vadd.f32 %v2184_v43, %v2183_v58  ;;  %v2346_v45 = vadd.f32 %v2345_v10, %v2344_v59  ;;  %v2352_v25 = vrot.slane %v2351_v33, 4  ;;  %v2288_v4 = vsel %vm1951_vm12, %v1935_v3, 0.0  ;;  %v5984_v58 = vld [vmem:[#allocation2 + $0xc8] sm:$0xf] }
 0x3e8   :  { %v2284_v12 = vrot.slane %v2283_v16, 2  ;;  %v2209_v36 = vrot.slane %v7549_v37, 1  ;;  %v2215_v49 = vadd.f32 %v2214_v28, %v2213_v29  ;;  %v2228_v53 = vrot.slane %v2227_v60, 2 }
 0x3e9   :  { %v2186_v46 = vrot.slane %v2185_v31, 2  ;;  %v2272_v24 = vrot.slane %v2271_v7, 1  ;;  %v2279_v20 = vrot.slane %v2278_v6, 1  ;;  %v2358_v61 = vsel %vm1951_vm12, %v1945_v44, 0.0  ;;  %v1865_v43 = vpop.permute.xlu1 %1864 }
 0x3ea   :  { %v2285_v50 = vadd.f32 %v2284_v12, %v2283_v16  ;;  %v2222_v63 = vadd.f32 %v2221_v51, %v2220_v35  ;;  %v2289_v55 = vrot.slane %v2288_v4, 4  ;;  %v1937_v57 = vmul.f32 %v5984_v58, %v1795_v34  ;;  %v1809_v62 = vpop.permute.xlu0 %1808 }
 0x3eb   :  { %v2187_v39 = vadd.f32 %v2186_v46, %v2185_v31  ;;  %v2266_v59 = vadd.f32 %v2265_v54, %v7527_v2  ;;  %v2347_v15 = vrot.slane %v2346_v45, 2  ;;  %v2353_v10 = vadd.f32 %v2352_v25, %v2351_v33 }
 0x3ec   :  { %v2286_v26 = vrot.slane %v2285_v50, 1  ;;  %v2229_v42 = vadd.f32 %v2228_v53, %v2227_v60  ;;  %v2359_v28 = vrot.slane %v2358_v61, 4  ;;  %v2302_v3 = vsel %vm1951_vm12, %v1937_v57, 0.0  ;;  %v5985_v57 = vld [vmem:[#allocation2 + $0xec] sm:$0xf] }
 0x3ed   :  { %v2188_v29 = vrot.slane %v2187_v39, 1  ;;  %v2210_v16 = vadd.f32 %v2209_v36, %v7549_v37  ;;  %v2273_v44 = vadd.f32 %v2272_v24, %v2271_v7  ;;  %v2216_v35 = vrot.slane %v2215_v49, 1 }
 0x3ee   :  { %v2280_v51 = vadd.f32 %v2279_v20, %v2278_v6  ;;  %v2223_v31 = vrot.slane %v2222_v63, 1  ;;  %v2290_v34 = vadd.f32 %v2289_v55, %v2288_v4  ;;  %v2303_v46 = vrot.slane %v2302_v3, 4  ;;  %v1872_v6 = vpop.permute.xlu1 %1871 }
 0x3ef   :  { %v2189_v12 = vadd.f32 %v2188_v29, %v2187_v39  ;;  %v2287_v58 = vadd.f32 %v2286_v26, %v2285_v50  ;;  %v7570_v2 = vadd.f32 %v2347_v15, %v2346_v45  ;;  %v2354_v54 = vrot.slane %v2353_v10, 2  ;;  %v5986_v15 = vld [vmem:[#allocation2 + $0xcc] sm:$0xf]  ;;  %v5987_v29 = vld [vmem:[#allocation2 + $0xf0] sm:$0xf] }
 0x3f0   :  { %v2580_v60 = vsel %vm214_vm2, %v7543_v56, %v7534_v47  ;;  %v2230_v33 = vrot.slane %v2229_v42, 1  ;;  %v7577_v37 = vadd.f32 %v2359_v28, %v2358_v61  ;;  %v2217_v36 = vadd.f32 %v2216_v35, %v2215_v49 }
 0x3f1   :  { %v2571_v25 = vsel %vm208_vm0, %v2189_v12, %v7522_v38  ;;  %v2581_v7 = vsel %vm217_vm3, %v2266_v59, %v2580_v60  ;;  %v2304_v45 = vadd.f32 %v2303_v46, %v2302_v3  ;;  %v2224_v24 = vadd.f32 %v2223_v31, %v2222_v63  ;;  %v1816_v38 = vpop.permute.xlu0 %1815 }
 0x3f2   :  { %v2572_v4 = vsel %vm211_vm1, %v7536_v9, %v2571_v25  ;;  %v2582_v53 = vsel %vm220_vm4, %v2273_v44, %v2581_v7  ;;  %v2291_v20 = vrot.slane %v2290_v34, 2  ;;  %v2349_v50 = vrot.slane %v7570_v2, 1  ;;  %v5988_v44 = vld [vmem:[#allocation2 + $0xd0] sm:$0xf] }
 0x3f3   :  { %v2573_v47 = vsel %vm214_vm2, %v7545_v22, %v2572_v4  ;;  %v2583_v56 = vsel %vm223_vm5, %v2280_v51, %v2582_v53  ;;  %v7587_v61 = vadd.f32 %v2354_v54, %v2353_v10  ;;  %v2231_v9 = vadd.f32 %v2230_v33, %v2229_v42  ;;  %v1788_v51 = vpop.permute.xlu1 %1787 }
 0x3f4   :  { %v2574_v49 = vsel %vm217_vm3, %v2210_v16, %v2573_v47  ;;  %v7591_v39 = vsel %vm226_vm6, %v2287_v58, %v2583_v56  ;;  %v2361_v55 = vrot.slane %v7577_v37, 2  ;;  %v1946_v22 = vmul.f32 %v5985_v57, %v7558_v41  ;;  %v5991_v56 = vld [vmem:[#allocation2 + $0xc4] sm:$0xf] }
 0x3f5   :  { %8699 = vst [vmem:[#allocation16_spill] sm:$0xff] %v7591_v39  ;;  %v2575_v63 = vsel %vm220_vm4, %v2217_v36, %v2574_v49  ;;  %v2305_v59 = vrot.slane %v2304_v45, 2  ;;  %v1938_v10 = vmul.f32 %v5986_v15, %v7562_v18  ;;  %v1947_v28 = vmul.f32 %v5987_v29, %v1865_v43  ;;  %v1823_v60 = vpop.permute.xlu0 %1822  ;;  %v5989_v36 = vld [vmem:[#allocation2 + $0xf4] sm:$0xf] }
 0x3f6   :  { %v2576_v26 = vsel %vm223_vm5, %v2224_v24, %v2575_v63  ;;  %v2612_v42 = vmul.f32 %v7591_v39, %v7301_v14  ;;  %v2365_v16 = vsel %vm1951_vm12, %v1946_v22, 0.0  ;;  %v1939_v35 = vmul.f32 %v5988_v44, %v1809_v62  ;;  %v5990_v24 = vld [vmem:[#allocation2 + $0xd4] sm:$0xf] }
 0x3f7   :  { %v7599_v3 = vsel %vm226_vm6, %v2231_v9, %v2576_v26  ;;  %v2366_v31 = vrot.slane %v2365_v16, 4  ;;  %v2309_v12 = vsel %vm1951_vm12, %v1938_v10, 0.0  ;;  %v2372_v18 = vsel %vm1951_vm12, %v1947_v28, 0.0 }
 0x3f8   :  { %8700 = vst [vmem:[#allocation23_spill] sm:$0xff] %v7599_v3  ;;  %v2611_v41 = vmul.f32 %v7599_v3, %v7296_v5  ;;  %v2292_v43 = vadd.f32 %v2291_v20, %v2290_v34  ;;  %v2310_v46 = vrot.slane %v2309_v12, 4  ;;  %v2373_v58 = vrot.slane %v2372_v18, 4  ;;  %v5992_v20 = vld [vmem:[#allocation2 + $0xd8] sm:$0xf] }
 0x3f9   :  { %v2316_v54 = vsel %vm1951_vm12, %v1939_v35, 0.0  ;;  %v2306_v33 = vadd.f32 %v2305_v59, %v2304_v45  ;;  %v1948_v62 = vmul.f32 %v5989_v36, %v1872_v6  ;;  %v2367_v4 = vadd.f32 %v2366_v31, %v2365_v16  ;;  %v1879_v6 = vpop.permute.xlu1 %1878 }
 0x3fa   :  { %v2617_v25 = vpack.c.bf16 %v2612_v42, %v2611_v41  ;;  %v2317_v7 = vrot.slane %v2316_v54, 4  ;;  %v2311_v53 = vadd.f32 %v2310_v46, %v2309_v12  ;;  %v1940_v47 = vmul.f32 %v5990_v24, %v1816_v38 }
 0x3fb   :  { %v1936_v49 = vmul.f32 %v5991_v56, %v1788_v51  ;;  %v2374_v9 = vadd.f32 %v2373_v58, %v2372_v18  ;;  %v2379_v34 = vsel %vm1951_vm12, %v1948_v62, 0.0  ;;  %v1941_v57 = vmul.f32 %v5992_v20, %v1823_v60  ;;  %v1830_v62 = vpop.permute.xlu0 %1829  ;;  %v5993_v20 = vld [vmem:[#allocation2 + $0xf8] sm:$0xf] }
 0x3fc   :  { %v2318_v63 = vadd.f32 %v2317_v7, %v2316_v54  ;;  %5462 = vmatpush3.bf16.msra.mxu1 %v2617_v25  ;;  %v2356_v22 = vrot.slane %v7587_v61, 1  ;;  %v2312_v45 = vrot.slane %v2311_v53, 2  ;;  %v2380_v59 = vrot.slane %v2379_v34, 4 }
 0x3fd   :  { %v2323_v26 = vsel %vm1951_vm12, %v1940_v47, 0.0  ;;  %5463 = vmatprep.subr.bf16.mxu1 %v8696_v0  ;;  %v7614_v38 = vadd.f32 %v2361_v55, %v7577_v37  ;;  %v2295_v29 = vsel %vm1951_vm12, %v1936_v49, 0.0  ;;  %v2293_v28 = vrot.slane %v2292_v43, 1  ;;  %v1886_v24 = vpop.permute.xlu1 %1885 }
 0x3fe   :  { %v2319_v15 = vrot.slane %v2318_v63, 2  ;;  %v2324_v10 = vrot.slane %v2323_v26, 4  ;;  %v2307_v42 = vrot.slane %v2306_v33, 1  ;;  %v2381_v16 = vadd.f32 %v2380_v59, %v2379_v34 }
 0x3ff   :  { %v2296_v44 = vrot.slane %v2295_v29, 4  ;;  %v2368_v35 = vrot.slane %v2367_v4, 2  ;;  %v2375_v51 = vrot.slane %v2374_v9, 2  ;;  %v2330_v31 = vsel %vm1951_vm12, %v1941_v57, 0.0 }
 0x400   :  { %v2325_v41 = vadd.f32 %v2324_v10, %v2323_v26  ;;  %v7621_v12 = vadd.f32 %v2349_v50, %v7570_v2  ;;  %v2313_v37 = vadd.f32 %v2312_v45, %v2311_v53  ;;  %v2357_v18 = vadd.f32 %v2356_v22, %v7587_v61  ;;  %v5994_v22 = vld [vmem:[#allocation2 + $0xdc] sm:$0xf] }
 0x401   :  { %v2297_v55 = vadd.f32 %v2296_v44, %v2295_v29  ;;  %v2320_v46 = vadd.f32 %v2319_v15, %v2318_v63  ;;  %v2331_v54 = vrot.slane %v2330_v31, 4  ;;  %v2294_v60 = vadd.f32 %v2293_v28, %v2292_v43  ;;  %v5995_v43 = vld [vmem:[#allocation2 + $0xfc] sm:$0xf] }
 0x402   :  { %v2326_v58 = vrot.slane %v2325_v41, 2  ;;  %v2363_v25 = vrot.slane %v7614_v38, 1  ;;  %v2382_v7 = vrot.slane %v2381_v16, 2  ;;  %v2308_v47 = vadd.f32 %v2307_v42, %v2306_v33 }
 0x403   :  { %v2298_v36 = vrot.slane %v2297_v55, 2  ;;  %v2369_v56 = vadd.f32 %v2368_v35, %v2367_v4  ;;  %v2376_v49 = vadd.f32 %v2375_v51, %v2374_v9  ;;  %v2332_v34 = vadd.f32 %v2331_v54, %v2330_v31 }
 0x404   :  { %v2314_v2 = vrot.slane %v2313_v37, 1  ;;  %v2327_v50 = vadd.f32 %v2326_v58, %v2325_v41  ;;  %v1949_v57 = vmul.f32 %v5993_v20, %v1879_v6  ;;  %v2321_v61 = vrot.slane %v2320_v46, 1 }
 0x405   :  { %v2299_v53 = vadd.f32 %v2298_v36, %v2297_v55  ;;  %v2333_v63 = vrot.slane %v2332_v34, 2  ;;  %v1942_v45 = vmul.f32 %v5994_v22, %v1830_v62  ;;  %v1950_v59 = vmul.f32 %v5995_v43, %v1886_v24 }
 0x406   :  { %v2383_v26 = vadd.f32 %v2382_v7, %v2381_v16  ;;  %v2386_v10 = vsel %vm1951_vm12, %v1949_v57, 0.0  ;;  %v2370_v29 = vrot.slane %v2369_v56, 1  ;;  %vm6167_vm10 = vmmov 0  }
 0x407   :  { %v2300_v15 = vrot.slane %v2299_v53, 1  ;;  %v2334_v33 = vadd.f32 %v2333_v63, %v2332_v34  ;;  %v2387_v4 = vrot.slane %v2386_v10, 4  ;;  %v2337_v9 = vsel %vm1951_vm12, %v1942_v45, 0.0  ;;  %5465 = vmatprep.mubr.msk.bf16.mxu1 %vm6167_vm10, %v8696_v0  ;;  %5485 = vmatprep.mubr.msk.bf16.mxu0 %vm6167_vm10, %v8696_v0 }
 0x408   :  { %v2328_v6 = vrot.slane %v2327_v50, 1  ;;  %v2338_v42 = vrot.slane %v2337_v9, 4  ;;  %v2393_v16 = vsel %vm1951_vm12, %v1950_v59, 0.0  ;;  %v2315_v44 = vadd.f32 %v2314_v2, %v2313_v37 }
 0x409   :  { %v2301_v28 = vadd.f32 %v2300_v15, %v2299_v53  ;;  %v2377_v35 = vrot.slane %v2376_v49, 1  ;;  %v2388_v51 = vadd.f32 %v2387_v4, %v2386_v10  ;;  %v2394_v41 = vrot.slane %v2393_v16, 4 }
 0x40a   :  { %v2322_v31 = vadd.f32 %v2321_v61, %v2320_v46  ;;  %v2384_v55 = vrot.slane %v2383_v26, 1  ;;  %v2339_v54 = vadd.f32 %v2338_v42, %v2337_v9  ;;  %v2335_v36 = vrot.slane %v2334_v33, 1  ;;  %v1434_v42 = vld [vmem:[%s8476_s3] sm:$0xff] }
 0x40b   :  { %v2585_v58 = vsel %vm208_vm0, %v2301_v28, %v2294_v60  ;;  %v2389_v62 = vrot.slane %v2388_v51, 2  ;;  %v2395_v24 = vadd.f32 %v2394_v41, %v2393_v16  ;;  %v2364_v34 = vadd.f32 %v2363_v25, %v7614_v38  ;;  %v1435_v16 = vld [vmem:[%s8476_s3 + $0x8] sm:$0xff] }
 0x40c   :  { %v2586_v7 = vsel %vm211_vm1, %v2308_v47, %v2585_v58  ;;  %v2329_v53 = vadd.f32 %v2328_v6, %v2327_v50  ;;  %v2340_v57 = vrot.slane %v2339_v54, 2  ;;  %v2371_v37 = vadd.f32 %v2370_v29, %v2369_v56  ;;  %v8704_v58 = vld [vmem:[#allocation34_spill] sm:$0xff] }
 0x40d   :  { %v2587_v20 = vsel %vm214_vm2, %v2315_v44, %v2586_v7  ;;  %v2390_v63 = vadd.f32 %v2389_v62, %v2388_v51  ;;  %v2396_v46 = vrot.slane %v2395_v24, 2  ;;  %v2592_v60 = vsel %vm208_vm0, %v2357_v18, %v7621_v12  ;;  %v8705_v62 = vld [vmem:[#allocation37_spill] sm:$0xff] }
 0x40e   :  { %v2588_v2 = vsel %vm217_vm3, %v2322_v31, %v2587_v20  ;;  %v2378_v61 = vadd.f32 %v2377_v35, %v2376_v49  ;;  %v2341_v22 = vadd.f32 %v2340_v57, %v2339_v54  ;;  %v2385_v45 = vadd.f32 %v2384_v55, %v2383_v26  ;;  %v8706_v20 = vld [vmem:[#allocation38_spill] sm:$0xff] }
 0x40f   :  { %v2589_v47 = vsel %vm220_vm4, %v2329_v53, %v2588_v2  ;;  %v2336_v43 = vadd.f32 %v2335_v36, %v2334_v33  ;;  %v2391_v59 = vrot.slane %v2390_v63, 1  ;;  %v2397_v38 = vadd.f32 %v2396_v46, %v2395_v24 }
 0x410   :  { %v2593_v25 = vsel %vm211_vm1, %v2364_v34, %v2592_v60  ;;  %v2342_v50 = vrot.slane %v2341_v22, 1  ;;  %v7662_v35 = vpack.c.bf16 %v1435_v16, %v1434_v42  ;;  %v2668_v42 = vld [vmem:[#allocation5 + $0x18] sm:$0xff] }
 0x411   :  { %v2594_v56 = vsel %vm214_vm2, %v2371_v37, %v2593_v25  ;;  %v2590_v15 = vsel %vm223_vm5, %v2336_v43, %v2589_v47  ;;  %v2392_v10 = vadd.f32 %v2391_v59, %v2390_v63  ;;  %v2398_v29 = vrot.slane %v2397_v38, 1  ;;  %v8707_v63 = vld [vmem:[#allocation20_spill] sm:$0xff]  ;;  %v8708_v25 = vld [vmem:[#allocation14_spill] sm:$0xff] }
 0x412   :  { %v2595_v4 = vsel %vm217_vm3, %v2378_v61, %v2594_v56  ;;  %v2343_v12 = vadd.f32 %v2342_v50, %v2341_v22  ;;  %8703 = vst [vmem:[#allocation26_spill] sm:$0xff] %v7662_v35 }
 0x413   :  { %v2596_v18 = vsel %vm220_vm4, %v2385_v45, %v2595_v4  ;;  %v2399_v49 = vadd.f32 %v2398_v29, %v2397_v38  ;;  %v8709_v29 = vld [vmem:[#allocation15_spill] sm:$0xff] }
 0x414   :  { %v2597_v26 = vsel %vm223_vm5, %v2392_v10, %v2596_v18  ;;  %v7647_v33 = vsel %vm226_vm6, %v2343_v12, %v2590_v15 }
 0x415   :  { %8701 = vst [vmem:[#allocation29_spill] sm:$0xff] %v7647_v33  ;;  %v7650_v9 = vsel %vm226_vm6, %v2399_v49, %v2597_v26  ;;  %v2613_v6 = vmul.f32 %v7284_v40, %v7647_v33  ;;  %v2665_v49 = vld [vmem:[#allocation5] sm:$0xff]  ;;  %v2666_v26 = vld [vmem:[#allocation5 + $0x8] sm:$0xff] }
 0x416   :  { %8702 = vst [vmem:[#allocation24_spill] sm:$0xff] %v7650_v9  ;;  %v2614_v28 = vmul.f32 %v7298_v19, %v7650_v9 }
 0x418   :  { %v2618_v44 = vpack.c.bf16 %v2614_v28, %v2613_v6  ;;  %v7716_v6 = vpack.c.bf16 %v2666_v26, %v2665_v49  ;;  %v2667_v28 = vld [vmem:[#allocation5 + $0x10] sm:$0xff]  ;;  %v2677_v49 = vld [vmem:[#allocation5 + $0x60] sm:$0xff]  ;;  %v2678_v26 = vld [vmem:[#allocation5 + $0x68] sm:$0xff] }
 0x41a   :  { %5464 = vmatpush3.bf16.msra.mxu1 %v2618_v44  ;;  %8710 = vst [vmem:[#allocation27_spill] sm:$0xff] %v7716_v6  ;;  %5470 = vmatpush3.bf16.msra.mxu0 %v7716_v6  ;;  %v7719_v44 = vpack.c.bf16 %v2668_v42, %v2667_v28  ;;  %v7772_v28 = vpack.c.bf16 %v2678_v26, %v2677_v49 }
 0x41b   :  { %5471 = vmatprep.subr.bf16.mxu0 %v8696_v0 }
 0x41c   :  { %8711 = vst [vmem:[#allocation28_spill] sm:$0xff] %v7719_v44  ;;  %8716 = vst [vmem:[#allocation35_spill] sm:$0xff] %v7772_v28 }
 0x41d   :  { %5466 = vmatmul.mubr.msk.bf16.vlgmr.msra.gmra.mrb[16].mxu1 %vm2619_vm15, %v7662_v35 }
 0x41e   :  { %5491 = vmatprep.mubr.msk.bf16.mxu1 %vm2401_vm11, %v7090_v17  ;;  %5472 = vmatpush3.bf16.msra.mxu0 %v7719_v44 }
 0x41f   :  { %5473 = vmatprep.subr.bf16.mxu0 %v8696_v0 }
 0x430   :  { %v1376_v51 = vpop.xlane.xlu0 %1375 }
 0x431   :  { %vm1398_vm7 = vcmp.eq.f32.partialorder %v7288_v52, %v1376_v51 }
 0x432   :  { %v5006_v41 = vsel %vm1398_vm7, 1.0, %v8696_v0 }
 0x433   :  { %v3311_v31 = vrot.slane %v5006_v41, %v7183_v30  ;;  %v3304_v55 = vrot.slane %v5006_v41, %v7180_v27  ;;  %v3318_v54 = vrot.slane %v5006_v41, %v8704_v58  ;;  %v3325_v24 = vrot.slane %v5006_v41, %v8705_v62 }
 0x434   :  { %v1382_v53 = vpop.xlane.xlu0 %1381  ;;  %v3332_v57 = vrot.slane %v5006_v41, %v8706_v20  ;;  %v3339_v46 = vrot.slane %v5006_v41, %v8707_v63  ;;  %v3346_v50 = vrot.slane %v5006_v41, %v8708_v25  ;;  %v3353_v4 = vrot.slane %v5006_v41, %v8709_v29 }
 0x435   :  { %3313 = vbcast.lane.b32.xlu0 %v3311_v31, 256  ;;  %3306 = vbcast.lane.b32.xlu1 %v3304_v55, 256  ;;  %vm1400_vm9 = vcmp.eq.f32.partialorder %v7288_v52, %v1382_v53  ;;  %v2669_v55 = vld [vmem:[#allocation5 + $0x20] sm:$0xff] }
 0x436   :  { %v7688_v61 = vsel %vm1400_vm9, 1.0, %v8696_v0 }
 0x437   :  { %v3416_v22 = vrot.slane %v7688_v61, %v7180_v27  ;;  %v3423_v56 = vrot.slane %v7688_v61, %v7183_v30  ;;  %v3430_v15 = vrot.slane %v7688_v61, %v8704_v58  ;;  %v3437_v18 = vrot.slane %v7688_v61, %v8705_v62 }
 0x438   :  { %v1379_v7 = vpop.xlane.xlu1 %1378  ;;  %v1385_v2 = vpop.xlane.xlu0 %1384  ;;  %v3444_v41 = vrot.slane %v7688_v61, %v8706_v20 }
 0x439   :  { %vm1399_vm8 = vcmp.eq.f32.partialorder %v7288_v52, %v1379_v7  ;;  %3320 = vbcast.lane.b32.xlu0 %v3318_v54, 256  ;;  %vm1401_vm13 = vcmp.eq.f32.partialorder %v7288_v52, %v1385_v2  ;;  %v2670_v54 = vld [vmem:[#allocation5 + $0x28] sm:$0xff]  ;;  %v2672_v2 = vld [vmem:[#allocation5 + $0x38] sm:$0xff] }
 0x43a   :  { %v7675_v36 = vsel %vm1399_vm8, 1.0, %v8696_v0  ;;  %v7696_v45 = vsel %vm1401_vm13, 1.0, %v8696_v0 }
 0x43b   :  { %v3360_v34 = vrot.slane %v7675_v36, %v7180_v27  ;;  %v3367_v37 = vrot.slane %v7675_v36, %v7183_v30  ;;  %v3374_v60 = vrot.slane %v7675_v36, %v8704_v58  ;;  %v3381_v47 = vrot.slane %v7675_v36, %v8705_v62 }
 0x43c   :  { %v3388_v43 = vrot.slane %v7675_v36, %v8706_v20  ;;  %v3472_v59 = vrot.slane %v7696_v45, %v7180_v27  ;;  %v3395_v38 = vrot.slane %v7675_v36, %v8707_v63  ;;  %v3479_v10 = vrot.slane %v7696_v45, %v7183_v30  ;;  %v1388_v16 = vpop.xlane.xlu1 %1387  ;;  %v1391_v31 = vpop.xlane.xlu0 %1390 }
 0x43d   :  { %3327 = vbcast.lane.b32.xlu0 %v3325_v24, 256  ;;  %3362 = vbcast.lane.b32.xlu1 %v3360_v34, 256  ;;  %v3402_v12 = vrot.slane %v7675_v36, %v8708_v25  ;;  %v3486_v51 = vrot.slane %v7696_v45, %v8704_v58  ;;  %vm1402_vm14 = vcmp.eq.f32.partialorder %v7288_v52, %v1388_v16 }
 0x43e   :  { %v3409_v7 = vrot.slane %v7675_v36, %v8709_v29  ;;  %v3451_v24 = vrot.slane %v7688_v61, %v8707_v63  ;;  %v7733_v34 = vpack.c.bf16 %v2670_v54, %v2669_v55  ;;  %v7736_v53 = vsel %vm1402_vm14, 1.0, %v8696_v0 }
 0x43f   :  { %vm1403_vm7 = vcmp.eq.f32.partialorder %v7288_v52, %v1391_v31  ;;  %v3528_v36 = vrot.slane %v7736_v53, %v7180_v27  ;;  %v3465_v16 = vrot.slane %v7688_v61, %v8709_v29  ;;  %v3514_v31 = vrot.slane %v7696_v45, %v8708_v25 }
 0x440   :  { %8712 = vst [vmem:[#allocation30_spill] sm:$0xff] %v7733_v34  ;;  %5474 = vmatpush3.bf16.msra.mxu0 %v7733_v34  ;;  %v3549_v55 = vrot.slane %v7736_v53, %v8705_v62 }
 0x441   :  { %3334 = vbcast.lane.b32.xlu0 %v3332_v57, 256  ;;  %3369 = vbcast.lane.b32.xlu1 %v3367_v37, 256  ;;  %v3493_v57 = vrot.slane %v7696_v45, %v8705_v62  ;;  %v2671_v37 = vld [vmem:[#allocation5 + $0x30] sm:$0xff] }
 0x442   :  { %5475 = vmatprep.subr.bf16.mxu0 %v8696_v0 }
 0x445   :  { %3341 = vbcast.lane.b32.xlu0 %v3339_v46, 256  ;;  %3376 = vbcast.lane.b32.xlu1 %v3374_v60, 256  ;;  %v7746_v46 = vsel %vm1403_vm7, 1.0, %v8696_v0  ;;  %v7748_v60 = vpack.c.bf16 %v2672_v2, %v2671_v37  ;;  %v3563_v37 = vrot.slane %v7736_v53, %v8707_v63 }
 0x446   :  { %v3591_v42 = vrot.slane %v7746_v46, %v7183_v30 }
 0x447   :  { %8713 = vst [vmem:[#allocation25_spill] sm:$0xff] %v7748_v60  ;;  %5476 = vmatpush3.bf16.msra.mxu0 %v7748_v60 }
 0x448   :  { %5477 = vmatprep.subr.bf16.mxu0 %v8696_v0 }
 0x449   :  { %3383 = vbcast.lane.b32.xlu1 %v3381_v47, 256  ;;  %3418 = vbcast.lane.b32.xlu0 %v3416_v22, 256  ;;  %v3500_v47 = vrot.slane %v7696_v45, %v8706_v20  ;;  %v3584_v22 = vrot.slane %v7746_v46, %v7180_v27 }
 0x44d   :  { %3390 = vbcast.lane.b32.xlu1 %v3388_v43, 256  ;;  %3474 = vbcast.lane.b32.xlu0 %v3472_v59, 256  ;;  %v2673_v43 = vld [vmem:[#allocation5 + $0x40] sm:$0xff]  ;;  %v2674_v59 = vld [vmem:[#allocation5 + $0x48] sm:$0xff] }
 0x451   :  { %3397 = vbcast.lane.b32.xlu1 %v3395_v38, 256  ;;  %3348 = vbcast.lane.b32.xlu0 %v3346_v50, 256  ;;  %v7756_v38 = vpack.c.bf16 %v2674_v59, %v2673_v43  ;;  %v2675_v50 = vld [vmem:[#allocation5 + $0x50] sm:$0xff] }
 0x453   :  { %8714 = vst [vmem:[#allocation31_spill] sm:$0xff] %v7756_v38  ;;  %5478 = vmatpush3.bf16.msra.mxu0 %v7756_v38 }
 0x454   :  { %5479 = vmatprep.subr.bf16.mxu0 %v8696_v0 }
 0x455   :  { %3425 = vbcast.lane.b32.xlu1 %v3423_v56, 256  ;;  %3432 = vbcast.lane.b32.xlu0 %v3430_v15, 256  ;;  %v2676_v56 = vld [vmem:[#allocation5 + $0x58] sm:$0xff]  ;;  %v3507_v15 = vrot.slane %v7696_v45, %v8707_v63 }
 0x459   :  { %3481 = vbcast.lane.b32.xlu1 %v3479_v10, 256  ;;  %3355 = vbcast.lane.b32.xlu0 %v3353_v4, 256  ;;  %v3458_v10 = vrot.slane %v7688_v61, %v8708_v25  ;;  %v7763_v4 = vpack.c.bf16 %v2676_v56, %v2675_v50  ;;  %v3598_v61 = vrot.slane %v7746_v46, %v8704_v58 }
 0x45a   :  { %v3570_v50 = vrot.slane %v7736_v53, %v8708_v25 }
 0x45b   :  { %8715 = vst [vmem:[#allocation39_spill] sm:$0xff] %v7763_v4  ;;  %5480 = vmatpush3.bf16.msra.mxu0 %v7763_v4 }
 0x45c   :  { %5481 = vmatprep.subr.bf16.mxu0 %v8696_v0 }
 0x45d   :  { %3404 = vbcast.lane.b32.xlu1 %v3402_v12, 256  ;;  %3439 = vbcast.lane.b32.xlu0 %v3437_v18, 256  ;;  %v3535_v12 = vrot.slane %v7736_v53, %v7183_v30  ;;  %v3542_v18 = vrot.slane %v7736_v53, %v8704_v58 }
 0x45f   :  { %5482 = vmatpush3.bf16.msra.mxu0 %v7772_v28 }
 0x460   :  { %5483 = vmatprep.subr.bf16.mxu0 %v8696_v0 }
 0x461   :  { %3488 = vbcast.lane.b32.xlu1 %v3486_v51, 256  ;;  %3446 = vbcast.lane.b32.xlu0 %v3444_v41, 256  ;;  %v2679_v51 = vld [vmem:[#allocation5 + $0x70] sm:$0xff]  ;;  %v2680_v41 = vld [vmem:[#allocation5 + $0x78] sm:$0xff] }
 0x462   :  { %v7784_v54 = vpack.c.bf16 %v2680_v41, %v2679_v51 }
 0x464   :  { %8717 = vst [vmem:[#allocation40_spill] sm:$0xff] %v7784_v54  ;;  %5484 = vmatpush3.bf16.msra.mxu0 %v7784_v54 }
 0x465   :  { %3411 = vbcast.lane.b32.xlu1 %v3409_v7, 256  ;;  %3453 = vbcast.lane.b32.xlu0 %v3451_v24, 256  ;;  %v1394_v7 = vpop.xlane.xlu1 %1393  ;;  %v3556_v24 = vrot.slane %v7736_v53, %v8706_v20 }
 0x466   :  { %vm1404_vm8 = vcmp.eq.f32.partialorder %v7288_v52, %v1394_v7 }
 0x467   :  { %v5012_v2 = vsel %vm1404_vm8, 1.0, %v8696_v0 }
 0x468   :  { %v3647_v56 = vrot.slane %v5012_v2, %v7183_v30  ;;  %v3668_v26 = vrot.slane %v5012_v2, %v8706_v20 }
 0x469   :  { %3495 = vbcast.lane.b32.xlu1 %v3493_v57, 256  ;;  %3530 = vbcast.lane.b32.xlu0 %v3528_v36, 256  ;;  %v1397_v57 = vpop.xlane.xlu0 %1396  ;;  %v3521_v36 = vrot.slane %v7696_v45, %v8709_v29  ;;  %v3612_v45 = vrot.slane %v7746_v46, %v8706_v20 }
 0x46a   :  { %vm1405_vm9 = vcmp.eq.f32.partialorder %v7288_v52, %v1397_v57  ;;  %v3619_v52 = vrot.slane %v7746_v46, %v8707_v63 }
 0x46b   :  { %v7802_v43 = vsel %vm1405_vm9, 1.0, %v8696_v0 }
 0x46c   :  { %v3696_v59 = vrot.slane %v7802_v43, %v7180_v27  ;;  %v3710_v49 = vrot.slane %v7802_v43, %v8704_v58  ;;  %v3717_v41 = vrot.slane %v7802_v43, %v8705_v62 }
 0x46d   :  { %3502 = vbcast.lane.b32.xlu1 %v3500_v47, 256  ;;  %3586 = vbcast.lane.b32.xlu0 %v3584_v22, 256  ;;  %v3605_v47 = vrot.slane %v7746_v46, %v8705_v62  ;;  %v3640_v22 = vrot.slane %v5012_v2, %v7180_v27  ;;  %v3577_v27 = vrot.slane %v7736_v53, %v8709_v29 }
 0x46e   :  { %v3675_v53 = vrot.slane %v5012_v2, %v8707_v63 }
 0x471   :  { %3509 = vbcast.lane.b32.xlu1 %v3507_v15, 256  ;;  %3460 = vbcast.lane.b32.xlu0 %v3458_v10, 256  ;;  %v3654_v15 = vrot.slane %v5012_v2, %v8704_v58  ;;  %v3703_v10 = vrot.slane %v7802_v43, %v7183_v30 }
 0x475   :  { %3537 = vbcast.lane.b32.xlu1 %v3535_v12, 256  ;;  %3544 = vbcast.lane.b32.xlu0 %v3542_v18, 256  ;;  %v3626_v12 = vrot.slane %v7746_v46, %v8708_v25  ;;  %v3661_v18 = vrot.slane %v5012_v2, %v8705_v62 }
 0x479   :  { %3593 = vbcast.lane.b32.xlu1 %v3591_v42, 256  ;;  %3467 = vbcast.lane.b32.xlu0 %v3465_v16, 256  ;;  %v3633_v42 = vrot.slane %v7746_v46, %v8709_v29 }
 0x47d   :  { %3516 = vbcast.lane.b32.xlu1 %v3514_v31, 256  ;;  %3551 = vbcast.lane.b32.xlu0 %v3549_v55, 256  ;;  %v3682_v31 = vrot.slane %v5012_v2, %v8708_v25  ;;  %v5996_v55 = vld [vmem:[#allocation2] sm:$0xf] }
 0x481   :  { %3600 = vbcast.lane.b32.xlu1 %v3598_v61, 256  ;;  %3558 = vbcast.lane.b32.xlu0 %v3556_v24, 256  ;;  %v5997_v61 = vld [vmem:[#allocation2 + $0x4] sm:$0xf] }
 0x485   :  { %3523 = vbcast.lane.b32.xlu1 %v3521_v36, 256  ;;  %3565 = vbcast.lane.b32.xlu0 %v3563_v37, 256 }
 0x489   :  { %3607 = vbcast.lane.b32.xlu1 %v3605_v47, 256  ;;  %3642 = vbcast.lane.b32.xlu0 %v3640_v22, 256  ;;  %v3724_v22 = vrot.slane %v7802_v43, %v8706_v20 }
 0x48d   :  { %3614 = vbcast.lane.b32.xlu1 %v3612_v45, 256  ;;  %3698 = vbcast.lane.b32.xlu0 %v3696_v59, 256  ;;  %v3689_v45 = vrot.slane %v5012_v2, %v8709_v29  ;;  %v5998_v59 = vld [vmem:[#allocation2 + $0x8] sm:$0xf] }
 0x491   :  { %3621 = vbcast.lane.b32.xlu1 %v3619_v52, 256  ;;  %3572 = vbcast.lane.b32.xlu0 %v3570_v50, 256 }
 0x495   :  { %3649 = vbcast.lane.b32.xlu1 %v3647_v56, 256  ;;  %3656 = vbcast.lane.b32.xlu0 %v3654_v15, 256 }
 0x499   :  { %3705 = vbcast.lane.b32.xlu1 %v3703_v10, 256  ;;  %3579 = vbcast.lane.b32.xlu0 %v3577_v27, 256 }
 0x49d   :  { %3628 = vbcast.lane.b32.xlu1 %v3626_v12, 256  ;;  %3663 = vbcast.lane.b32.xlu0 %v3661_v18, 256 }
 0x4a1   :  { %3712 = vbcast.lane.b32.xlu1 %v3710_v49, 256  ;;  %3670 = vbcast.lane.b32.xlu0 %v3668_v26, 256  ;;  %v3731_v26 = vrot.slane %v7802_v43, %v8707_v63 }
 0x4a5   :  { %3635 = vbcast.lane.b32.xlu1 %v3633_v42, 256  ;;  %3677 = vbcast.lane.b32.xlu0 %v3675_v53, 256  ;;  %v5999_v42 = vld [vmem:[#allocation2 + $0x20] sm:$0xf] }
 0x4a7   :  { %v3307_v16 = vpop.permute.xlu1 %3306  ;;  %v3314_v51 = vpop.permute.xlu0 %3313 }
 0x4a8   :  { %v3749_v7 = vmul.f32 %v5996_v55, %v3307_v16  ;;  %v3750_v24 = vmul.f32 %v5997_v61, %v3314_v51  ;;  %v6000_v16 = vld [vmem:[#allocation2 + $0xc] sm:$0xf]  ;;  %v3738_v61 = vrot.slane %v7802_v43, %v8708_v25 }
 0x4a9   :  { %3719 = vbcast.lane.b32.xlu1 %v3717_v41, 256  ;;  %3684 = vbcast.lane.b32.xlu0 %v3682_v31, 256 }
 0x4aa   :  { %v3813_v57 = vsel %vm1951_vm12, %v3749_v7, 0.0  ;;  %v3820_v46 = vsel %vm1951_vm12, %v3750_v24, 0.0 }
 0x4ab   :  { %v3814_v36 = vrot.slane %v3813_v57, 4  ;;  %v3821_v37 = vrot.slane %v3820_v46, 4  ;;  %v3321_v47 = vpop.permute.xlu0 %3320 }
 0x4ac   :  { %v3751_v52 = vmul.f32 %v5998_v59, %v3321_v47 }
 0x4ad   :  { %v3815_v50 = vadd.f32 %v3814_v36, %v3813_v57  ;;  %v3822_v56 = vadd.f32 %v3821_v37, %v3820_v46  ;;  %3726 = vbcast.lane.b32.xlu1 %v3724_v22, 256  ;;  %3691 = vbcast.lane.b32.xlu0 %v3689_v45, 256  ;;  %v6001_v45 = vld [vmem:[#allocation2 + $0x24] sm:$0xf] }
 0x4ae   :  { %v3827_v15 = vsel %vm1951_vm12, %v3751_v52, 0.0  ;;  %v6002_v52 = vld [vmem:[#allocation2 + $0x10] sm:$0xf] }
 0x4af   :  { %v3816_v10 = vrot.slane %v3815_v50, 2  ;;  %v3823_v27 = vrot.slane %v3822_v56, 2  ;;  %v3828_v12 = vrot.slane %v3827_v15, 4  ;;  %v3363_v18 = vpop.permute.xlu1 %3362  ;;  %v3328_v49 = vpop.permute.xlu0 %3327 }
 0x4b0   :  { %v3757_v53 = vmul.f32 %v5999_v42, %v3363_v18  ;;  %v3752_v2 = vmul.f32 %v6000_v16, %v3328_v49 }
 0x4b1   :  { %v3817_v51 = vadd.f32 %v3816_v10, %v3815_v50  ;;  %v3824_v41 = vadd.f32 %v3823_v27, %v3822_v56  ;;  %v3829_v31 = vadd.f32 %v3828_v12, %v3827_v15  ;;  %3733 = vbcast.lane.b32.xlu1 %v3731_v26, 256  ;;  %v3745_v26 = vrot.slane %v7802_v43, %v8709_v29 }
 0x4b2   :  { %v3869_v55 = vsel %vm1951_vm12, %v3757_v53, 0.0  ;;  %v3834_v7 = vsel %vm1951_vm12, %v3752_v2, 0.0 }
 0x4b3   :  { %v3818_v24 = vrot.slane %v3817_v51, 1  ;;  %v3825_v57 = vrot.slane %v3824_v41, 1  ;;  %v3830_v46 = vrot.slane %v3829_v31, 2  ;;  %v3870_v36 = vrot.slane %v3869_v55, 4  ;;  %v3370_v37 = vpop.permute.xlu1 %3369  ;;  %v3335_v47 = vpop.permute.xlu0 %3334 }
 0x4b4   :  { %v3835_v22 = vrot.slane %v3834_v7, 4  ;;  %v3758_v59 = vmul.f32 %v6001_v45, %v3370_v37  ;;  %v3753_v50 = vmul.f32 %v6002_v52, %v3335_v47 }
 0x4b5   :  { %v3819_v56 = vadd.f32 %v3818_v24, %v3817_v51  ;;  %v3826_v15 = vadd.f32 %v3825_v57, %v3824_v41  ;;  %v3831_v10 = vadd.f32 %v3830_v46, %v3829_v31  ;;  %v3871_v27 = vadd.f32 %v3870_v36, %v3869_v55  ;;  %3740 = vbcast.lane.b32.xlu1 %v3738_v61, 256  ;;  %v6003_v31 = vld [vmem:[#allocation2 + $0x28] sm:$0xf]  ;;  %v6004_v61 = vld [vmem:[#allocation2 + $0x14] sm:$0xf] }
 0x4b6   :  { %v3836_v12 = vadd.f32 %v3835_v22, %v3834_v7  ;;  %v3876_v18 = vsel %vm1951_vm12, %v3758_v59, 0.0  ;;  %v3841_v49 = vsel %vm1951_vm12, %v3753_v50, 0.0 }
 0x4b7   :  { %v4325_v42 = vsel %vm208_vm0, %v3826_v15, %v3819_v56  ;;  %v3832_v53 = vrot.slane %v3831_v10, 1  ;;  %v3872_v16 = vrot.slane %v3871_v27, 2  ;;  %v3877_v2 = vrot.slane %v3876_v18, 4  ;;  %v3377_v37 = vpop.permute.xlu1 %3376  ;;  %v3342_v47 = vpop.permute.xlu0 %3341 }
 0x4b8   :  { %v3837_v51 = vrot.slane %v3836_v12, 2  ;;  %v3842_v41 = vrot.slane %v3841_v49, 4  ;;  %v3759_v55 = vmul.f32 %v6003_v31, %v3377_v37  ;;  %v3754_v7 = vmul.f32 %v6004_v61, %v3342_v47 }
 0x4b9   :  { %v3833_v24 = vadd.f32 %v3832_v53, %v3831_v10  ;;  %v3873_v57 = vadd.f32 %v3872_v16, %v3871_v27  ;;  %v3878_v46 = vadd.f32 %v3877_v2, %v3876_v18  ;;  %3747 = vbcast.lane.b32.xlu1 %v3745_v26, 256  ;;  %v6005_v10 = vld [vmem:[#allocation2 + $0x2c] sm:$0xf] }
 0x4ba   :  { %v3838_v36 = vadd.f32 %v3837_v51, %v3836_v12  ;;  %v3843_v22 = vadd.f32 %v3842_v41, %v3841_v49  ;;  %v3883_v29 = vsel %vm1951_vm12, %v3759_v55, 0.0  ;;  %v3848_v43 = vsel %vm1951_vm12, %v3754_v7, 0.0  ;;  %v6006_v49 = vld [vmem:[#allocation2 + $0x40] sm:$0xf] }
 0x4bb   :  { %v4326_v45 = vsel %vm211_vm1, %v3833_v24, %v4325_v42  ;;  %v3874_v59 = vrot.slane %v3873_v57, 1  ;;  %v3879_v52 = vrot.slane %v3878_v46, 2  ;;  %v3884_v50 = vrot.slane %v3883_v29, 4  ;;  %v3384_v56 = vpop.permute.xlu1 %3383  ;;  %v3419_v15 = vpop.permute.xlu0 %3418 }
 0x4bc   :  { %v3839_v37 = vrot.slane %v3838_v36, 1  ;;  %v3844_v31 = vrot.slane %v3843_v22, 2  ;;  %v3849_v47 = vrot.slane %v3848_v43, 4  ;;  %v3760_v27 = vmul.f32 %v6005_v10, %v3384_v56 }
 0x4bd   :  { %v3875_v18 = vadd.f32 %v3874_v59, %v3873_v57  ;;  %v3880_v26 = vadd.f32 %v3879_v52, %v3878_v46  ;;  %v3885_v12 = vadd.f32 %v3884_v50, %v3883_v29  ;;  %v3765_v53 = vmul.f32 %v6006_v49, %v3419_v15 }
 0x4be   :  { %v3840_v16 = vadd.f32 %v3839_v37, %v3838_v36  ;;  %v3845_v2 = vadd.f32 %v3844_v31, %v3843_v22  ;;  %v3850_v51 = vadd.f32 %v3849_v47, %v3848_v43  ;;  %v3890_v42 = vsel %vm1951_vm12, %v3760_v27, 0.0  ;;  %v6007_v36 = vld [vmem:[#allocation2 + $0x30] sm:$0xf]  ;;  %v6008_v37 = vld [vmem:[#allocation2 + $0x60] sm:$0xf] }
 0x4bf   :  { %v3881_v41 = vrot.slane %v3880_v26, 1  ;;  %v3886_v55 = vrot.slane %v3885_v12, 2  ;;  %v3891_v61 = vrot.slane %v3890_v42, 4  ;;  %v3925_v7 = vsel %vm1951_vm12, %v3765_v53, 0.0  ;;  %v3391_v24 = vpop.permute.xlu1 %3390  ;;  %v3475_v62 = vpop.permute.xlu0 %3474 }
 0x4c0   :  { %v4327_v54 = vsel %vm214_vm2, %v3840_v16, %v4326_v45  ;;  %v3846_v56 = vrot.slane %v3845_v2, 1  ;;  %v3851_v57 = vrot.slane %v3850_v51, 2  ;;  %v3926_v46 = vrot.slane %v3925_v7, 4 }
 0x4c1   :  { %v3882_v29 = vadd.f32 %v3881_v41, %v3880_v26  ;;  %v3887_v59 = vadd.f32 %v3886_v55, %v3885_v12  ;;  %v3892_v52 = vadd.f32 %v3891_v61, %v3890_v42  ;;  %v3761_v22 = vmul.f32 %v6007_v36, %v3391_v24 }
 0x4c2   :  { %v3847_v43 = vadd.f32 %v3846_v56, %v3845_v2  ;;  %v3852_v50 = vadd.f32 %v3851_v57, %v3850_v51  ;;  %v3927_v15 = vadd.f32 %v3926_v46, %v3925_v7  ;;  %v3773_v31 = vmul.f32 %v6008_v37, %v3475_v62  ;;  %v6009_v51 = vld [vmem:[#allocation2 + $0x34] sm:$0xf] }
 0x4c3   :  { %v4332_v47 = vsel %vm208_vm0, %v3882_v29, %v3875_v18  ;;  %v3888_v10 = vrot.slane %v3887_v59, 1  ;;  %v3893_v27 = vrot.slane %v3892_v52, 2  ;;  %v3897_v49 = vsel %vm1951_vm12, %v3761_v22, 0.0  ;;  %v3398_v45 = vpop.permute.xlu1 %3397  ;;  %v3349_v53 = vpop.permute.xlu0 %3348  ;;  %v6010_v29 = vld [vmem:[#allocation2 + $0x18] sm:$0xf] }
 0x4c4   :  { %v4328_v16 = vsel %vm217_vm3, %v3847_v43, %v4327_v54  ;;  %v3853_v26 = vrot.slane %v3852_v50, 1  ;;  %v3928_v12 = vrot.slane %v3927_v15, 2  ;;  %v3898_v42 = vrot.slane %v3897_v49, 4 }
 0x4c5   :  { %v3889_v41 = vadd.f32 %v3888_v10, %v3887_v59  ;;  %v3894_v55 = vadd.f32 %v3893_v27, %v3892_v52  ;;  %v3981_v2 = vsel %vm1951_vm12, %v3773_v31, 0.0  ;;  %v3762_v61 = vmul.f32 %v6009_v51, %v3398_v45 }
 0x4c6   :  { %v3854_v62 = vadd.f32 %v3853_v26, %v3852_v50  ;;  %v3929_v7 = vadd.f32 %v3928_v12, %v3927_v15  ;;  %v3899_v18 = vadd.f32 %v3898_v42, %v3897_v49  ;;  %v3982_v24 = vrot.slane %v3981_v2, 4  ;;  %v6011_v15 = vld [vmem:[#allocation2 + $0x44] sm:$0xf]  ;;  %v6012_v12 = vld [vmem:[#allocation2 + $0x48] sm:$0xf] }
 0x4c7   :  { %v4333_v56 = vsel %vm211_vm1, %v3889_v41, %v4332_v47  ;;  %v3895_v57 = vrot.slane %v3894_v55, 1  ;;  %v3904_v46 = vsel %vm1951_vm12, %v3762_v61, 0.0  ;;  %v3755_v54 = vmul.f32 %v6010_v29, %v3349_v53  ;;  %v3426_v36 = vpop.permute.xlu1 %3425  ;;  %v3433_v22 = vpop.permute.xlu0 %3432 }
 0x4c8   :  { %v7860_v59 = vsel %vm220_vm4, %v3854_v62, %v4328_v16  ;;  %v3900_v52 = vrot.slane %v3899_v18, 2  ;;  %v3983_v43 = vadd.f32 %v3982_v24, %v3981_v2  ;;  %v3905_v31 = vrot.slane %v3904_v46, 4 }
 0x4c9   :  { %v3896_v37 = vadd.f32 %v3895_v57, %v3894_v55  ;;  %v3855_v50 = vsel %vm1951_vm12, %v3755_v54, 0.0  ;;  %v3766_v10 = vmul.f32 %v6011_v15, %v3426_v36  ;;  %v3930_v27 = vrot.slane %v3929_v7, 1  ;;  %v6013_v57 = vld [vmem:[#allocation2 + $0x64] sm:$0xf] }
 0x4ca   :  { %v3901_v47 = vadd.f32 %v3900_v52, %v3899_v18  ;;  %v3856_v49 = vrot.slane %v3855_v50, 4  ;;  %v3906_v26 = vadd.f32 %v3905_v31, %v3904_v46  ;;  %v3767_v42 = vmul.f32 %v6012_v12, %v3433_v22  ;;  %v6014_v18 = vld [vmem:[#allocation2 + $0x1c] sm:$0xf] }
 0x4cb   :  { %v4334_v45 = vsel %vm214_vm2, %v3896_v37, %v4333_v56  ;;  %v3932_v53 = vsel %vm1951_vm12, %v3766_v10, 0.0  ;;  %v3482_v16 = vpop.permute.xlu1 %3481  ;;  %v3356_v41 = vpop.permute.xlu0 %3355  ;;  %v3984_v2 = vrot.slane %v3983_v43, 2  ;;  %v3931_v36 = vadd.f32 %v3930_v27, %v3929_v7 }
 0x4cc   :  { %v3902_v51 = vrot.slane %v3901_v47, 1  ;;  %v3857_v55 = vadd.f32 %v3856_v49, %v3855_v50  ;;  %v3933_v61 = vrot.slane %v3932_v53, 4  ;;  %v3907_v62 = vrot.slane %v3906_v26, 2 }
 0x4cd   :  { %v3939_v24 = vsel %vm1951_vm12, %v3767_v42, 0.0  ;;  %v3774_v29 = vmul.f32 %v6013_v57, %v3482_v16  ;;  %v3756_v54 = vmul.f32 %v6014_v18, %v3356_v41  ;;  %v3985_v12 = vadd.f32 %v3984_v2, %v3983_v43 }
 0x4ce   :  { %v3903_v56 = vadd.f32 %v3902_v51, %v3901_v47  ;;  %v3858_v46 = vrot.slane %v3857_v55, 2  ;;  %v3934_v52 = vadd.f32 %v3933_v61, %v3932_v53  ;;  %v3908_v37 = vadd.f32 %v3907_v62, %v3906_v26  ;;  %v6015_v53 = vld [vmem:[#allocation2 + $0x38] sm:$0xf]  ;;  %v6016_v51 = vld [vmem:[#allocation2 + $0x4c] sm:$0xf] }
 0x4cf   :  { %v3940_v31 = vrot.slane %v3939_v24, 4  ;;  %v3988_v22 = vsel %vm1951_vm12, %v3774_v29, 0.0  ;;  %v3862_v15 = vsel %vm1951_vm12, %v3756_v54, 0.0  ;;  %v3405_v10 = vpop.permute.xlu1 %3404  ;;  %v3440_v50 = vpop.permute.xlu0 %3439 }
 0x4d0   :  { %v4335_v49 = vsel %vm217_vm3, %v3903_v56, %v4334_v45  ;;  %v3859_v42 = vadd.f32 %v3858_v46, %v3857_v55  ;;  %v3935_v28 = vrot.slane %v3934_v52, 2  ;;  %v3909_v16 = vrot.slane %v3908_v37, 1 }
 0x4d1   :  { %v3941_v57 = vadd.f32 %v3940_v31, %v3939_v24  ;;  %v3989_v41 = vrot.slane %v3988_v22, 4  ;;  %v3863_v7 = vrot.slane %v3862_v15, 4  ;;  %v3763_v26 = vmul.f32 %v6015_v53, %v3405_v10 }
 0x4d2   :  { %v3860_v27 = vrot.slane %v3859_v42, 1  ;;  %v3936_v47 = vadd.f32 %v3935_v28, %v3934_v52  ;;  %v3768_v61 = vmul.f32 %v6016_v51, %v3440_v50  ;;  %v3910_v62 = vadd.f32 %v3909_v16, %v3908_v37 }
 0x4d3   :  { %v3942_v29 = vrot.slane %v3941_v57, 2  ;;  %v3990_v18 = vadd.f32 %v3989_v41, %v3988_v22  ;;  %v3864_v54 = vadd.f32 %v3863_v7, %v3862_v15  ;;  %v3489_v4 = vpop.permute.xlu1 %3488  ;;  %v3447_v38 = vpop.permute.xlu0 %3446  ;;  %v3911_v2 = vsel %vm1951_vm12, %v3763_v26, 0.0 }
 0x4d4   :  { %v3861_v45 = vadd.f32 %v3860_v27, %v3859_v42  ;;  %v3937_v43 = vrot.slane %v3936_v47, 1  ;;  %v3946_v55 = vsel %vm1951_vm12, %v3768_v61, 0.0  ;;  %v3986_v24 = vrot.slane %v3985_v12, 1  ;;  %v6017_v42 = vld [vmem:[#allocation2 + $0x68] sm:$0xf] }
 0x4d5   :  { %v7872_v56 = vsel %vm220_vm4, %v3910_v62, %v4335_v49  ;;  %v3943_v28 = vadd.f32 %v3942_v29, %v3941_v57  ;;  %v3991_v46 = vrot.slane %v3990_v18, 2  ;;  %v3912_v31 = vrot.slane %v3911_v2, 4  ;;  %v6018_v57 = vld [vmem:[#allocation2 + $0x50] sm:$0xf] }
 0x4d6   :  { %v7876_v52 = vsel %vm223_vm5, %v3861_v45, %v7860_v59  ;;  %v3938_v37 = vadd.f32 %v3937_v43, %v3936_v47  ;;  %v3947_v22 = vrot.slane %v3946_v55, 4  ;;  %v3865_v50 = vrot.slane %v3864_v54, 2 }
 0x4d7   :  { %v3944_v15 = vrot.slane %v3943_v28, 1  ;;  %v3992_v10 = vadd.f32 %v3991_v46, %v3990_v18  ;;  %v3775_v16 = vmul.f32 %v6017_v42, %v3489_v4  ;;  %v3412_v41 = vpop.permute.xlu1 %3411  ;;  %v3454_v7 = vpop.permute.xlu0 %3453  ;;  %v3913_v49 = vadd.f32 %v3912_v31, %v3911_v2 }
 0x4d8   :  { %v4339_v27 = vsel %vm208_vm0, %v3938_v37, %v3931_v36  ;;  %v3948_v53 = vadd.f32 %v3947_v22, %v3946_v55  ;;  %v3769_v26 = vmul.f32 %v6018_v57, %v3447_v38  ;;  %v3987_v51 = vadd.f32 %v3986_v24, %v3985_v12  ;;  %v6019_v24 = vld [vmem:[#allocation2 + $0x3c] sm:$0xf] }
 0x4d9   :  { %v3945_v61 = vadd.f32 %v3944_v15, %v3943_v28  ;;  %v3993_v59 = vrot.slane %v3992_v10, 1  ;;  %v3995_v47 = vsel %vm1951_vm12, %v3775_v16, 0.0  ;;  %v3914_v62 = vrot.slane %v3913_v49, 2  ;;  %v6020_v15 = vld [vmem:[#allocation2 + $0x54] sm:$0xf] }
 0x4da   :  { %v3949_v29 = vrot.slane %v3948_v53, 2  ;;  %v3996_v45 = vrot.slane %v3995_v47, 4  ;;  %v3953_v18 = vsel %vm1951_vm12, %v3769_v26, 0.0  ;;  %v7882_v46 = vadd.f32 %v3865_v50, %v3864_v54  ;;  %v6021_v16 = vld [vmem:[#allocation2 + $0x6c] sm:$0xf] }
 0x4db   :  { %v4340_v4 = vsel %vm211_vm1, %v3945_v61, %v4339_v27  ;;  %v3994_v43 = vadd.f32 %v3993_v59, %v3992_v10  ;;  %v3954_v36 = vrot.slane %v3953_v18, 4  ;;  %v3496_v2 = vpop.permute.xlu1 %3495  ;;  %v3531_v55 = vpop.permute.xlu0 %3530  ;;  %v3915_v37 = vadd.f32 %v3914_v62, %v3913_v49 }
 0x4dc   :  { %v3950_v38 = vadd.f32 %v3949_v29, %v3948_v53  ;;  %v3997_v12 = vadd.f32 %v3996_v45, %v3995_v47  ;;  %v3764_v28 = vmul.f32 %v6019_v24, %v3412_v41  ;;  %v3770_v42 = vmul.f32 %v6020_v15, %v3454_v7 }
 0x4dd   :  { %v4346_v31 = vsel %vm208_vm0, %v3994_v43, %v3987_v51  ;;  %v3955_v22 = vadd.f32 %v3954_v36, %v3953_v18  ;;  %v3776_v57 = vmul.f32 %v6021_v16, %v3496_v2  ;;  %v3916_v26 = vrot.slane %v3915_v37, 1  ;;  %v6022_v43 = vld [vmem:[#allocation2 + $0x80] sm:$0xf] }
 0x4de   :  { %v3951_v27 = vrot.slane %v3950_v38, 1  ;;  %v3998_v10 = vrot.slane %v3997_v12, 2  ;;  %v3918_v54 = vsel %vm1951_vm12, %v3764_v28, 0.0  ;;  %v3960_v49 = vsel %vm1951_vm12, %v3770_v42, 0.0 }
 0x4df   :  { %v3956_v50 = vrot.slane %v3955_v22, 2  ;;  %v3919_v61 = vrot.slane %v3918_v54, 4  ;;  %v4002_v53 = vsel %vm1951_vm12, %v3776_v57, 0.0  ;;  %v3503_v59 = vpop.permute.xlu1 %3502  ;;  %v3587_v41 = vpop.permute.xlu0 %3586  ;;  %v3917_v47 = vadd.f32 %v3916_v26, %v3915_v37 }
 0x4e0   :  { %v3952_v51 = vadd.f32 %v3951_v27, %v3950_v38  ;;  %v3999_v62 = vadd.f32 %v3998_v10, %v3997_v12  ;;  %v3961_v29 = vrot.slane %v3960_v49, 4  ;;  %v4003_v18 = vrot.slane %v4002_v53, 4  ;;  %v6023_v10 = vld [vmem:[#allocation2 + $0x70] sm:$0xf] }
 0x4e1   :  { %v3957_v7 = vadd.f32 %v3956_v50, %v3955_v22  ;;  %v3920_v45 = vadd.f32 %v3919_v61, %v3918_v54  ;;  %v3781_v36 = vmul.f32 %v6022_v43, %v3531_v55  ;;  %v7890_v2 = vsel %vm223_vm5, %v3917_v47, %v7872_v56  ;;  %v6024_v56 = vld [vmem:[#allocation2 + $0xa0] sm:$0xf] }
 0x4e2   :  { %v4341_v24 = vsel %vm214_vm2, %v3952_v51, %v4340_v4  ;;  %v4000_v28 = vrot.slane %v3999_v62, 1  ;;  %v3962_v15 = vadd.f32 %v3961_v29, %v3960_v49  ;;  %v4004_v57 = vadd.f32 %v4003_v18, %v4002_v53 }
 0x4e3   :  { %v3958_v42 = vrot.slane %v3957_v7, 1  ;;  %v3921_v16 = vrot.slane %v3920_v45, 2  ;;  %v4037_v37 = vsel %vm1951_vm12, %v3781_v36, 0.0  ;;  %v3510_v38 = vpop.permute.xlu1 %3509  ;;  %v3461_v12 = vpop.permute.xlu0 %3460  ;;  %v3777_v55 = vmul.f32 %v6023_v10, %v3503_v59 }
 0x4e4   :  { %v4001_v22 = vadd.f32 %v4000_v28, %v3999_v62  ;;  %v3963_v26 = vrot.slane %v3962_v15, 2  ;;  %v4038_v27 = vrot.slane %v4037_v37, 4  ;;  %v4005_v50 = vrot.slane %v4004_v57, 2  ;;  %v6025_v28 = vld [vmem:[#allocation2 + $0x74] sm:$0xf] }
 0x4e5   :  { %v3959_v54 = vadd.f32 %v3958_v42, %v3957_v7  ;;  %v3789_v61 = vmul.f32 %v6024_v56, %v3587_v41  ;;  %v3922_v47 = vadd.f32 %v3921_v16, %v3920_v45  ;;  %v4009_v51 = vsel %vm1951_vm12, %v3777_v55, 0.0 }
 0x4e6   :  { %v4347_v4 = vsel %vm211_vm1, %v4001_v22, %v4346_v31  ;;  %v4039_v49 = vadd.f32 %v4038_v27, %v4037_v37  ;;  %v4006_v29 = vadd.f32 %v4005_v50, %v4004_v57  ;;  %v4010_v18 = vrot.slane %v4009_v51, 4 }
 0x4e7   :  { %v7897_v53 = vsel %vm217_vm3, %v3959_v54, %v4341_v24  ;;  %v3538_v62 = vpop.permute.xlu1 %3537  ;;  %v3545_v43 = vpop.permute.xlu0 %3544  ;;  %v3867_v36 = vrot.slane %v7882_v46, 1  ;;  %v3964_v59 = vadd.f32 %v3963_v26, %v3962_v15  ;;  %v4093_v7 = vsel %vm1951_vm12, %v3789_v61, 0.0  ;;  %v6026_v24 = vld [vmem:[#allocation2 + $0x58] sm:$0xf]  ;;  %v6027_v61 = vld [vmem:[#allocation2 + $0x84] sm:$0xf] }
 0x4e8   :  { %v3778_v41 = vmul.f32 %v6025_v28, %v3510_v38  ;;  %v4007_v42 = vrot.slane %v4006_v29, 1  ;;  %v4011_v31 = vadd.f32 %v4010_v18, %v4009_v51  ;;  %v4094_v45 = vrot.slane %v4093_v7, 4 }
 0x4e9   :  { %v3923_v16 = vrot.slane %v3922_v47, 1  ;;  %v4040_v37 = vrot.slane %v4039_v49, 2  ;;  %v3771_v27 = vmul.f32 %v6026_v24, %v3461_v12  ;;  %v7903_v15 = vadd.f32 %v3867_v36, %v7882_v46 }
 0x4ea   :  { %v4016_v22 = vsel %vm1951_vm12, %v3778_v41, 0.0  ;;  %v4008_v57 = vadd.f32 %v4007_v42, %v4006_v29  ;;  %v4012_v10 = vrot.slane %v4011_v31, 2  ;;  %v4095_v55 = vadd.f32 %v4094_v45, %v4093_v7  ;;  %v6028_v42 = vld [vmem:[#allocation2 + $0x88] sm:$0xf] }
 0x4eb   :  { %v4017_v54 = vrot.slane %v4016_v22, 4  ;;  %v3594_v50 = vpop.permute.xlu1 %3593  ;;  %v3468_v56 = vpop.permute.xlu0 %3467  ;;  %v3965_v26 = vrot.slane %v3964_v59, 1  ;;  %v3967_v38 = vsel %vm1951_vm12, %v3771_v27, 0.0  ;;  %v3782_v51 = vmul.f32 %v6027_v61, %v3538_v62 }
 0x4ec   :  { %v4348_v18 = vsel %vm214_vm2, %v4008_v57, %v4347_v4  ;;  %v4013_v28 = vadd.f32 %v4012_v10, %v4011_v31  ;;  %v4096_v41 = vrot.slane %v4095_v55, 2  ;;  %v7907_v12 = vadd.f32 %v3923_v16, %v3922_v47  ;;  %v6029_v4 = vld [vmem:[#allocation2 + $0xa4] sm:$0xf]  ;;  %v6030_v57 = vld [vmem:[#allocation2 + $0x5c] sm:$0xf] }
 0x4ed   :  { %v4018_v60 = vadd.f32 %v4017_v54, %v4016_v22  ;;  %v3968_v29 = vrot.slane %v3967_v38, 4  ;;  %v4044_v7 = vsel %vm1951_vm12, %v3782_v51, 0.0  ;;  %v3783_v45 = vmul.f32 %v6028_v42, %v3545_v43 }
 0x4ee   :  { %v4041_v24 = vadd.f32 %v4040_v37, %v4039_v49  ;;  %v4014_v46 = vrot.slane %v4013_v28, 1  ;;  %v4045_v34 = vrot.slane %v4044_v7, 4  ;;  %v3790_v31 = vmul.f32 %v6029_v4, %v3594_v50 }
 0x4ef   :  { %v4019_v36 = vrot.slane %v4018_v60, 2  ;;  %v3517_v44 = vpop.permute.xlu1 %3516  ;;  %v3552_v27 = vpop.permute.xlu0 %3551  ;;  %v3969_v6 = vadd.f32 %v3968_v29, %v3967_v38  ;;  %v4051_v62 = vsel %vm1951_vm12, %v3783_v45, 0.0  ;;  %v3772_v22 = vmul.f32 %v6030_v57, %v3468_v56 }
 0x4f0   :  { %v4015_v47 = vadd.f32 %v4014_v46, %v4013_v28  ;;  %v4097_v16 = vadd.f32 %v4096_v41, %v4095_v55  ;;  %v4046_v54 = vadd.f32 %v4045_v34, %v4044_v7  ;;  %v2657_v51 = vpop.f32.mrb[16].mxu1  ;;  %v4052_v43 = vrot.slane %v4051_v62, 4 }
 0x4f1   :  { %v4020_v10 = vadd.f32 %v4019_v36, %v4018_v60  ;;  %v3970_v61 = vrot.slane %v3969_v6, 2  ;;  %v4100_v49 = vsel %vm1951_vm12, %v3790_v31, 0.0  ;;  %v3974_v37 = vsel %vm1951_vm12, %v3772_v22, 0.0  ;;  %v5467_v45 = vpop.f32.mrb[17].mxu1  ;;  %v6031_v31 = vld [vmem:[#allocation2 + $0x78] sm:$0xf] }
 0x4f2   :  { %v3966_v42 = vadd.f32 %v3965_v26, %v3964_v59  ;;  %v4349_v38 = vsel %vm217_vm3, %v4015_v47, %v4348_v18  ;;  %v4047_v25 = vrot.slane %v4046_v54, 2  ;;  %v2660_v56 = vpop.f32.mrb[18].mxu1  ;;  %v4053_v28 = vadd.f32 %v4052_v43, %v4051_v62 }
 0x4f3   :  { %v4021_v29 = vrot.slane %v4020_v10, 1  ;;  %v3601_v50 = vpop.permute.xlu1 %3600  ;;  %v3971_v4 = vadd.f32 %v3970_v61, %v3969_v6  ;;  %v4101_v55 = vrot.slane %v4100_v49, 4  ;;  %v3975_v60 = vrot.slane %v3974_v37, 4  ;;  %v3559_v34 = vpop.permute.xlu0 %3558  ;;  %v6032_v61 = vld [vmem:[#allocation2 + $0x8c] sm:$0xf] }
 0x4f4   :  { %v4042_v41 = vrot.slane %v4041_v24, 1  ;;  %v2664_v7 = vpack.c.bf16 %v2660_v56, %v2657_v51  ;;  %v5468_v46 = vpop.f32.mrb[19].mxu1  ;;  %v4048_v36 = vadd.f32 %v4047_v25, %v4046_v54  ;;  %v3779_v57 = vmul.f32 %v6031_v31, %v3517_v44  ;;  %v6033_v54 = vld [vmem:[#allocation2 + $0xa8] sm:$0xf] }
 0x4f5   :  { %v4098_v22 = vrot.slane %v4097_v16, 1  ;;  %v4054_v59 = vrot.slane %v4053_v28, 2  ;;  %v4102_v26 = vadd.f32 %v4101_v55, %v4100_v49  ;;  %v3976_v18 = vadd.f32 %v3975_v60, %v3974_v37 }
 0x4f6   :  { %v4022_v47 = vadd.f32 %v4021_v29, %v4020_v10  ;;  %v4049_v45 = vrot.slane %v4048_v36, 1  ;;  %5486 = vmatmul.mubr.bf16.vlgmr.msra.gmra.mrb[24].mxu0 %v2664_v7  ;;  %v4023_v6 = vsel %vm1951_vm12, %v3779_v57, 0.0  ;;  %v3784_v62 = vmul.f32 %v6032_v61, %v3552_v27 }
 0x4f7   :  { %v3524_v43 = vpop.permute.xlu1 %3523  ;;  %v3972_v63 = vrot.slane %v3971_v4, 1  ;;  %v4055_v35 = vadd.f32 %v4054_v59, %v4053_v28  ;;  %v4103_v39 = vrot.slane %v4102_v26, 2  ;;  %v3977_v51 = vrot.slane %v3976_v18, 2  ;;  %v3566_v56 = vpop.permute.xlu0 %3565  ;;  %5533 = vmatprep.mubr.msk.bf16.mxu0 %vm2401_vm11, %v7090_v17 }
 0x4f8   :  { %v4343_v25 = vsel %vm220_vm4, %v3966_v42, %v7897_v53  ;;  %v4024_v44 = vrot.slane %v4023_v6, 4  ;;  %v4058_v10 = vsel %vm1951_vm12, %v3784_v62, 0.0  ;;  %v3791_v49 = vmul.f32 %v6033_v54, %v3601_v50  ;;  %v6034_v50 = vld [vmem:[#allocation2 + $0x90] sm:$0xf] }
 0x4f9   :  { %v4043_v37 = vadd.f32 %v4042_v41, %v4041_v24  ;;  %v4050_v29 = vadd.f32 %v4049_v45, %v4048_v36  ;;  %v4056_v27 = vrot.slane %v4055_v35, 1  ;;  %v4104_v55 = vadd.f32 %v4103_v39, %v4102_v26  ;;  %v6035_v41 = vld [vmem:[#allocation2 + $0x7c] sm:$0xf] }
 0x4fa   :  { %v7920_v60 = vadd.f32 %v4098_v22, %v4097_v16  ;;  %v4025_v28 = vadd.f32 %v4024_v44, %v4023_v6  ;;  %v4059_v7 = vrot.slane %v4058_v10, 4  ;;  %v4107_v46 = vsel %vm1951_vm12, %v3791_v49, 0.0 }
 0x4fb   :  { %v3608_v31 = vpop.permute.xlu1 %3607  ;;  %v4350_v57 = vsel %vm220_vm4, %v4022_v47, %v4349_v38  ;;  %v3973_v59 = vadd.f32 %v3972_v63, %v3971_v4  ;;  %v3978_v53 = vadd.f32 %v3977_v51, %v3976_v18  ;;  %v4108_v42 = vrot.slane %v4107_v46, 4  ;;  %v3643_v61 = vpop.permute.xlu0 %3642 }
 0x4fc   :  { %v4026_v62 = vrot.slane %v4025_v28, 2  ;;  %v4060_v17 = vadd.f32 %v4059_v7, %v4058_v10  ;;  %v3785_v24 = vmul.f32 %v6034_v50, %v3559_v34  ;;  %v3780_v36 = vmul.f32 %v6035_v41, %v3524_v43  ;;  %v6036_v43 = vld [vmem:[#allocation2 + $0x94] sm:$0xf]  ;;  %v6038_v7 = vld [vmem:[#allocation2 + $0xc0] sm:$0xf] }
 0x4fd   :  { %v4353_v39 = vsel %vm208_vm0, %v4050_v29, %v4043_v37  ;;  %v4057_v16 = vadd.f32 %v4056_v27, %v4055_v35  ;;  %v4105_v22 = vrot.slane %v4104_v55, 1  ;;  %v4109_v26 = vadd.f32 %v4108_v42, %v4107_v46  ;;  %v6037_v37 = vld [vmem:[#allocation2 + $0xac] sm:$0xf] }
 0x4fe   :  { %v4027_v45 = vadd.f32 %v4026_v62, %v4025_v28  ;;  %v4061_v6 = vrot.slane %v4060_v17, 2  ;;  %v4065_v44 = vsel %vm1951_vm12, %v3785_v24, 0.0  ;;  %v4030_v63 = vsel %vm1951_vm12, %v3780_v36, 0.0 }
 0x4ff   :  { %v3615_v38 = vpop.permute.xlu1 %3614  ;;  %v3979_v4 = vrot.slane %v3978_v53, 1  ;;  %v4110_v18 = vrot.slane %v4109_v26, 2  ;;  %v4066_v47 = vrot.slane %v4065_v44, 4  ;;  %v4031_v51 = vrot.slane %v4030_v63, 4  ;;  %v3699_v10 = vpop.permute.xlu0 %3698 }
 0x500   :  { %v4028_v34 = vrot.slane %v4027_v45, 1  ;;  %v4062_v54 = vadd.f32 %v4061_v6, %v4060_v17  ;;  %v3786_v49 = vmul.f32 %v6036_v43, %v3566_v56  ;;  %v3792_v35 = vmul.f32 %v6037_v37, %v3608_v31 }
 0x501   :  { %v4111_v29 = vadd.f32 %v4110_v18, %v4109_v26  ;;  %v4067_v27 = vadd.f32 %v4066_v47, %v4065_v44  ;;  %v4032_v28 = vadd.f32 %v4031_v51, %v4030_v63  ;;  %v3797_v46 = vmul.f32 %v6038_v7, %v3643_v61  ;;  %v6039_v51 = vld [vmem:[#allocation2 + $0xb0] sm:$0xf]  ;;  %v6040_v7 = vld [vmem:[#allocation2 + $0xe0] sm:$0xf] }
 0x502   :  { %v7928_v42 = vsel %vm223_vm5, %v3973_v59, %v4343_v25  ;;  %v4106_v62 = vadd.f32 %v4105_v22, %v4104_v55  ;;  %v4072_v50 = vsel %vm1951_vm12, %v3786_v49, 0.0  ;;  %v4114_v24 = vsel %vm1951_vm12, %v3792_v35, 0.0 }
 0x503   :  { %v3622_v41 = vpop.permute.xlu1 %3621  ;;  %v4029_v36 = vadd.f32 %v4028_v34, %v4027_v45  ;;  %v4068_v17 = vrot.slane %v4067_v27, 2  ;;  %v4033_v6 = vrot.slane %v4032_v28, 2  ;;  %v4073_v56 = vrot.slane %v4072_v50, 4  ;;  %v3573_v43 = vpop.permute.xlu0 %3572 }
 0x504   :  { %v4354_v31 = vsel %vm211_vm1, %v4057_v16, %v4353_v39  ;;  %v7933_v26 = vadd.f32 %v3979_v4, %v3978_v53  ;;  %v4115_v44 = vrot.slane %v4114_v24, 4  ;;  %v4149_v61 = vsel %vm1951_vm12, %v3797_v46, 0.0 }
 0x505   :  { %v4063_v25 = vrot.slane %v4062_v54, 1  ;;  %v4112_v59 = vrot.slane %v4111_v29, 1  ;;  %v4069_v55 = vadd.f32 %v4068_v17, %v4067_v27  ;;  %v4074_v22 = vadd.f32 %v4073_v56, %v4072_v50 }
 0x506   :  { %v4034_v63 = vadd.f32 %v4033_v6, %v4032_v28  ;;  %v4116_v18 = vadd.f32 %v4115_v44, %v4114_v24  ;;  %v4150_v47 = vrot.slane %v4149_v61, 4  ;;  %v3793_v45 = vmul.f32 %v6039_v51, %v3615_v38 }
 0x507   :  { %v3650_v34 = vpop.permute.xlu1 %3649  ;;  %v4360_v49 = vsel %vm208_vm0, %v4106_v62, %v7920_v60  ;;  %v7939_v39 = vsel %vm223_vm5, %v4029_v36, %v4350_v57  ;;  %v4070_v53 = vrot.slane %v4069_v55, 1  ;;  %v4075_v16 = vrot.slane %v4074_v22, 2  ;;  %v3657_v4 = vpop.permute.xlu0 %3656  ;;  %v6041_v62 = vld [vmem:[#allocation2 + $0xb4] sm:$0xf] }
 0x508   :  { %v4117_v37 = vrot.slane %v4116_v18, 2  ;;  %v4151_v35 = vadd.f32 %v4150_v47, %v4149_v61  ;;  %v4121_v27 = vsel %vm1951_vm12, %v3793_v45, 0.0  ;;  %v3805_v28 = vmul.f32 %v6040_v7, %v3699_v10 }
 0x509   :  { %v4064_v46 = vadd.f32 %v4063_v25, %v4062_v54  ;;  %v4113_v50 = vadd.f32 %v4112_v59, %v4111_v29  ;;  %v4076_v24 = vadd.f32 %v4075_v16, %v4074_v22  ;;  %v4122_v38 = vrot.slane %v4121_v27, 4  ;;  %v6042_v54 = vld [vmem:[#allocation2 + $0x98] sm:$0xf] }
 0x50a   :  { %v4035_v17 = vrot.slane %v4034_v63, 1  ;;  %v4118_v6 = vadd.f32 %v4117_v37, %v4116_v18  ;;  %v4205_v60 = vsel %vm1951_vm12, %v3805_v28, 0.0  ;;  %v3794_v57 = vmul.f32 %v6041_v62, %v3622_v41 }
 0x50b   :  { %v3706_v36 = vpop.permute.xlu1 %3705  ;;  %v4077_v56 = vrot.slane %v4076_v24, 1  ;;  %v4152_v44 = vrot.slane %v4151_v35, 2  ;;  %v4123_v51 = vadd.f32 %v4122_v38, %v4121_v27  ;;  %v4206_v3 = vrot.slane %v4205_v60, 4  ;;  %v3580_v61 = vpop.permute.xlu0 %3579  ;;  %v6043_v27 = vld [vmem:[#allocation2 + $0xc4] sm:$0xf] }
 0x50c   :  { %v4071_v47 = vadd.f32 %v4070_v53, %v4069_v55  ;;  %v4119_v45 = vrot.slane %v4118_v6, 1  ;;  %v4128_v10 = vsel %vm1951_vm12, %v3794_v57, 0.0  ;;  %v3787_v29 = vmul.f32 %v6042_v54, %v3573_v43  ;;  %v6044_v54 = vld [vmem:[#allocation2 + $0xc8] sm:$0xf] }
 0x50d   :  { %v4355_v25 = vsel %vm214_vm2, %v4064_v46, %v4354_v31  ;;  %v4124_v59 = vrot.slane %v4123_v51, 2  ;;  %v4207_v22 = vadd.f32 %v4206_v3, %v4205_v60  ;;  %v4129_v18 = vrot.slane %v4128_v10, 4 }
 0x50e   :  { %v4361_v16 = vsel %vm211_vm1, %v4113_v50, %v4360_v49  ;;  %v7946_v41 = vadd.f32 %v4035_v17, %v4034_v63  ;;  %v4079_v37 = vsel %vm1951_vm12, %v3787_v29, 0.0  ;;  %v3798_v7 = vmul.f32 %v6043_v27, %v3650_v34  ;;  %v6045_v34 = vld [vmem:[#allocation2 + $0xe4] sm:$0xf] }
 0x50f   :  { %v3629_v28 = vpop.permute.xlu1 %3628  ;;  %v4078_v55 = vadd.f32 %v4077_v56, %v4076_v24  ;;  %v4153_v53 = vadd.f32 %v4152_v44, %v4151_v35  ;;  %v4125_v38 = vadd.f32 %v4124_v59, %v4123_v51  ;;  %v4130_v62 = vadd.f32 %v4129_v18, %v4128_v10  ;;  %v3664_v57 = vpop.permute.xlu0 %3663  ;;  %v6046_v24 = vld [vmem:[#allocation2 + $0x9c] sm:$0xf] }
 0x510   :  { %v4356_v43 = vsel %vm217_vm3, %v4071_v47, %v4355_v25  ;;  %v4120_v31 = vadd.f32 %v4119_v45, %v4118_v6  ;;  %v4080_v46 = vrot.slane %v4079_v37, 4  ;;  %v4156_v3 = vsel %vm1951_vm12, %v3798_v7, 0.0 }
 0x511   :  { %v4126_v60 = vrot.slane %v4125_v38, 1  ;;  %v4208_v49 = vrot.slane %v4207_v22, 2  ;;  %v4131_v63 = vrot.slane %v4130_v62, 2  ;;  %v4157_v50 = vrot.slane %v4156_v3, 4 }
 0x512   :  { %v4081_v17 = vadd.f32 %v4080_v46, %v4079_v37  ;;  %v3799_v29 = vmul.f32 %v6044_v54, %v3657_v4  ;;  %v3806_v27 = vmul.f32 %v6045_v34, %v3706_v36  ;;  %v3788_v35 = vmul.f32 %v6046_v24, %v3580_v61 }
 0x513   :  { %v3713_v56 = vpop.permute.xlu1 %3712  ;;  %v7952_v44 = vsel %vm220_vm4, %v4078_v55, %v4356_v43  ;;  %v4154_v51 = vrot.slane %v4153_v53, 1  ;;  %v4132_v6 = vadd.f32 %v4131_v63, %v4130_v62  ;;  %v4158_v47 = vadd.f32 %v4157_v50, %v4156_v3  ;;  %v3671_v61 = vpop.permute.xlu0 %3670  ;;  %v6047_v63 = vld [vmem:[#allocation2 + $0xb8] sm:$0xf] }
 0x514   :  { %v4082_v45 = vrot.slane %v4081_v17, 2  ;;  %v4163_v10 = vsel %vm1951_vm12, %v3799_v29, 0.0  ;;  %v4212_v25 = vsel %vm1951_vm12, %v3806_v27, 0.0  ;;  %v4086_v59 = vsel %vm1951_vm12, %v3788_v35, 0.0  ;;  %v6048_v29 = vld [vmem:[#allocation2 + $0xcc] sm:$0xf] }
 0x515   :  { %v4362_v4 = vsel %vm214_vm2, %v4120_v31, %v4361_v16  ;;  %v4127_v18 = vadd.f32 %v4126_v60, %v4125_v38  ;;  %v4209_v36 = vadd.f32 %v4208_v49, %v4207_v22  ;;  %v4159_v37 = vrot.slane %v4158_v47, 2 }
 0x516   :  { %v4083_v7 = vadd.f32 %v4082_v45, %v4081_v17  ;;  %v4164_v46 = vrot.slane %v4163_v10, 4  ;;  %v4213_v55 = vrot.slane %v4212_v25, 4  ;;  %v4087_v43 = vrot.slane %v4086_v59, 4 }
 0x517   :  { %v3636_v54 = vpop.permute.xlu1 %3635  ;;  %v4133_v62 = vrot.slane %v4132_v6, 1  ;;  %v4160_v3 = vadd.f32 %v4159_v37, %v4158_v47  ;;  %v3795_v50 = vmul.f32 %v6047_v63, %v3629_v28  ;;  %v3800_v34 = vmul.f32 %v6048_v29, %v3664_v57  ;;  %v6049_v57 = vld [vmem:[#allocation2 + $0xe8] sm:$0xf] }
 0x518   :  { %v4084_v27 = vrot.slane %v4083_v7, 1  ;;  %v4165_v24 = vadd.f32 %v4164_v46, %v4163_v10  ;;  %v4214_v35 = vadd.f32 %v4213_v55, %v4212_v25  ;;  %v4088_v9 = vadd.f32 %v4087_v43, %v4086_v59  ;;  %v3678_v10 = vpop.permute.xlu0 %3677 }
 0x519   :  { %v4155_v16 = vadd.f32 %v4154_v51, %v4153_v53  ;;  %v4210_v38 = vrot.slane %v4209_v36, 1  ;;  %v4135_v22 = vsel %vm1951_vm12, %v3795_v50, 0.0  ;;  %v4170_v31 = vsel %vm1951_vm12, %v3800_v34, 0.0 }
 0x51a   :  { %v4161_v60 = vrot.slane %v4160_v3, 1  ;;  %v4166_v49 = vrot.slane %v4165_v24, 2  ;;  %v4215_v17 = vrot.slane %v4214_v35, 2  ;;  %v4089_v45 = vrot.slane %v4088_v9, 2 }
 0x51b   :  { %v3720_v33 = vpop.permute.xlu1 %3719  ;;  %v4363_v47 = vsel %vm217_vm3, %v4127_v18, %v4362_v4  ;;  %v4136_v28 = vrot.slane %v4135_v22, 4  ;;  %v4171_v37 = vrot.slane %v4170_v31, 4  ;;  %v3807_v63 = vmul.f32 %v6049_v57, %v3713_v56  ;;  %v6051_v56 = vld [vmem:[#allocation2 + $0xbc] sm:$0xf] }
 0x51c   :  { %v4134_v25 = vadd.f32 %v4133_v62, %v4132_v6  ;;  %v4085_v59 = vadd.f32 %v4084_v27, %v4083_v7  ;;  %v4167_v53 = vadd.f32 %v4166_v49, %v4165_v24  ;;  %v4216_v51 = vadd.f32 %v4215_v17, %v4214_v35  ;;  %v3685_v35 = vpop.permute.xlu0 %3684 }
 0x51d   :  { %v4211_v46 = vadd.f32 %v4210_v38, %v4209_v36  ;;  %v4137_v55 = vadd.f32 %v4136_v28, %v4135_v22  ;;  %v4172_v43 = vadd.f32 %v4171_v37, %v4170_v31  ;;  %v4219_v50 = vsel %vm1951_vm12, %v3807_v63, 0.0  ;;  %v6054_v37 = vld [vmem:[#allocation2 + $0xd8] sm:$0xf] }
 0x51e   :  { %v4162_v29 = vadd.f32 %v4161_v60, %v4160_v3  ;;  %v4168_v34 = vrot.slane %v4167_v53, 1  ;;  %v4090_v32 = vadd.f32 %v4089_v45, %v4088_v9  ;;  %v4220_v23 = vrot.slane %v4219_v50, 4 }
 0x51f   :  { %v3727_v21 = vpop.permute.xlu1 %3726  ;;  %v4138_v4 = vrot.slane %v4137_v55, 2  ;;  %v4173_v18 = vrot.slane %v4172_v43, 2  ;;  %v3801_v0 = vmul.f32 %v6050_v11, %v3671_v61  ;;  %v3796_v57 = vmul.f32 %v6051_v56, %v3636_v54 }
 0x520   :  { %v4364_v6 = vsel %vm220_vm4, %v4134_v25, %v4363_v47  ;;  %v7965_v36 = vsel %vm223_vm5, %v4085_v59, %v7952_v44  ;;  %v4217_v7 = vrot.slane %v4216_v51, 1  ;;  %v4221_v62 = vadd.f32 %v4220_v23, %v4219_v50  ;;  %v6052_v44 = vld [vmem:[#allocation2 + $0xd4] sm:$0xf]  ;;  %v6053_v47 = vld [vmem:[#allocation2 + $0xec] sm:$0xf] }
 0x521   :  { %v4139_v27 = vadd.f32 %v4138_v4, %v4137_v55  ;;  %v4174_v3 = vadd.f32 %v4173_v18, %v4172_v43  ;;  %v4177_v9 = vsel %vm1951_vm12, %v3801_v0, 0.0  ;;  %v4142_v24 = vsel %vm1951_vm12, %v3796_v57, 0.0  ;;  %v3692_v4 = vpop.permute.xlu0 %3691 }
 0x522   :  { %v4367_v38 = vsel %vm208_vm0, %v4162_v29, %v4155_v16  ;;  %v4091_v11 = vrot.slane %v4090_v32, 1  ;;  %v4222_v61 = vrot.slane %v4221_v62, 2  ;;  %v4178_v54 = vrot.slane %v4177_v9, 4 }
 0x523   :  { %v3734_v22 = vpop.permute.xlu1 %3733  ;;  %v4169_v31 = vadd.f32 %v4168_v34, %v4167_v53  ;;  %v4140_v60 = vrot.slane %v4139_v27, 1  ;;  %v4143_v49 = vrot.slane %v4142_v24, 4  ;;  %v3802_v17 = vmul.f32 %v6052_v44, %v3678_v10 }
 0x524   :  { %v4218_v45 = vadd.f32 %v4217_v7, %v4216_v51  ;;  %v4179_v23 = vadd.f32 %v4178_v54, %v4177_v9  ;;  %v3808_v28 = vmul.f32 %v6053_v47, %v3720_v33  ;;  %v3803_v0 = vmul.f32 %v6054_v37, %v3685_v35 }
 0x525   :  { %v4175_v63 = vrot.slane %v4174_v3, 1  ;;  %v4223_v25 = vadd.f32 %v4222_v61, %v4221_v62  ;;  %v4144_v59 = vadd.f32 %v4143_v49, %v4142_v24  ;;  %v4184_v16 = vsel %vm1951_vm12, %v3802_v17, 0.0  ;;  %v6055_v24 = vld [vmem:[#allocation2 + $0xf0] sm:$0xf] }
 0x526   :  { %v4141_v55 = vadd.f32 %v4140_v60, %v4139_v27  ;;  %v4180_v43 = vrot.slane %v4179_v23, 2  ;;  %v4185_v50 = vrot.slane %v4184_v16, 4  ;;  %v4226_v53 = vsel %vm1951_vm12, %v3808_v28, 0.0 }
 0x527   :  { %v4368_v29 = vsel %vm211_vm1, %v4169_v31, %v4367_v38  ;;  %v7973_v34 = vadd.f32 %v4091_v11, %v4090_v32  ;;  %v4145_v10 = vrot.slane %v4144_v59, 2  ;;  %v4227_v51 = vrot.slane %v4226_v53, 4  ;;  %v3741_v33 = vpop.permute.xlu1 %3740  ;;  %v6056_v11 = vld [vmem:[#allocation2 + $0xdc] sm:$0xf] }
 0x528   :  { %v4374_v18 = vsel %vm208_vm0, %v4218_v45, %v4211_v46  ;;  %v4181_v56 = vadd.f32 %v4180_v43, %v4179_v23  ;;  %v4186_v57 = vadd.f32 %v4185_v50, %v4184_v16  ;;  %v4191_v7 = vsel %vm1951_vm12, %v3803_v0, 0.0  ;;  %v6057_v16 = vld [vmem:[#allocation2 + $0xf4] sm:$0xf] }
 0x529   :  { %v4176_v62 = vadd.f32 %v4175_v63, %v4174_v3  ;;  %v4228_v27 = vadd.f32 %v4227_v51, %v4226_v53  ;;  %v4192_v9 = vrot.slane %v4191_v7, 4  ;;  %v3809_v35 = vmul.f32 %v6055_v24, %v3727_v21  ;;  %v6058_v53 = vld [vmem:[#allocation2 + $0xf8] sm:$0xf] }
 0x52a   :  { %v7978_v61 = vsel %vm223_vm5, %v4141_v55, %v4364_v6  ;;  %v4224_v32 = vrot.slane %v4223_v25, 1  ;;  %v4187_v38 = vrot.slane %v4186_v57, 2  ;;  %v3804_v54 = vmul.f32 %v6056_v11, %v3692_v4 }
 0x52b   :  { %v4146_v31 = vadd.f32 %v4145_v10, %v4144_v59  ;;  %v4229_v60 = vrot.slane %v4228_v27, 2  ;;  %v4193_v49 = vadd.f32 %v4192_v9, %v4191_v7  ;;  %v4233_v46 = vsel %vm1951_vm12, %v3809_v35, 0.0  ;;  %v3748_v28 = vpop.permute.xlu1 %3747  ;;  %v6059_v7 = vld [vmem:[#allocation2 + $0xfc] sm:$0xf] }
 0x52c   :  { %v4182_v44 = vrot.slane %v4181_v56, 1  ;;  %v4188_v17 = vadd.f32 %v4187_v38, %v4186_v57  ;;  %v4234_v45 = vrot.slane %v4233_v46, 4  ;;  %v4198_v3 = vsel %vm1951_vm12, %v3804_v54, 0.0 }
 0x52d   :  { %v4369_v23 = vsel %vm214_vm2, %v4176_v62, %v4368_v29  ;;  %v4230_v21 = vadd.f32 %v4229_v60, %v4228_v27  ;;  %v4194_v47 = vrot.slane %v4193_v49, 2  ;;  %v4199_v6 = vrot.slane %v4198_v3, 4 }
 0x52e   :  { %v4225_v37 = vadd.f32 %v4224_v32, %v4223_v25  ;;  %v4189_v0 = vrot.slane %v4188_v17, 1  ;;  %v4235_v63 = vadd.f32 %v4234_v45, %v4233_v46  ;;  %v3810_v59 = vmul.f32 %v6057_v16, %v3734_v22 }
 0x52f   :  { %v4147_v55 = vrot.slane %v4146_v31, 1  ;;  %v4195_v43 = vadd.f32 %v4194_v47, %v4193_v49  ;;  %v4200_v50 = vadd.f32 %v4199_v6, %v4198_v3  ;;  %v3811_v10 = vmul.f32 %v6058_v53, %v3741_v33 }
 0x530   :  { %v4183_v51 = vadd.f32 %v4182_v44, %v4181_v56  ;;  %v4236_v4 = vrot.slane %v4235_v63, 2  ;;  %v4240_v57 = vsel %vm1951_vm12, %v3810_v59, 0.0  ;;  %v3812_v29 = vmul.f32 %v6059_v7, %v3748_v28 }
 0x531   :  { %v4190_v62 = vadd.f32 %v4189_v0, %v4188_v17  ;;  %v4231_v27 = vrot.slane %v4230_v21, 1  ;;  %v4201_v9 = vrot.slane %v4200_v50, 2  ;;  %v4241_v24 = vrot.slane %v4240_v57, 4 }
 0x532   :  { %v4196_v25 = vrot.slane %v4195_v43, 1  ;;  %v4237_v35 = vadd.f32 %v4236_v4, %v4235_v63  ;;  %v4247_v32 = vsel %vm1951_vm12, %v3811_v10, 0.0  ;;  %v4254_v22 = vsel %vm1951_vm12, %v3812_v29, 0.0 }
 0x533   :  { %v4375_v38 = vsel %vm211_vm1, %v4225_v37, %v4374_v18  ;;  %v4148_v11 = vadd.f32 %v4147_v55, %v4146_v31  ;;  %v4202_v33 = vadd.f32 %v4201_v9, %v4200_v50  ;;  %v4242_v56 = vadd.f32 %v4241_v24, %v4240_v57  ;;  %v8072_v9 = vld [vmem:[%s8479_s6] sm:$0xff] }
 0x534   :  { %v4370_v54 = vsel %vm217_vm3, %v4183_v51, %v4369_v23  ;;  %v4238_v60 = vrot.slane %v4237_v35, 1  ;;  %v4248_v49 = vrot.slane %v4247_v32, 4  ;;  %v4255_v46 = vrot.slane %v4254_v22, 4 }
 0x535   :  { %v4371_v44 = vsel %vm220_vm4, %v4190_v62, %v4370_v54  ;;  %v4232_v17 = vadd.f32 %v4231_v27, %v4230_v21  ;;  %v4243_v45 = vrot.slane %v4242_v56, 2  ;;  %v7992_v3 = vsel %vm226_vm6, %v7903_v15, %v7876_v52 }
 0x536   :  { %v4197_v47 = vadd.f32 %v4196_v25, %v4195_v43  ;;  %v4249_v6 = vadd.f32 %v4248_v49, %v4247_v32  ;;  %v4256_v18 = vadd.f32 %v4255_v46, %v4254_v22  ;;  %v7997_v31 = vsel %vm226_vm6, %v7907_v12, %v7890_v2 }
 0x537   :  { %v4203_v23 = vrot.slane %v4202_v33, 1  ;;  %v4244_v28 = vadd.f32 %v4243_v45, %v4242_v56  ;;  %v8001_v37 = vmul.f32 %v7992_v3, %v7224_v1  ;;  %v8005_v21 = vmul.f32 %v7997_v31, %v7228_v48 }
 0x538   :  { %v4239_v52 = vadd.f32 %v4238_v60, %v4237_v35  ;;  %v4250_v15 = vrot.slane %v4249_v6, 2  ;;  %v4257_v0 = vrot.slane %v4256_v18, 2  ;;  %v8010_v63 = vsel %vm226_vm6, %v7933_v26, %v7928_v42 }
 0x539   :  { %v4245_v2 = vrot.slane %v4244_v28, 1  ;;  %v8017_v1 = vsel %vm226_vm6, %v7946_v41, %v7939_v39  ;;  %v8021_v48 = vmul.f32 %v7221_v13, %v8010_v63  ;;  %v8030_v42 = vsel %vm226_vm6, %v7973_v34, %v7965_v36 }
 0x53a   :  { %v4251_v16 = vadd.f32 %v4250_v15, %v4249_v6  ;;  %v4258_v59 = vadd.f32 %v4257_v0, %v4256_v18  ;;  %v8025_v55 = vmul.f32 %v7226_v8, %v8017_v1  ;;  %v4204_v26 = vadd.f32 %v4203_v23, %v4202_v33 }
 0x53b   :  { %v4246_v43 = vadd.f32 %v4245_v2, %v4244_v28  ;;  %v8034_v39 = vsel %vm226_vm6, %v4148_v11, %v7978_v61  ;;  %v8038_v13 = vmul.f32 %v8030_v42, %v7296_v5  ;;  %v4376_v36 = vsel %vm214_vm2, %v4232_v17, %v4375_v38 }
 0x53c   :  { %v4252_v41 = vrot.slane %v4251_v16, 1  ;;  %v4259_v50 = vrot.slane %v4258_v59, 1  ;;  %v8044_v53 = vmul.f32 %v8034_v39, %v7301_v14  ;;  %v4372_v34 = vsel %vm223_vm5, %v4197_v47, %v4371_v44 }
 0x53d   :  { %v4377_v61 = vsel %vm217_vm3, %v4239_v52, %v4376_v36  ;;  %v8053_v57 = vsel %vm226_vm6, %v4204_v26, %v4372_v34  ;;  %v8076_v24 = vrot.slane %v8072_v9, %v8706_v20  ;;  %v8086_v26 = vrot.slane %v8072_v9, %v8704_v58 }
 0x53e   :  { %v4253_v10 = vadd.f32 %v4252_v41, %v4251_v16  ;;  %v4260_v51 = vadd.f32 %v4259_v50, %v4258_v59  ;;  %v4378_v4 = vsel %vm220_vm4, %v4246_v43, %v4377_v61  ;;  %v8061_v29 = vmul.f32 %v7284_v40, %v8053_v57 }
 0x53f   :  { %v8082_v16 = vrot.slane %v8072_v9, %v7183_v30 }
 0x540   :  { %v4379_v7 = vsel %vm223_vm5, %v4253_v10, %v4378_v4 }
 0x541   :  { %v8057_v14 = vsel %vm226_vm6, %v4260_v51, %v4379_v7 }
 0x542   :  { %v8065_v62 = vmul.f32 %v7298_v19, %v8057_v14 }
 0x5c9   :  { %v2727_v25 = vpop.f32.mrb[24].mxu0 }
 0x5ca   :  { %v5487_v35 = vpop.f32.mrb[25].mxu0  ;;  %v2728_v32 = vadd.f32 %v2727_v25, %v8076_v24 }
 0x5cb   :  { %v2730_v40 = vpop.f32.mrb[26].mxu0 }
 0x5cc   :  { %v2731_v19 = vadd.f32 %v2730_v40, %v8076_v24  ;;  %v5488_v22 = vpop.f32.mrb[27].mxu0 }
 0x5cd   :  { %v8718_v22 = vmov 0.0  }
 0x5ce   :  { %v2734_v38 = vadd.f32 %v2731_v19, %v2728_v32 }
 0x5d0   :  { %v2735_v11 = vrot.slane %v2734_v38, 4 }
 0x5d2   :  { %v2736_v33 = vadd.f32 %v2735_v11, %v2734_v38  ;;  %v8719_v38 = vld [vmem:[#allocation33_spill] sm:$0xff]  ;;  %v8720_v11 = vld [vmem:[#allocation36_spill] sm:$0xff] }
 0x5d4   :  { %v2737_v56 = vrot.slane %v2736_v33, 2 }
 0x5d6   :  { %v2738_v54 = vadd.f32 %v2737_v56, %v2736_v33  ;;  %v8721_v33 = vld [vmem:[#allocation19_spill] sm:$0xff] }
 0x5d8   :  { %v2739_v60 = vrot.slane %v2738_v54, 1 }
 0x5da   :  { %v2740_v49 = vadd.f32 %v2739_v60, %v2738_v54 }
 0x5dc   :  { %v2741_v46 = vmul.f32 0.0625, %v2740_v49  ;;  %v8722_v49 = vld [vmem:[#allocation21_spill] sm:$0xff] }
 0x5de   :  { %v2742_v44 = vsub.f32 %v2728_v32, %v2741_v46  ;;  %v2743_v17 = vsub.f32 %v2731_v19, %v2741_v46 }
 0x5e0   :  { %v2744_v20 = vmul.f32 %v2742_v44, %v2742_v44  ;;  %v2745_v45 = vmul.f32 %v2743_v17, %v2743_v17 }
 0x5e2   :  { %v2746_v47 = vadd.f32 %v2745_v45, %v2744_v20  ;;  %v8724_v45 = vld [vmem:[#allocation18_spill] sm:$0xff] }
 0x5e4   :  { %v2747_v6 = vrot.slane %v2746_v47, 4 }
 0x5e6   :  { %v2748_v18 = vadd.f32 %v2747_v6, %v2746_v47  ;;  %v8725_v6 = vld [vmem:[#allocation17_spill] sm:$0xff] }
 0x5e8   :  { %v2749_v23 = vrot.slane %v2748_v18, 2 }
 0x5ea   :  { %v2750_v28 = vadd.f32 %v2749_v23, %v2748_v18 }
 0x5ec   :  { %v2751_v52 = vrot.slane %v2750_v28, 1 }
 0x5ee   :  { %v2752_v15 = vadd.f32 %v2751_v52, %v2750_v28 }
 0x5f0   :  { %v2753_v0 = vmul.f32 0.0625, %v2752_v15 }
 0x5f2   :  { %v2754_v2 = vadd.f32 1e-05, %v2753_v0 }
 0x5f4   :  { %5904 = vrsqrt.f32 %v2754_v2  ;;  %v8726_v2 = vld [vmem:[#allocation29_spill] sm:$0xff] }
 0x5fe   :  { %v5905_v59 = vpop.eup %5904 }
 0x5ff   :  { %v2756_v43 = vmul.f32 %v5905_v59, %v2742_v44  ;;  %v2757_v41 = vmul.f32 %v5905_v59, %v2743_v17  ;;  %v8723_v44 = vld [vmem:[#allocation22_spill] sm:$0xff] }
 0x601   :  { %v2762_v50 = vmul.f32 %v8082_v16, %v2756_v43  ;;  %v2763_v36 = vmul.f32 %v8082_v16, %v2757_v41  ;;  %v8727_v43 = vld [vmem:[#allocation24_spill] sm:$0xff] }
 0x603   :  { %v2769_v34 = vadd.f32 %v8086_v26, %v2763_v36  ;;  %v2768_v61 = vadd.f32 %v8086_v26, %v2762_v50  ;;  %v8728_v36 = vld [vmem:[#allocation23_spill] sm:$0xff] }
 0x605   :  { %v2773_v10 = vmin.f32 %v2769_v34, 0.0  ;;  %v2772_v51 = vmin.f32 %v2768_v61, 0.0  ;;  %vm2770_vm0 = vcmp.gt.f32.partialorder %v2768_v61, 0.0  ;;  %vm2771_vm1 = vcmp.gt.f32.partialorder %v2769_v34, 0.0 }
 0x607   :  { %v2774_v4 = vmul.f32 1.442695, %v2772_v51  ;;  %v2776_v30 = vmul.f32 1.442695, %v2773_v10 }
 0x609   :  { %5906 = vpow2.f32 %v2774_v4 }
 0x60a   :  { %5908 = vpow2.f32 %v2776_v30  ;;  %v2903_v30 = vld [vmem:[#allocation5 + $0x80] sm:$0xff] }
 0x613   :  { %v5907_v7 = vpop.eup %5906 }
 0x614   :  { %v5909_v25 = vpop.eup %5908  ;;  %v5019_v58 = vadd.f32 -1.0, %v5907_v7  ;;  %v2904_v7 = vld [vmem:[#allocation5 + $0x88] sm:$0xff] }
 0x615   :  { %v5020_v35 = vadd.f32 -1.0, %v5909_v25  ;;  %v8112_v25 = vpack.c.bf16 %v2904_v7, %v2903_v30 }
 0x616   :  { %v2780_v40 = vsel %vm2770_vm0, %v2768_v61, %v5019_v58  ;;  %v8729_v61 = vld [vmem:[#allocation16_spill] sm:$0xff] }
 0x617   :  { %v2781_v32 = vsel %vm2771_vm1, %v2769_v34, %v5020_v35  ;;  %v2905_v58 = vld [vmem:[#allocation5 + $0x90] sm:$0xff]  ;;  %v2906_v35 = vld [vmem:[#allocation5 + $0x98] sm:$0xff] }
 0x618   :  { %v2782_v19 = vpack.c.bf16 %v2781_v32, %v2780_v40  ;;  %v8730_v40 = vld [vmem:[#allocation26_spill] sm:$0xff]  ;;  %v8118_v32 = vpack.c.bf16 %v2906_v35, %v2905_v58  ;;  %v8731_v58 = vld [vmem:[#allocation20_spill] sm:$0xff] }
 0x619   :  { %v8153_v35 = vrot.slane %v8072_v9, %v8731_v58 }
 0x61a   :  { %5489 = vmatprep.subr.bf16.mxu1 %v2782_v19 }
 0x61b   :  { %5490 = vmatpush3.bf16.msra.mxu1 %v2782_v19  ;;  %v2907_v19 = vld [vmem:[#allocation5 + $0xa0] sm:$0xff]  ;;  %8732 = vst [vmem:[#allocation41_spill] sm:$0xff] %v8153_v35 }
 0x61c   :  { %5499 = vmatprep.subr.bf16.mxu1 %v8718_v22 }
 0x61e   :  { %5492 = vmatmul.mubr.msk.bf16.vlgmr.msra.gmra.mrb[20].mxu1 %vm2401_vm11, %v8719_v38 }
 0x61f   :  { %5495 = vmatprep.mubr.msk.bf16.mxu1 %vm2401_vm11, %v8720_v11 }
 0x626   :  { %5496 = vmatmul.mubr.msk.bf16.gmra.mrb[24].mxu1 %vm2401_vm11, %v8721_v33 }
 0x627   :  { %5507 = vmatprep.mubr.msk.bf16.mxu1 %vm6167_vm10, %v8718_v22 }
 0x6f1   :  { %v5493_v56 = vpop.f32.mrb[20].mxu1 }
 0x6f2   :  { %v2817_v54 = vpop.f32.mrb[21].mxu1  ;;  %v2850_v46 = vmul.f32 %v5493_v56, %v8722_v49  ;;  %v2908_v56 = vld [vmem:[#allocation5 + $0xa8] sm:$0xff] }
 0x6f3   :  { %v5494_v60 = vpop.f32.mrb[22].mxu1  ;;  %v2848_v47 = vmul.f32 %v2817_v54, %v8724_v45  ;;  %v8124_v54 = vpack.c.bf16 %v2908_v56, %v2907_v19 }
 0x6f4   :  { %v2851_v17 = vmul.f32 %v5494_v60, %v8723_v44  ;;  %v2820_v20 = vpop.f32.mrb[23].mxu1  ;;  %v2909_v60 = vld [vmem:[#allocation5 + $0xb0] sm:$0xff] }
 0x6f5   :  { %v2849_v18 = vmul.f32 %v2820_v20, %v8725_v6  ;;  %v2911_v20 = vld [vmem:[#allocation5 + $0xc0] sm:$0xff] }
 0x6f6   :  { %v2857_v23 = vpack.c.bf16 %v2851_v17, %v2850_v46  ;;  %v2910_v46 = vld [vmem:[#allocation5 + $0xb8] sm:$0xff] }
 0x6f7   :  { %v2856_v28 = vpack.c.bf16 %v2849_v18, %v2848_v47  ;;  %v8128_v17 = vpack.c.bf16 %v2910_v46, %v2909_v60  ;;  %v2912_v47 = vld [vmem:[#allocation5 + $0xc8] sm:$0xff] }
 0x6f8   :  { %v8132_v18 = vpack.c.bf16 %v2912_v47, %v2911_v20 }
 0x6f9   :  { %v5497_v52 = vpop.f32.mrb[24].mxu1  ;;  %5500 = vmatpush3.bf16.msra.mxu1 %v2856_v28  ;;  %v2914_v28 = vld [vmem:[#allocation5 + $0xd8] sm:$0xff] }
 0x6fa   :  { %v2833_v15 = vpop.f32.mrb[25].mxu1  ;;  %5501 = vmatprep.subr.bf16.mxu1 %v8718_v22  ;;  %v2854_v59 = vmul.f32 %v5497_v52, %v8726_v2 }
 0x6fb   :  { %v5498_v0 = vpop.f32.mrb[26].mxu1  ;;  %v2852_v34 = vmul.f32 %v2833_v15, %v8728_v36  ;;  %v2915_v15 = vld [vmem:[#allocation5 + $0xe0] sm:$0xff] }
 0x6fc   :  { %v2855_v41 = vmul.f32 %v5498_v0, %v8727_v43  ;;  %v2836_v50 = vpop.f32.mrb[27].mxu1  ;;  %v2916_v0 = vld [vmem:[#allocation5 + $0xe8] sm:$0xff] }
 0x6fd   :  { %v2853_v10 = vmul.f32 %v2836_v50, %v8729_v61  ;;  %5502 = vmatpush3.bf16.msra.mxu1 %v2857_v23  ;;  %v2913_v23 = vld [vmem:[#allocation5 + $0xd0] sm:$0xff]  ;;  %v2918_v50 = vld [vmem:[#allocation5 + $0xf8] sm:$0xff] }
 0x6fe   :  { %v2859_v51 = vpack.c.bf16 %v2855_v41, %v2854_v59  ;;  %5503 = vmatprep.subr.bf16.mxu1 %v8718_v22  ;;  %v8136_v52 = vpack.c.bf16 %v2914_v28, %v2913_v23  ;;  %v8140_v59 = vpack.c.bf16 %v2916_v0, %v2915_v15  ;;  %v2917_v41 = vld [vmem:[#allocation5 + $0xf0] sm:$0xff] }
 0x6ff   :  { %v2858_v4 = vpack.c.bf16 %v2853_v10, %v2852_v34  ;;  %v8145_v34 = vpack.c.bf16 %v2918_v50, %v2917_v41 }
 0x701   :  { %5504 = vmatpush3.bf16.msra.mxu1 %v2858_v4 }
 0x702   :  { %5505 = vmatprep.subr.bf16.mxu1 %v8718_v22 }
 0x705   :  { %5506 = vmatpush3.bf16.msra.mxu1 %v2859_v51 }
 0x706   :  { %5511 = vmatprep.subr.bf16.mxu1 %v8718_v22 }
 0x708   :  { %5508 = vmatmul.mubr.msk.bf16.vlgmr.msra.gmra.mrb[28].mxu1 %vm2619_vm15, %v8730_v40 }
 0x709   :  { %5512 = vmatpush3.bf16.msra.mxu1 %v8112_v25  ;;  %5527 = vmatprep.mubr.msk.bf16.mxu1 %vm6167_vm10, %v8718_v22 }
 0x70a   :  { %5513 = vmatprep.subr.bf16.mxu1 %v8718_v22 }
 0x70d   :  { %5514 = vmatpush3.bf16.msra.mxu1 %v8118_v32 }
 0x70e   :  { %5515 = vmatprep.subr.bf16.mxu1 %v8718_v22 }
 0x711   :  { %5516 = vmatpush3.bf16.msra.mxu1 %v8124_v54 }
 0x712   :  { %5517 = vmatprep.subr.bf16.mxu1 %v8718_v22 }
 0x715   :  { %5518 = vmatpush3.bf16.msra.mxu1 %v8128_v17 }
 0x716   :  { %5519 = vmatprep.subr.bf16.mxu1 %v8718_v22 }
 0x719   :  { %5520 = vmatpush3.bf16.msra.mxu1 %v8132_v18 }
 0x71a   :  { %5521 = vmatprep.subr.bf16.mxu1 %v8718_v22 }
 0x71d   :  { %5522 = vmatpush3.bf16.msra.mxu1 %v8136_v52 }
 0x71e   :  { %5523 = vmatprep.subr.bf16.mxu1 %v8718_v22 }
 0x721   :  { %5524 = vmatpush3.bf16.msra.mxu1 %v8140_v59 }
 0x722   :  { %5525 = vmatprep.subr.bf16.mxu1 %v8718_v22 }
 0x725   :  { %5526 = vmatpush3.bf16.msra.mxu1 %v8145_v34 }
 0x726   :  { %5573 = vmatprep.subr.bf16.mxu1 %v8718_v22 }
 0x7db   :  { %v2894_v10 = vpop.f32.mrb[28].mxu1 }
 0x7dc   :  { %v5509_v51 = vpop.f32.mrb[29].mxu1 }
 0x7dd   :  { %v2897_v4 = vpop.f32.mrb[30].mxu1 }
 0x7de   :  { %v2901_v30 = vpack.c.bf16 %v2897_v4, %v2894_v10  ;;  %v5510_v7 = vpop.f32.mrb[31].mxu1 }
 0x7e0   :  { %5528 = vmatmul.mubr.bf16.vlgmr.msra.gmra.mrb[32].mxu1 %v2901_v30 }
 0x7e1   :  { %5589 = vmatprep.mubr.msk.bf16.mxu1 %vm6167_vm10, %v8718_v22 }
 0x8b3   :  { %v2965_v19 = vpop.f32.mrb[32].mxu1 }
 0x8b4   :  { %v5529_v56 = vpop.f32.mrb[33].mxu1  ;;  %v2966_v46 = vadd.f32 %v2965_v19, %v8153_v35 }
 0x8b5   :  { %v2968_v60 = vpop.f32.mrb[34].mxu1 }
 0x8b6   :  { %v2969_v20 = vadd.f32 %v2968_v60, %v8153_v35  ;;  %v5530_v47 = vpop.f32.mrb[35].mxu1 }
 0x8b8   :  { %v2972_v23 = vadd.f32 %v2969_v20, %v2966_v46 }
 0x8ba   :  { %v2973_v28 = vrot.slane %v2972_v23, 4 }
 0x8bc   :  { %v2974_v15 = vadd.f32 %v2973_v28, %v2972_v23 }
 0x8be   :  { %v2975_v0 = vrot.slane %v2974_v15, 2 }
 0x8c0   :  { %v2976_v41 = vadd.f32 %v2975_v0, %v2974_v15 }
 0x8c2   :  { %v2977_v50 = vrot.slane %v2976_v41, 1 }
 0x8c4   :  { %v2978_v10 = vadd.f32 %v2977_v50, %v2976_v41 }
 0x8c6   :  { %v2979_v51 = vmul.f32 0.0625, %v2978_v10 }
 0x8c8   :  { %v2980_v4 = vsub.f32 %v2966_v46, %v2979_v51  ;;  %v2981_v30 = vsub.f32 %v2969_v20, %v2979_v51 }
 0x8ca   :  { %v2982_v7 = vmul.f32 %v2980_v4, %v2980_v4  ;;  %v2983_v58 = vmul.f32 %v2981_v30, %v2981_v30 }
 0x8cc   :  { %v2984_v27 = vadd.f32 %v2983_v58, %v2982_v7 }
 0x8ce   :  { %v2985_v56 = vrot.slane %v2984_v27, 4 }
 0x8d0   :  { %v2986_v5 = vadd.f32 %v2985_v56, %v2984_v27 }
 0x8d2   :  { %v2987_v8 = vrot.slane %v2986_v5, 2 }
 0x8d4   :  { %v2988_v19 = vadd.f32 %v2987_v8, %v2986_v5 }
 0x8d6   :  { %v2989_v12 = vrot.slane %v2988_v19, 1 }
 0x8d8   :  { %v2990_v60 = vadd.f32 %v2989_v12, %v2988_v19 }
 0x8da   :  { %v2991_v47 = vmul.f32 0.0625, %v2990_v60 }
 0x8dc   :  { %v2992_v35 = vadd.f32 1e-05, %v2991_v47 }
 0x8de   :  { %5910 = vrsqrt.f32 %v2992_v35 }
 0x8e8   :  { %v5911_v23 = vpop.eup %5910 }
 0x8e9   :  { %v2994_v28 = vmul.f32 %v5911_v23, %v2980_v4  ;;  %v2995_v15 = vmul.f32 %v5911_v23, %v2981_v30 }
 0x8eb   :  { %v2996_v0 = vmul.f32 %v2994_v28, %v8082_v16  ;;  %v2997_v46 = vmul.f32 %v2995_v15, %v8082_v16 }
 0x8ed   :  { %v2999_v20 = vadd.f32 %v2997_v46, %v8086_v26  ;;  %v2998_v41 = vadd.f32 %v2996_v0, %v8086_v26 }
 0x8ef   :  { %v3003_v50 = vmin.f32 %v2999_v20, 0.0  ;;  %v3002_v27 = vmin.f32 %v2998_v41, 0.0  ;;  %vm3000_vm2 = vcmp.gt.f32.partialorder %v2998_v41, 0.0  ;;  %vm3001_vm3 = vcmp.gt.f32.partialorder %v2999_v20, 0.0 }
 0x8f1   :  { %v3004_v10 = vmul.f32 1.442695, %v3002_v27  ;;  %v3006_v8 = vmul.f32 1.442695, %v3003_v50 }
 0x8f3   :  { %5912 = vpow2.f32 %v3004_v10 }
 0x8f4   :  { %5914 = vpow2.f32 %v3006_v8 }
 0x8fd   :  { %v5913_v12 = vpop.eup %5912 }
 0x8fe   :  { %v5915_v5 = vpop.eup %5914  ;;  %v5026_v35 = vadd.f32 -1.0, %v5913_v12  ;;  %v3133_v12 = vld [vmem:[#allocation5 + $0x100] sm:$0xff] }
 0x8ff   :  { %v5027_v51 = vadd.f32 -1.0, %v5915_v5  ;;  %v3134_v5 = vld [vmem:[#allocation5 + $0x108] sm:$0xff] }
 0x900   :  { %v3010_v4 = vsel %vm3000_vm2, %v2998_v41, %v5026_v35  ;;  %v8181_v35 = vpack.c.bf16 %v3134_v5, %v3133_v12  ;;  %v8737_v12 = vpack.c.bf16 %v8044_v53, %v8038_v13  ;;  %v3234_v5 = vld [vmem:[#allocation5 + $0x190] sm:$0xff]  ;;  %v3236_v53 = vld [vmem:[#allocation5 + $0x1a0] sm:$0xff] }
 0x901   :  { %v3011_v30 = vsel %vm3001_vm3, %v2999_v20, %v5027_v51  ;;  %v3138_v51 = vld [vmem:[#allocation5 + $0x128] sm:$0xff] }
 0x902   :  { %v3012_v7 = vpack.c.bf16 %v3011_v30, %v3010_v4  ;;  %v3139_v30 = vld [vmem:[#allocation5 + $0x130] sm:$0xff] }
 0x904   :  { %5531 = vmatprep.subr.bf16.mxu0 %v3012_v7 }
 0x905   :  { %5532 = vmatpush3.bf16.msra.mxu0 %v3012_v7  ;;  %v3140_v7 = vld [vmem:[#allocation5 + $0x138] sm:$0xff] }
 0x906   :  { %5541 = vmatprep.subr.bf16.mxu0 %v8718_v22 }
 0x908   :  { %5534 = vmatmul.mubr.msk.bf16.vlgmr.msra.gmra.mrb[28].mxu0 %vm2401_vm11, %v8719_v38 }
 0x909   :  { %5537 = vmatprep.mubr.msk.bf16.mxu0 %vm2401_vm11, %v8720_v11 }
 0x910   :  { %5538 = vmatmul.mubr.msk.bf16.gmra.mrb[32].mxu0 %vm2401_vm11, %v8721_v33 }
 0x911   :  { %5549 = vmatprep.mubr.msk.bf16.mxu0 %vm6167_vm10, %v8718_v22 }
 0x9db   :  { %v5535_v58 = vpop.f32.mrb[28].mxu0 }
 0x9dc   :  { %v3047_v56 = vpop.f32.mrb[29].mxu0  ;;  %v3080_v60 = vmul.f32 %v5535_v58, %v8722_v49  ;;  %v8197_v58 = vpack.c.bf16 %v3140_v7, %v3139_v30  ;;  %v3240_v7 = vld [vmem:[#allocation5 + $0x1c0] sm:$0xff] }
 0x9dd   :  { %v5536_v19 = vpop.f32.mrb[30].mxu0  ;;  %v3078_v28 = vmul.f32 %v3047_v56, %v8724_v45  ;;  %v3141_v56 = vld [vmem:[#allocation5 + $0x140] sm:$0xff] }
 0x9de   :  { %v3081_v47 = vmul.f32 %v5536_v19, %v8723_v44  ;;  %v3050_v23 = vpop.f32.mrb[31].mxu0  ;;  %v3142_v19 = vld [vmem:[#allocation5 + $0x148] sm:$0xff] }
 0x9df   :  { %v3079_v15 = vmul.f32 %v3050_v23, %v8725_v6  ;;  %v3144_v23 = vld [vmem:[#allocation5 + $0x158] sm:$0xff] }
 0x9e0   :  { %v3087_v0 = vpack.c.bf16 %v3081_v47, %v3080_v60  ;;  %v8201_v60 = vpack.c.bf16 %v3142_v19, %v3141_v56  ;;  %v3143_v47 = vld [vmem:[#allocation5 + $0x150] sm:$0xff]  ;;  %v3241_v56 = vld [vmem:[#allocation5 + $0x1c8] sm:$0xff] }
 0x9e1   :  { %v3086_v46 = vpack.c.bf16 %v3079_v15, %v3078_v28  ;;  %v8205_v28 = vpack.c.bf16 %v3144_v23, %v3143_v47  ;;  %v3145_v15 = vld [vmem:[#allocation5 + $0x160] sm:$0xff]  ;;  %v8254_v19 = vpack.c.bf16 %v3241_v56, %v3240_v7  ;;  %v3242_v47 = vld [vmem:[#allocation5 + $0x1d0] sm:$0xff]  ;;  %v3243_v23 = vld [vmem:[#allocation5 + $0x1d8] sm:$0xff] }
 0x9e3   :  { %v5539_v20 = vpop.f32.mrb[32].mxu0  ;;  %5542 = vmatpush3.bf16.msra.mxu0 %v3086_v46 }
 0x9e4   :  { %v3063_v41 = vpop.f32.mrb[33].mxu0  ;;  %5543 = vmatprep.subr.bf16.mxu0 %v8718_v22  ;;  %v3084_v27 = vmul.f32 %v5539_v20, %v8726_v2  ;;  %v3135_v2 = vld [vmem:[#allocation5 + $0x110] sm:$0xff] }
 0x9e5   :  { %v5540_v50 = vpop.f32.mrb[34].mxu0  ;;  %v3082_v44 = vmul.f32 %v3063_v41, %v8728_v36  ;;  %v3147_v20 = vld [vmem:[#allocation5 + $0x170] sm:$0xff]  ;;  %v3148_v41 = vld [vmem:[#allocation5 + $0x178] sm:$0xff] }
 0x9e6   :  { %v3085_v10 = vmul.f32 %v5540_v50, %v8727_v43  ;;  %v3066_v49 = vpop.f32.mrb[35].mxu0  ;;  %v3136_v43 = vld [vmem:[#allocation5 + $0x118] sm:$0xff]  ;;  %v8214_v50 = vpack.c.bf16 %v3148_v41, %v3147_v20  ;;  %v3245_v20 = vld [vmem:[#allocation5 + $0x1e8] sm:$0xff] }
 0x9e7   :  { %v3083_v8 = vmul.f32 %v3066_v49, %v8729_v61  ;;  %5544 = vmatpush3.bf16.msra.mxu0 %v3087_v0  ;;  %v8187_v36 = vpack.c.bf16 %v3136_v43, %v3135_v2  ;;  %v3137_v61 = vld [vmem:[#allocation5 + $0x120] sm:$0xff]  ;;  %v3146_v0 = vld [vmem:[#allocation5 + $0x168] sm:$0xff]  ;;  %v3235_v43 = vld [vmem:[#allocation5 + $0x198] sm:$0xff] }
 0x9e8   :  { %v3089_v45 = vpack.c.bf16 %v3085_v10, %v3084_v27  ;;  %5545 = vmatprep.subr.bf16.mxu0 %v8718_v22  ;;  %v8193_v4 = vpack.c.bf16 %v3138_v51, %v3137_v61  ;;  %v8209_v46 = vpack.c.bf16 %v3146_v0, %v3145_v15  ;;  %8734 = vst [vmem:[#allocation44_spill] sm:$0xff] %v8214_v50  ;;  %v3238_v61 = vld [vmem:[#allocation5 + $0x1b0] sm:$0xff]  ;;  %v3239_v51 = vld [vmem:[#allocation5 + $0x1b8] sm:$0xff]  ;;  %v3244_v0 = vld [vmem:[#allocation5 + $0x1e0] sm:$0xff] }
 0x9e9   :  { %v3088_v6 = vpack.c.bf16 %v3083_v8, %v3082_v44  ;;  %v8242_v13 = vpack.c.bf16 %v3235_v43, %v3234_v5  ;;  %v8250_v30 = vpack.c.bf16 %v3239_v51, %v3238_v61  ;;  %v8258_v15 = vpack.c.bf16 %v3243_v23, %v3242_v47 }
 0x9ea   :  { %8733 = vst [vmem:[#allocation42_spill] sm:$0xff] %v8209_v46  ;;  %v8262_v41 = vpack.c.bf16 %v3245_v20, %v3244_v0 }
 0x9eb   :  { %5546 = vmatpush3.bf16.msra.mxu0 %v3088_v6  ;;  %v8736_v6 = vpack.c.bf16 %v8025_v55, %v8021_v48  ;;  %v3232_v48 = vld [vmem:[#allocation5 + $0x180] sm:$0xff]  ;;  %v3233_v55 = vld [vmem:[#allocation5 + $0x188] sm:$0xff] }
 0x9ec   :  { %5547 = vmatprep.subr.bf16.mxu0 %v8718_v22  ;;  %v8239_v2 = vpack.c.bf16 %v3233_v55, %v3232_v48 }
 0x9ee   :  { %5574 = vmatpush3.bf16.msra.mxu1 %v8239_v2 }
 0x9ef   :  { %5548 = vmatpush3.bf16.msra.mxu0 %v3089_v45  ;;  %v8735_v45 = vpack.c.bf16 %v8005_v21, %v8001_v37  ;;  %v8738_v37 = vpack.c.bf16 %v8065_v62, %v8061_v29  ;;  %v8739_v21 = vld [vmem:[#allocation32_spill] sm:$0xff]  ;;  %5575 = vmatprep.subr.bf16.mxu1 %v8718_v22  ;;  %v3237_v29 = vld [vmem:[#allocation5 + $0x1a8] sm:$0xff] }
 0x9f0   :  { %5553 = vmatprep.subr.bf16.mxu0 %v8718_v22  ;;  %v8246_v62 = vpack.c.bf16 %v3237_v29, %v3236_v53 }
 0x9f2   :  { %5550 = vmatmul.mubr.msk.bf16.vlgmr.msra.gmra.mrb[36].mxu0 %vm2619_vm15, %v8730_v40  ;;  %5576 = vmatpush3.bf16.msra.mxu1 %v8242_v13 }
 0x9f3   :  { %5554 = vmatpush3.bf16.msra.mxu0 %v8181_v35  ;;  %5569 = vmatprep.mubr.msk.bf16.mxu0 %vm6167_vm10, %v8718_v22 }
 0x9f4   :  { %5555 = vmatprep.subr.bf16.mxu0 %v8718_v22  ;;  %5577 = vmatprep.subr.bf16.mxu1 %v8718_v22 }
 0x9f6   :  { %5578 = vmatpush3.bf16.msra.mxu1 %v8246_v62 }
 0x9f7   :  { %5556 = vmatpush3.bf16.msra.mxu0 %v8187_v36  ;;  %5579 = vmatprep.subr.bf16.mxu1 %v8718_v22 }
 0x9f8   :  { %5557 = vmatprep.subr.bf16.mxu0 %v8718_v22 }
 0x9fa   :  { %5580 = vmatpush3.bf16.msra.mxu1 %v8250_v30 }
 0x9fb   :  { %5558 = vmatpush3.bf16.msra.mxu0 %v8193_v4  ;;  %5581 = vmatprep.subr.bf16.mxu1 %v8718_v22 }
 0x9fc   :  { %5559 = vmatprep.subr.bf16.mxu0 %v8718_v22 }
 0x9fe   :  { %5582 = vmatpush3.bf16.msra.mxu1 %v8254_v19 }
 0x9ff   :  { %5560 = vmatpush3.bf16.msra.mxu0 %v8197_v58  ;;  %5583 = vmatprep.subr.bf16.mxu1 %v8718_v22 }
 0xa00   :  { %5561 = vmatprep.subr.bf16.mxu0 %v8718_v22 }
 0xa02   :  { %5584 = vmatpush3.bf16.msra.mxu1 %v8258_v15 }
 0xa03   :  { %5562 = vmatpush3.bf16.msra.mxu0 %v8201_v60  ;;  %5585 = vmatprep.subr.bf16.mxu1 %v8718_v22 }
 0xa04   :  { %5563 = vmatprep.subr.bf16.mxu0 %v8718_v22 }
 0xa06   :  { %5586 = vmatpush3.bf16.msra.mxu1 %v8262_v41 }
 0xa07   :  { %5564 = vmatpush3.bf16.msra.mxu0 %v8205_v28  ;;  %5587 = vmatprep.subr.bf16.mxu1 %v8718_v22 }
 0xa08   :  { %5565 = vmatprep.subr.bf16.mxu0 %v8718_v22 }
 0xa0b   :  { %5566 = vmatpush3.bf16.msra.mxu0 %v8209_v46 }
 0xa0c   :  { %5567 = vmatprep.subr.bf16.mxu0 %v8718_v22 }
 0xa0f   :  { %5568 = vmatpush3.bf16.msra.mxu0 %v8214_v50 }
 0xa10   :  { %5593 = vmatprep.subr.bf16.mxu0 %v8718_v22 }
 0xac5   :  { %v3124_v27 = vpop.f32.mrb[36].mxu0 }
 0xac6   :  { %v5551_v10 = vpop.f32.mrb[37].mxu0 }
 0xac7   :  { %v3127_v49 = vpop.f32.mrb[38].mxu0  ;;  %v3247_v10 = vld [vmem:[#allocation5 + $0x1f8] sm:$0xff] }
 0xac8   :  { %v3131_v44 = vpack.c.bf16 %v3127_v49, %v3124_v27  ;;  %v5552_v8 = vpop.f32.mrb[39].mxu0  ;;  %v3246_v27 = vld [vmem:[#allocation5 + $0x1f0] sm:$0xff] }
 0xac9   :  { %v8266_v49 = vpack.c.bf16 %v3247_v10, %v3246_v27 }
 0xaca   :  { %5570 = vmatmul.mubr.bf16.vlgmr.msra.gmra.mrb[40].mxu0 %v3131_v44  ;;  %v8740_v44 = vld [vmem:[#allocation14_spill] sm:$0xff] }
 0xacb   :  { %5594 = vmatpush3.bf16.msra.mxu0 %v8735_v45  ;;  %5601 = vmatprep.mubr.msk.bf16.mxu0 %vm6167_vm10, %v8718_v22  ;;  %v8273_v8 = vrot.slane %v8072_v9, %v8740_v44 }
 0xacc   :  { %5595 = vmatprep.subr.bf16.mxu0 %v8718_v22  ;;  %5588 = vmatpush3.bf16.msra.mxu1 %v8266_v49 }
 0xacd   :  { %5605 = vmatprep.subr.bf16.mxu1 %v8718_v22  ;;  %8741 = vst [vmem:[#allocation45_spill] sm:$0xff] %v8273_v8 }
 0xacf   :  { %5596 = vmatpush3.bf16.msra.mxu0 %v8736_v6 }
 0xad0   :  { %5597 = vmatprep.subr.bf16.mxu0 %v8718_v22 }
 0xad3   :  { %5598 = vmatpush3.bf16.msra.mxu0 %v8737_v12 }
 0xad4   :  { %5599 = vmatprep.subr.bf16.mxu0 %v8718_v22 }
 0xad7   :  { %5600 = vmatpush3.bf16.msra.mxu0 %v8738_v37 }
 0xada   :  { %5602 = vmatmul.mubr.msk.bf16.vlgmr.msra.gmra.mrb[44].mxu0 %vm2619_vm15, %v8730_v40 }
 0xadb   :  { %5627 = vmatprep.mubr.msk.bf16.mxu0 %vm2401_vm11, %v8739_v21 }
 0xb9d   :  { %v3195_v45 = vpop.f32.mrb[40].mxu0 }
 0xb9e   :  { %v5571_v6 = vpop.f32.mrb[41].mxu0  ;;  %v3196_v37 = vadd.f32 %v3195_v45, %v8273_v8 }
 0xb9f   :  { %v3198_v12 = vpop.f32.mrb[42].mxu0 }
 0xba0   :  { %v3199_v48 = vadd.f32 %v3198_v12, %v8273_v8  ;;  %v5572_v55 = vpop.f32.mrb[43].mxu0 }
 0xba2   :  { %v3202_v5 = vadd.f32 %v3199_v48, %v3196_v37 }
 0xba4   :  { %v3203_v43 = vrot.slane %v3202_v5, 4 }
 0xba6   :  { %v3204_v53 = vadd.f32 %v3203_v43, %v3202_v5 }
 0xba8   :  { %v3205_v29 = vrot.slane %v3204_v53, 2 }
 0xbaa   :  { %v3206_v61 = vadd.f32 %v3205_v29, %v3204_v53 }
 0xbac   :  { %v3207_v51 = vrot.slane %v3206_v61, 1 }
 0xbad   :  { %v4435_v7 = vpop.f32.mrb[44].mxu0 }
 0xbae   :  { %v3208_v56 = vadd.f32 %v3207_v51, %v3206_v61  ;;  %v5603_v47 = vpop.f32.mrb[45].mxu0 }
 0xbaf   :  { %v4438_v23 = vpop.f32.mrb[46].mxu0 }
 0xbb0   :  { %v3209_v0 = vmul.f32 0.0625, %v3208_v56  ;;  %v4442_v20 = vpack.c.bf16 %v4438_v23, %v4435_v7  ;;  %v5604_v27 = vpop.f32.mrb[47].mxu0  ;;  %v8744_v23 = vld [vmem:[#allocation30_spill] sm:$0xff] }
 0xbb1   :  { %v8746_v27 = vld [vmem:[#allocation31_spill] sm:$0xff] }
 0xbb2   :  { %v3210_v10 = vsub.f32 %v3196_v37, %v3209_v0  ;;  %v3211_v44 = vsub.f32 %v3199_v48, %v3209_v0  ;;  %v8745_v0 = vld [vmem:[#allocation25_spill] sm:$0xff] }
 0xbb4   :  { %v3212_v6 = vmul.f32 %v3210_v10, %v3210_v10  ;;  %v3213_v45 = vmul.f32 %v3211_v44, %v3211_v44 }
 0xbb6   :  { %v3214_v50 = vadd.f32 %v3213_v45, %v3212_v6  ;;  %v8749_v6 = vld [vmem:[#allocation40_spill] sm:$0xff] }
 0xbb8   :  { %v3215_v12 = vrot.slane %v3214_v50, 4 }
 0xbba   :  { %v3216_v55 = vadd.f32 %v3215_v12, %v3214_v50 }
 0xbbc   :  { %v3217_v8 = vrot.slane %v3216_v55, 2 }
 0xbbe   :  { %v3218_v46 = vadd.f32 %v3217_v8, %v3216_v55  ;;  %v8742_v8 = vld [vmem:[#allocation27_spill] sm:$0xff] }
 0xbc0   :  { %v3219_v5 = vrot.slane %v3218_v46, 1 }
 0xbc2   :  { %v3220_v43 = vadd.f32 %v3219_v5, %v3218_v46  ;;  %v8743_v46 = vld [vmem:[#allocation28_spill] sm:$0xff] }
 0xbc4   :  { %v3221_v53 = vmul.f32 0.0625, %v3220_v43 }
 0xbc6   :  { %v3222_v29 = vadd.f32 1e-05, %v3221_v53 }
 0xbc8   :  { %5916 = vrsqrt.f32 %v3222_v29 }
 0xbd2   :  { %v5917_v61 = vpop.eup %5916 }
 0xbd3   :  { %v3224_v51 = vmul.f32 %v5917_v61, %v3210_v10  ;;  %v3225_v47 = vmul.f32 %v5917_v61, %v3211_v44  ;;  %v8747_v10 = vld [vmem:[#allocation39_spill] sm:$0xff] }
 0xbd4   :  { %v8748_v44 = vld [vmem:[#allocation35_spill] sm:$0xff] }
 0xbd5   :  { %v3226_v7 = vmul.f32 %v3224_v51, %v8082_v16  ;;  %v3227_v37 = vmul.f32 %v3225_v47, %v8082_v16 }
 0xbd7   :  { %v3229_v48 = vadd.f32 %v3227_v37, %v8086_v26  ;;  %v3228_v56 = vadd.f32 %v3226_v7, %v8086_v26 }
 0xbd9   :  { %4957 = vst [vmem:[#allocation7 + $0x8] sm:$0xff] %v3229_v48  ;;  %v3230_v50 = vpack.c.bf16 %v3229_v48, %v3228_v56  ;;  %4956 = vst [vmem:[#allocation7] sm:$0xff] %v3228_v56 }
 0xbdb   :  { %5590 = vmatmul.mubr.bf16.vlgmr.msra.gmra.mrb[36].mxu1 %v3230_v50 }
 0xbdc   :  { %5606 = vmatpush3.bf16.msra.mxu1 %v8742_v8  ;;  %5621 = vmatprep.mubr.msk.bf16.mxu1 %vm6167_vm10, %v8718_v22 }
 0xbdd   :  { %5607 = vmatprep.subr.bf16.mxu1 %v8718_v22 }
 0xbe0   :  { %5608 = vmatpush3.bf16.msra.mxu1 %v8743_v46 }
 0xbe1   :  { %5609 = vmatprep.subr.bf16.mxu1 %v8718_v22 }
 0xbe4   :  { %5610 = vmatpush3.bf16.msra.mxu1 %v8744_v23 }
 0xbe5   :  { %5611 = vmatprep.subr.bf16.mxu1 %v8718_v22 }
 0xbe8   :  { %5612 = vmatpush3.bf16.msra.mxu1 %v8745_v0 }
 0xbe9   :  { %5613 = vmatprep.subr.bf16.mxu1 %v8718_v22 }
 0xbec   :  { %5614 = vmatpush3.bf16.msra.mxu1 %v8746_v27 }
 0xbed   :  { %5615 = vmatprep.subr.bf16.mxu1 %v8718_v22 }
 0xbf0   :  { %5616 = vmatpush3.bf16.msra.mxu1 %v8747_v10 }
 0xbf1   :  { %5617 = vmatprep.subr.bf16.mxu1 %v8718_v22 }
 0xbf4   :  { %5618 = vmatpush3.bf16.msra.mxu1 %v8748_v44 }
 0xbf5   :  { %5619 = vmatprep.subr.bf16.mxu1 %v8718_v22 }
 0xbf8   :  { %5620 = vmatpush3.bf16.msra.mxu1 %v8749_v6 }
 0xbf9   :  { %5647 = vmatprep.subr.bf16.mxu1 %v8718_v22 }
 0xbfb   :  { %5622 = vmatmul.mubr.bf16.vlgmr.msra.gmra.mrb[40].mxu1 %v4442_v20 }
 0xbfc   :  { %5648 = vmatpush3.bf16.msra.mxu1 %v8112_v25  ;;  %5663 = vmatprep.mubr.msk.bf16.mxu1 %vm6167_vm10, %v8718_v22  ;;  %v8750_v25 = vld [vmem:[#allocation37_spill] sm:$0xff] }
 0xbfd   :  { %5649 = vmatprep.subr.bf16.mxu1 %v8718_v22 }
 0xc00   :  { %5650 = vmatpush3.bf16.msra.mxu1 %v8118_v32  ;;  %v8319_v32 = vrot.slane %v8072_v9, %v8750_v25 }
 0xc01   :  { %5651 = vmatprep.subr.bf16.mxu1 %v8718_v22 }
 0xc04   :  { %5652 = vmatpush3.bf16.msra.mxu1 %v8124_v54 }
 0xc05   :  { %5653 = vmatprep.subr.bf16.mxu1 %v8718_v22 }
 0xc08   :  { %5654 = vmatpush3.bf16.msra.mxu1 %v8128_v17 }
 0xc09   :  { %5655 = vmatprep.subr.bf16.mxu1 %v8718_v22 }
 0xc0c   :  { %5656 = vmatpush3.bf16.msra.mxu1 %v8132_v18 }
 0xc0d   :  { %5657 = vmatprep.subr.bf16.mxu1 %v8718_v22 }
 0xc10   :  { %5658 = vmatpush3.bf16.msra.mxu1 %v8136_v52 }
 0xc11   :  { %5659 = vmatprep.subr.bf16.mxu1 %v8718_v22 }
 0xc14   :  { %5660 = vmatpush3.bf16.msra.mxu1 %v8140_v59 }
 0xc15   :  { %5661 = vmatprep.subr.bf16.mxu1 %v8718_v22 }
 0xc18   :  { %5662 = vmatpush3.bf16.msra.mxu1 %v8145_v34 }
 0xc19   :  { %5709 = vmatprep.subr.bf16.mxu1 %v8718_v22 }
 0xcae   :  { %v3294_v54 = vpop.f32.mrb[36].mxu1 }
 0xcaf   :  { %v3295_v17 = vadd.f32 %v3294_v54, %v8319_v32  ;;  %v5591_v18 = vpop.f32.mrb[37].mxu1 }
 0xcb0   :  { %v3297_v20 = vpop.f32.mrb[38].mxu1 }
 0xcb1   :  { %4958 = vst [vmem:[%s8481_s8] sm:$0xff] %v3295_v17  ;;  %v3298_v52 = vadd.f32 %v3297_v20, %v8319_v32  ;;  %v5592_v59 = vpop.f32.mrb[39].mxu1 }
 0xcb3   :  { %4959 = vst [vmem:[%s8481_s8 + $0x8] sm:$0xff] %v3298_v52  ;;  %s6168_s8 = smov [#allocation7]  }
 0xcb4   :  { %s4969_s25 = sshll.u32 %s6168_s8, 4  ;;  %s4970_s25 = int_to_ptr.vmem [resolvable:$true] %s4969_s25 }
 0xcb5   :  { %s6105_s28 = scalar_lea.vmem %s4970_s25, 256  ;;  %p6110_p3 = scmp.lt.s32.totalorder %s4970_s25, %s4970_s25 }
 0xcb6   :  { %p6106_p2 = scmp.ne.s32.totalorder %s4970_s25, %s6105_s28  ;;  %p6111_p4 = scmp.lt.s32.totalorder %s6105_s28, %s6105_s28 }
 0xcb8   :  { %p6112_p5 = por %p6111_p4, %p6110_p3 }
 0xcba   :  { %p6113_p6 = pnand %p6112_p5, %p6106_p2 }
 0xcce   :  { %v4477_v34 = vpop.f32.mrb[40].mxu1 }
 0xccf   :  { %v5623_v45 = vpop.f32.mrb[41].mxu1  ;;  %v4478_v12 = vadd.f32 %v4477_v34, %v8076_v24 }
 0xcd0   :  { %v4480_v9 = vpop.f32.mrb[42].mxu1 }
 0xcd1   :  { %v4481_v55 = vadd.f32 %v4480_v9, %v8076_v24  ;;  %v5624_v5 = vpop.f32.mrb[43].mxu1 }
 0xcd3   :  { %v4484_v43 = vadd.f32 %v4481_v55, %v4478_v12 }
 0xcd5   :  { %v4485_v53 = vrot.slane %v4484_v43, 4 }
 0xcd7   :  { %v4486_v29 = vadd.f32 %v4485_v53, %v4484_v43 }
 0xcd9   :  { %v4487_v61 = vrot.slane %v4486_v29, 2 }
 0xcdb   :  { %v4488_v51 = vadd.f32 %v4487_v61, %v4486_v29 }
 0xcdd   :  { %v4489_v47 = vrot.slane %v4488_v51, 1 }
 0xcdf   :  { %v4490_v7 = vadd.f32 %v4489_v47, %v4488_v51 }
 0xce1   :  { %v4491_v37 = vmul.f32 0.0625, %v4490_v7 }
 0xce3   :  { %v4492_v48 = vsub.f32 %v4478_v12, %v4491_v37  ;;  %v4493_v56 = vsub.f32 %v4481_v55, %v4491_v37 }
 0xce5   :  { %v4494_v50 = vmul.f32 %v4492_v48, %v4492_v48  ;;  %v4495_v8 = vmul.f32 %v4493_v56, %v4493_v56 }
 0xce7   :  { %v4496_v46 = vadd.f32 %v4495_v8, %v4494_v50 }
 0xce9   :  { %v4497_v23 = vrot.slane %v4496_v46, 4 }
 0xceb   :  { %v4498_v0 = vadd.f32 %v4497_v23, %v4496_v46 }
 0xced   :  { %v4499_v27 = vrot.slane %v4498_v0, 2 }
 0xcef   :  { %v4500_v10 = vadd.f32 %v4499_v27, %v4498_v0 }
 0xcf1   :  { %v4501_v44 = vrot.slane %v4500_v10, 1 }
 0xcf3   :  { %v4502_v24 = vadd.f32 %v4501_v44, %v4500_v10 }
 0xcf5   :  { %v4503_v6 = vmul.f32 0.0625, %v4502_v24 }
 0xcf7   :  { %v4504_v25 = vadd.f32 1e-05, %v4503_v6 }
 0xcf9   :  { %5918 = vrsqrt.f32 %v4504_v25 }
 0xd03   :  { %v5919_v54 = vpop.eup %5918 }
 0xd04   :  { %v4506_v17 = vmul.f32 %v5919_v54, %v4492_v48  ;;  %v4507_v18 = vmul.f32 %v5919_v54, %v4493_v56 }
 0xd06   :  { %v4508_v20 = vmul.f32 %v4506_v17, %v8082_v16  ;;  %v4509_v52 = vmul.f32 %v4507_v18, %v8082_v16 }
 0xd08   :  { %v4511_v59 = vadd.f32 %v4509_v52, %v8086_v26  ;;  %v4510_v34 = vadd.f32 %v4508_v20, %v8086_v26 }
 0xd0a   :  { %v4515_v45 = vmin.f32 %v4511_v59, 0.0  ;;  %v4514_v9 = vmin.f32 %v4510_v34, 0.0  ;;  %vm4512_vm4 = vcmp.gt.f32.partialorder %v4510_v34, 0.0  ;;  %vm4513_vm5 = vcmp.gt.f32.partialorder %v4511_v59, 0.0 }
 0xd0c   :  { %v4516_v12 = vmul.f32 1.442695, %v4514_v9  ;;  %v4518_v55 = vmul.f32 1.442695, %v4515_v45 }
 0xd0e   :  { %5920 = vpow2.f32 %v4516_v12 }
 0xd0f   :  { %5922 = vpow2.f32 %v4518_v55 }
 0xd18   :  { %v5921_v5 = vpop.eup %5920 }
 0xd19   :  { %v5923_v43 = vpop.eup %5922  ;;  %v5034_v53 = vadd.f32 -1.0, %v5921_v5 }
 0xd1a   :  { %v5035_v29 = vadd.f32 -1.0, %v5923_v43 }
 0xd1b   :  { %v4522_v61 = vsel %vm4512_vm4, %v4510_v34, %v5034_v53 }
 0xd1c   :  { %v4523_v51 = vsel %vm4513_vm5, %v4511_v59, %v5035_v29 }
 0xd1d   :  { %v4524_v47 = vpack.c.bf16 %v4523_v51, %v4522_v61 }
 0xd1f   :  { %5625 = vmatprep.subr.bf16.mxu0 %v4524_v47 }
 0xd20   :  { %5626 = vmatpush3.bf16.msra.mxu0 %v4524_v47 }
 0xd21   :  { %5635 = vmatprep.subr.bf16.mxu0 %v8718_v22 }
 0xd23   :  { %5628 = vmatmul.mubr.msk.bf16.vlgmr.msra.gmra.mrb[48].mxu0 %vm2401_vm11, %v8719_v38 }
 0xd24   :  { %5631 = vmatprep.mubr.msk.bf16.mxu0 %vm2401_vm11, %v8720_v11 }
 0xd2b   :  { %5632 = vmatmul.mubr.msk.bf16.gmra.mrb[52].mxu0 %vm2401_vm11, %v8721_v33 }
 0xd2c   :  { %5643 = vmatprep.mubr.msk.bf16.mxu0 %vm6167_vm10, %v8718_v22 }
 0xdf6   :  { %v5629_v7 = vpop.f32.mrb[48].mxu0 }
 0xdf7   :  { %v4559_v37 = vpop.f32.mrb[49].mxu0  ;;  %v4592_v56 = vmul.f32 %v5629_v7, %v8010_v63 }
 0xdf8   :  { %v5630_v48 = vpop.f32.mrb[50].mxu0  ;;  %v4590_v46 = vmul.f32 %v4559_v37, %v7992_v3 }
 0xdf9   :  { %v4593_v50 = vmul.f32 %v5630_v48, %v8017_v1  ;;  %v4562_v8 = vpop.f32.mrb[51].mxu0 }
 0xdfa   :  { %v4591_v23 = vmul.f32 %v4562_v8, %v7997_v31 }
 0xdfb   :  { %v4599_v0 = vpack.c.bf16 %v4593_v50, %v4592_v56 }
 0xdfc   :  { %v4598_v27 = vpack.c.bf16 %v4591_v23, %v4590_v46 }
 0xdfe   :  { %v5633_v10 = vpop.f32.mrb[52].mxu0  ;;  %5636 = vmatpush3.bf16.msra.mxu0 %v4598_v27 }
 0xdff   :  { %v4575_v44 = vpop.f32.mrb[53].mxu0  ;;  %5637 = vmatprep.subr.bf16.mxu0 %v8718_v22  ;;  %v4596_v6 = vmul.f32 %v5633_v10, %v8053_v57 }
 0xe00   :  { %v5634_v24 = vpop.f32.mrb[54].mxu0  ;;  %v4594_v17 = vmul.f32 %v4575_v44, %v8030_v42 }
 0xe01   :  { %v4597_v25 = vmul.f32 %v5634_v24, %v8057_v14  ;;  %v4578_v54 = vpop.f32.mrb[55].mxu0 }
 0xe02   :  { %v4595_v18 = vmul.f32 %v4578_v54, %v8034_v39  ;;  %5638 = vmatpush3.bf16.msra.mxu0 %v4599_v0 }
 0xe03   :  { %v4601_v20 = vpack.c.bf16 %v4597_v25, %v4596_v6  ;;  %5639 = vmatprep.subr.bf16.mxu0 %v8718_v22 }
 0xe04   :  { %v4600_v52 = vpack.c.bf16 %v4595_v18, %v4594_v17 }
 0xe06   :  { %5640 = vmatpush3.bf16.msra.mxu0 %v4600_v52 }
 0xe07   :  { %5641 = vmatprep.subr.bf16.mxu0 %v8718_v22 }
 0xe0a   :  { %5642 = vmatpush3.bf16.msra.mxu0 %v4601_v20 }
 0xe0d   :  { %5644 = vmatmul.mubr.msk.bf16.vlgmr.msra.gmra.mrb[56].mxu0 %vm2619_vm15, %v8730_v40 }
 0xe0e   :  { %5669 = vmatprep.mubr.msk.bf16.mxu0 %vm2401_vm11, %v8739_v21 }
 0xee0   :  { %v4636_v59 = vpop.f32.mrb[56].mxu0 }
 0xee1   :  { %v5645_v34 = vpop.f32.mrb[57].mxu0 }
 0xee2   :  { %v4639_v45 = vpop.f32.mrb[58].mxu0 }
 0xee3   :  { %v4643_v9 = vpack.c.bf16 %v4639_v45, %v4636_v59  ;;  %v5646_v12 = vpop.f32.mrb[59].mxu0 }
 0xee5   :  { %5664 = vmatmul.mubr.bf16.vlgmr.msra.gmra.mrb[44].mxu1 %v4643_v9 }
 0xee6   :  { %5710 = vmatpush3.bf16.msra.mxu1 %v8239_v2  ;;  %5725 = vmatprep.mubr.msk.bf16.mxu1 %vm6167_vm10, %v8718_v22 }
 0xee7   :  { %5711 = vmatprep.subr.bf16.mxu1 %v8718_v22 }
 0xeea   :  { %5712 = vmatpush3.bf16.msra.mxu1 %v8242_v13 }
 0xeeb   :  { %5713 = vmatprep.subr.bf16.mxu1 %v8718_v22 }
 0xeee   :  { %5714 = vmatpush3.bf16.msra.mxu1 %v8246_v62  ;;  %v8751_v62 = vld [vmem:[#allocation41_spill] sm:$0xff] }
 0xeef   :  { %5715 = vmatprep.subr.bf16.mxu1 %v8718_v22 }
 0xef2   :  { %5716 = vmatpush3.bf16.msra.mxu1 %v8250_v30 }
 0xef3   :  { %5717 = vmatprep.subr.bf16.mxu1 %v8718_v22 }
 0xef6   :  { %5718 = vmatpush3.bf16.msra.mxu1 %v8254_v19 }
 0xef7   :  { %5719 = vmatprep.subr.bf16.mxu1 %v8718_v22 }
 0xefa   :  { %5720 = vmatpush3.bf16.msra.mxu1 %v8258_v15 }
 0xefb   :  { %5721 = vmatprep.subr.bf16.mxu1 %v8718_v22 }
 0xefe   :  { %5722 = vmatpush3.bf16.msra.mxu1 %v8262_v41 }
 0xeff   :  { %5723 = vmatprep.subr.bf16.mxu1 %v8718_v22 }
 0xf02   :  { %5724 = vmatpush3.bf16.msra.mxu1 %v8266_v49 }
 0xfb8   :  { %v4678_v21 = vpop.f32.mrb[44].mxu1 }
 0xfb9   :  { %v5665_v2 = vpop.f32.mrb[45].mxu1  ;;  %v4679_v30 = vadd.f32 %v4678_v21, %v8751_v62 }
 0xfba   :  { %v4681_v13 = vpop.f32.mrb[46].mxu1 }
 0xfbb   :  { %v4682_v55 = vadd.f32 %v4681_v13, %v8751_v62  ;;  %v5666_v19 = vpop.f32.mrb[47].mxu1 }
 0xfbd   :  { %v4685_v5 = vadd.f32 %v4682_v55, %v4679_v30 }
 0xfbf   :  { %v4686_v43 = vrot.slane %v4685_v5, 4 }
 0xfc1   :  { %v4687_v53 = vadd.f32 %v4686_v43, %v4685_v5 }
 0xfc3   :  { %v4688_v15 = vrot.slane %v4687_v53, 2 }
 0xfc5   :  { %v4689_v29 = vadd.f32 %v4688_v15, %v4687_v53 }
 0xfc7   :  { %v4690_v61 = vrot.slane %v4689_v29, 1 }
 0xfc9   :  { %v4691_v51 = vadd.f32 %v4690_v61, %v4689_v29 }
 0xfcb   :  { %v4692_v41 = vmul.f32 0.0625, %v4691_v51 }
 0xfcd   :  { %v4693_v47 = vsub.f32 %v4679_v30, %v4692_v41  ;;  %v4694_v7 = vsub.f32 %v4682_v55, %v4692_v41 }
 0xfcf   :  { %v4695_v37 = vmul.f32 %v4693_v47, %v4693_v47  ;;  %v4696_v49 = vmul.f32 %v4694_v7, %v4694_v7 }
 0xfd1   :  { %v4697_v48 = vadd.f32 %v4696_v49, %v4695_v37  ;;  %v8754_v37 = vld [vmem:[#allocation45_spill] sm:$0xff] }
 0xfd3   :  { %v4698_v56 = vrot.slane %v4697_v48, 4 }
 0xfd5   :  { %v4699_v50 = vadd.f32 %v4698_v56, %v4697_v48 }
 0xfd7   :  { %v4700_v8 = vrot.slane %v4699_v50, 2 }
 0xfd9   :  { %v4701_v46 = vadd.f32 %v4700_v8, %v4699_v50 }
 0xfdb   :  { %v4702_v23 = vrot.slane %v4701_v46, 1 }
 0xfdd   :  { %v4703_v0 = vadd.f32 %v4702_v23, %v4701_v46 }
 0xfdf   :  { %v4704_v27 = vmul.f32 0.0625, %v4703_v0 }
 0xfe1   :  { %v4705_v10 = vadd.f32 1e-05, %v4704_v27 }
 0xfe3   :  { %5924 = vrsqrt.f32 %v4705_v10 }
 0xfed   :  { %v5925_v44 = vpop.eup %5924 }
 0xfee   :  { %v4707_v24 = vmul.f32 %v5925_v44, %v4693_v47  ;;  %v4708_v6 = vmul.f32 %v5925_v44, %v4694_v7 }
 0xff0   :  { %v4709_v25 = vmul.f32 %v4707_v24, %v8082_v16  ;;  %v4710_v54 = vmul.f32 %v4708_v6, %v8082_v16 }
 0xff2   :  { %v4712_v17 = vadd.f32 %v4710_v54, %v8086_v26  ;;  %v4711_v18 = vadd.f32 %v4709_v25, %v8086_v26 }
 0xff4   :  { %v4716_v20 = vmin.f32 %v4712_v17, 0.0  ;;  %v4715_v52 = vmin.f32 %v4711_v18, 0.0  ;;  %vm4713_vm6 = vcmp.gt.f32.partialorder %v4711_v18, 0.0  ;;  %vm4714_vm12 = vcmp.gt.f32.partialorder %v4712_v17, 0.0 }
 0xff6   :  { %v4717_v59 = vmul.f32 1.442695, %v4715_v52  ;;  %v4719_v34 = vmul.f32 1.442695, %v4716_v20 }
 0xff8   :  { %5926 = vpow2.f32 %v4717_v59 }
 0xff9   :  { %5928 = vpow2.f32 %v4719_v34 }
0x1002   :  { %v5927_v45 = vpop.eup %5926 }
0x1003   :  { %v5929_v9 = vpop.eup %5928  ;;  %v5041_v12 = vadd.f32 -1.0, %v5927_v45 }
0x1004   :  { %v5042_v21 = vadd.f32 -1.0, %v5929_v9 }
0x1005   :  { %v4723_v2 = vsel %vm4713_vm6, %v4711_v18, %v5041_v12 }
0x1006   :  { %v4724_v13 = vsel %vm4714_vm12, %v4712_v17, %v5042_v21 }
0x1007   :  { %v4725_v62 = vpack.c.bf16 %v4724_v13, %v4723_v2 }
0x1009   :  { %5667 = vmatprep.subr.bf16.mxu0 %v4725_v62 }
0x100a   :  { %5668 = vmatpush3.bf16.msra.mxu0 %v4725_v62 }
0x100b   :  { %5677 = vmatprep.subr.bf16.mxu0 %v8718_v22 }
0x100d   :  { %5670 = vmatmul.mubr.msk.bf16.vlgmr.msra.gmra.mrb[60].mxu0 %vm2401_vm11, %v8719_v38 }
0x100e   :  { %5673 = vmatprep.mubr.msk.bf16.mxu0 %vm2401_vm11, %v8720_v11 }
0x1015   :  { %5674 = vmatmul.mubr.msk.bf16.gmra.mrb[64].mxu0 %vm2401_vm11, %v8721_v33 }
0x1016   :  { %5685 = vmatprep.mubr.msk.bf16.mxu0 %vm6167_vm10, %v8718_v22 }
0x10e0   :  { %v5671_v30 = vpop.f32.mrb[60].mxu0 }
0x10e1   :  { %v4760_v55 = vpop.f32.mrb[61].mxu0  ;;  %v4793_v5 = vmul.f32 %v5671_v30, %v8010_v63 }
0x10e2   :  { %v5672_v19 = vpop.f32.mrb[62].mxu0  ;;  %v4791_v15 = vmul.f32 %v4760_v55, %v7992_v3 }
0x10e3   :  { %v4794_v43 = vmul.f32 %v5672_v19, %v8017_v1  ;;  %v4763_v53 = vpop.f32.mrb[63].mxu0 }
0x10e4   :  { %v4792_v38 = vmul.f32 %v4763_v53, %v7997_v31 }
0x10e5   :  { %v4800_v29 = vpack.c.bf16 %v4794_v43, %v4793_v5 }
0x10e6   :  { %v4799_v11 = vpack.c.bf16 %v4792_v38, %v4791_v15 }
0x10e8   :  { %v5675_v61 = vpop.f32.mrb[64].mxu0  ;;  %5678 = vmatpush3.bf16.msra.mxu0 %v4799_v11 }
0x10e9   :  { %v4776_v33 = vpop.f32.mrb[65].mxu0  ;;  %5679 = vmatprep.subr.bf16.mxu0 %v8718_v22  ;;  %v4797_v41 = vmul.f32 %v5675_v61, %v8053_v57 }
0x10ea   :  { %v5676_v51 = vpop.f32.mrb[66].mxu0  ;;  %v4795_v1 = vmul.f32 %v4776_v33, %v8030_v42  ;;  %v8752_v42 = vld [vmem:[#allocation42_spill] sm:$0xff] }
0x10eb   :  { %v4798_v47 = vmul.f32 %v5676_v51, %v8057_v14  ;;  %v4779_v63 = vpop.f32.mrb[67].mxu0 }
0x10ec   :  { %v4796_v7 = vmul.f32 %v4779_v63, %v8034_v39  ;;  %5680 = vmatpush3.bf16.msra.mxu0 %v4800_v29  ;;  %v8753_v39 = vld [vmem:[#allocation44_spill] sm:$0xff] }
0x10ed   :  { %v4802_v3 = vpack.c.bf16 %v4798_v47, %v4797_v41  ;;  %5681 = vmatprep.subr.bf16.mxu0 %v8718_v22 }
0x10ee   :  { %v4801_v31 = vpack.c.bf16 %v4796_v7, %v4795_v1 }
0x10f0   :  { %5682 = vmatpush3.bf16.msra.mxu0 %v4801_v31 }
0x10f1   :  { %5683 = vmatprep.subr.bf16.mxu0 %v8718_v22 }
0x10f4   :  { %5684 = vmatpush3.bf16.msra.mxu0 %v4802_v3 }
0x10f5   :  { %5689 = vmatprep.subr.bf16.mxu0 %v8718_v22 }
0x10f7   :  { %5686 = vmatmul.mubr.msk.bf16.vlgmr.msra.gmra.mrb[68].mxu0 %vm2619_vm15, %v8730_v40 }
0x10f8   :  { %5690 = vmatpush3.bf16.msra.mxu0 %v8181_v35  ;;  %5705 = vmatprep.mubr.msk.bf16.mxu0 %vm6167_vm10, %v8718_v22 }
0x10f9   :  { %5691 = vmatprep.subr.bf16.mxu0 %v8718_v22 }
0x10fc   :  { %5692 = vmatpush3.bf16.msra.mxu0 %v8187_v36 }
0x10fd   :  { %5693 = vmatprep.subr.bf16.mxu0 %v8718_v22 }
0x1100   :  { %5694 = vmatpush3.bf16.msra.mxu0 %v8193_v4 }
0x1101   :  { %5695 = vmatprep.subr.bf16.mxu0 %v8718_v22 }
0x1104   :  { %5696 = vmatpush3.bf16.msra.mxu0 %v8197_v58 }
0x1105   :  { %5697 = vmatprep.subr.bf16.mxu0 %v8718_v22 }
0x1108   :  { %5698 = vmatpush3.bf16.msra.mxu0 %v8201_v60 }
0x1109   :  { %5699 = vmatprep.subr.bf16.mxu0 %v8718_v22 }
0x110c   :  { %5700 = vmatpush3.bf16.msra.mxu0 %v8205_v28 }
0x110d   :  { %5701 = vmatprep.subr.bf16.mxu0 %v8718_v22 }
0x1110   :  { %5702 = vmatpush3.bf16.msra.mxu0 %v8752_v42 }
0x1111   :  { %5703 = vmatprep.subr.bf16.mxu0 %v8718_v22 }
0x1114   :  { %5704 = vmatpush3.bf16.msra.mxu0 %v8753_v39 }
0x11ca   :  { %v4837_v57 = vpop.f32.mrb[68].mxu0 }
0x11cb   :  { %v5687_v14 = vpop.f32.mrb[69].mxu0 }
0x11cc   :  { %v4840_v40 = vpop.f32.mrb[70].mxu0 }
0x11cd   :  { %v4844_v35 = vpack.c.bf16 %v4840_v40, %v4837_v57  ;;  %v5688_v36 = vpop.f32.mrb[71].mxu0 }
0x11cf   :  { %5706 = vmatmul.mubr.bf16.vlgmr.msra.gmra.mrb[72].mxu0 %v4844_v35 }
0x12a2   :  { %v4879_v4 = vpop.f32.mrb[72].mxu0 }
0x12a3   :  { %v5707_v58 = vpop.f32.mrb[73].mxu0  ;;  %v4880_v49 = vadd.f32 %v4879_v4, %v8754_v37 }
0x12a4   :  { %v4882_v60 = vpop.f32.mrb[74].mxu0 }
0x12a5   :  { %v4883_v28 = vadd.f32 %v4882_v60, %v8754_v37  ;;  %v5708_v48 = vpop.f32.mrb[75].mxu0 }
0x12a7   :  { %v4886_v56 = vadd.f32 %v4883_v28, %v4880_v49 }
0x12a9   :  { %v4887_v50 = vrot.slane %v4886_v56, 4 }
0x12ab   :  { %v4888_v8 = vadd.f32 %v4887_v50, %v4886_v56 }
0x12ad   :  { %v4889_v22 = vrot.slane %v4888_v8, 2 }
0x12af   :  { %v4890_v46 = vadd.f32 %v4889_v22, %v4888_v8 }
0x12b1   :  { %v4891_v23 = vrot.slane %v4890_v46, 1 }
0x12b3   :  { %v4892_v0 = vadd.f32 %v4891_v23, %v4890_v46 }
0x12b5   :  { %v4893_v27 = vmul.f32 0.0625, %v4892_v0 }
0x12b7   :  { %v4894_v10 = vsub.f32 %v4880_v49, %v4893_v27  ;;  %v4895_v44 = vsub.f32 %v4883_v28, %v4893_v27 }
0x12b9   :  { %v4896_v24 = vmul.f32 %v4894_v10, %v4894_v10  ;;  %v4897_v6 = vmul.f32 %v4895_v44, %v4895_v44 }
0x12bb   :  { %v4898_v25 = vadd.f32 %v4897_v6, %v4896_v24 }
0x12bd   :  { %v4899_v54 = vrot.slane %v4898_v25, 4 }
0x12bf   :  { %v4900_v17 = vadd.f32 %v4899_v54, %v4898_v25 }
0x12c1   :  { %v4901_v18 = vrot.slane %v4900_v17, 2 }
0x12c3   :  { %v4902_v20 = vadd.f32 %v4901_v18, %v4900_v17 }
0x12c5   :  { %v4903_v52 = vrot.slane %v4902_v20, 1 }
0x12c7   :  { %v4904_v59 = vadd.f32 %v4903_v52, %v4902_v20 }
0x12c9   :  { %v4905_v34 = vmul.f32 0.0625, %v4904_v59 }
0x12cb   :  { %v4906_v45 = vadd.f32 1e-05, %v4905_v34 }
0x12cd   :  { %5930 = vrsqrt.f32 %v4906_v45 }
0x12d7   :  { %v5931_v9 = vpop.eup %5930 }
0x12d8   :  { %v4908_v12 = vmul.f32 %v5931_v9, %v4894_v10  ;;  %v4909_v21 = vmul.f32 %v5931_v9, %v4895_v44 }
0x12da   :  { %v4910_v2 = vmul.f32 %v4908_v12, %v8082_v16  ;;  %v4911_v13 = vmul.f32 %v4909_v21, %v8082_v16 }
0x12dc   :  { %v4913_v62 = vadd.f32 %v4911_v13, %v8086_v26  ;;  %v4912_v30 = vadd.f32 %v4910_v2, %v8086_v26 }
0x12de   :  { %4961 = vst [vmem:[#allocation8 + $0x8] sm:$0xff] %v4913_v62  ;;  %v4914_v55 = vpack.c.bf16 %v4913_v62, %v4912_v30  ;;  %4960 = vst [vmem:[#allocation8] sm:$0xff] %v4912_v30 }
0x12e0   :  { %5726 = vmatmul.mubr.bf16.vlgmr.msra.gmra.mrb[48].mxu1 %v4914_v55 }
0x12e1   :  { %6116 = shalt.err (!%p6113_p6)
}
0x12e2   :  { %s6117_s11 = scalar_lea.hbm %s8480_s7, 256 }
0x12e3   :  { %p6118_p7 = scmp.ne.s32.totalorder %s8480_s7, %s6117_s11  ;;  %p6121_p8 = scmp.lt.u32.totalorder %s6117_s11, %s8480_s7 }
0x12e5   :  { %p6123_p9 = pnand %p6121_p8, %p6118_p7 }
0x12e7   :  { %6126 = shalt.err (!%p6123_p9)
}
0x12e8   :  { %4975 = dma.vmem_to_hbm [thread:$0]  %s4970_s25, 256, %s8480_s7, [#allocation4], %s6161_s0, %s6161_s0, %s6162_s14  }
0x12e9   :  { %s6127_s18 = scalar_lea.vmem %s8428_s27, 256  ;;  %p6132_p11 = scmp.lt.s32.totalorder %s8428_s27, %s8428_s27 }
0x12ea   :  { %p6128_p10 = scmp.ne.s32.totalorder %s8428_s27, %s6127_s18  ;;  %p6133_p12 = scmp.lt.s32.totalorder %s6127_s18, %s6127_s18 }
0x12ec   :  { %p6134_p13 = por %p6133_p12, %p6132_p11 }
0x12ee   :  { %p6135_p0 = pnand %p6134_p13, %p6128_p10 }
0x12f0   :  { %6138 = shalt.err (!%p6135_p0)
}
0x12f1   :  { %s6139_s5 = scalar_lea.hbm %s8482_s9, 256 }
0x12f2   :  { %p6140_p1 = scmp.ne.s32.totalorder %s8482_s9, %s6139_s5  ;;  %p6143_p2 = scmp.lt.u32.totalorder %s6139_s5, %s8482_s9 }
0x12f4   :  { %p6145_p3 = pnand %p6143_p2, %p6140_p1 }
0x12f6   :  { %6148 = shalt.err (!%p6145_p3)
}
0x12f7   :  { %4989 = dma.vmem_to_hbm [thread:$0]  %s8428_s27, 256, %s8482_s9, [#allocation9], %s6161_s0, %s6161_s0, %s6162_s14  }
0x13b3   :  { %v4949_v16 = vpop.f32.mrb[48].mxu1 }
0x13b4   :  { %v4950_v26 = vadd.f32 %v4949_v16, %v8319_v32  ;;  %v5727_v19 = vpop.f32.mrb[49].mxu1 }
0x13b5   :  { %v4952_v5 = vpop.f32.mrb[50].mxu1 }
0x13b6   :  { %4962 = vst [vmem:[%s8483_s10] sm:$0xff] %v4950_v26  ;;  %v4953_v43 = vadd.f32 %v4952_v5, %v8319_v32  ;;  %v5728_v53 = vpop.f32.mrb[51].mxu1 }
0x13b8   :  { %4963 = vst [vmem:[%s8483_s10 + $0x8] sm:$0xff] %v4953_v43 }
0x13b9   :  { %6153 = dma.done.wait [#allocation4], 256  }
0x13ba   :  { %6154 = vsyncadd [#allocation4], 4294967040 }
0x13bb   :  { %6155 = dma.done.wait [#allocation9], 256  }
0x13bc   :  { %6156 = vsyncadd [#allocation9], 4294967040 }
0x13bd   :  { %5002 = vsyncpa [#allocation3], 1 }
0x13be   :  { %5003 = vsyncpa [#allocation6], 1 }
0x13bf   :  { %5004 = vsyncpa [#allocation4], 1 }
0x13c0   :  { %5005 = vsyncpa [#allocation9], 1 }

</bundles_post_ra>
